<compile_context>
chip_gen: v7x
topology: tpu7x:2x2x1
jax: 0.10.0
libtpu: 0.0.40
codegen_flags: <defaults>
</compile_context>

<pallas_src>
import numpy as np
import jax
import jax.numpy as jnp
from jax import lax
from jax.experimental import pallas as pl
from jax.experimental.pallas import tpu as pltpu

_C = 32  # conv channel width fixed by the model


def _banded_conv_weight(w_hwio, width):
    """Fold a 3x3 stride-1 pad-1 conv (incl. its width zero-padding) into 3
    per-kh band matrices of shape (width*Cin, width*Cout), acting on rows
    whose lane layout is (w, c)."""
    kh_n, kw_n, ci, co = w_hwio.shape
    assert kh_n == 3 and kw_n == 3
    band = np.zeros((3, width * ci, width * co), np.float32)
    for kh in range(3):
        for kw in range(3):
            for w in range(width):
                wi = w + kw - 1
                if 0 <= wi < width:
                    band[kh, wi * ci:(wi + 1) * ci, w * co:(w + 1) * co] = \
                        w_hwio[kh, kw]
    return band


def prepare_critic_params(params, H, W, compute_dtype=jnp.float32):
    """One-time parameter preprocessing (hoisted out of the per-call path)."""
    assert H % 4 == 0 and W % 4 == 0, \
        "avg_pool2d(4)+head fold assumes H % 4 == 0 and W % 4 == 0"
    C = _C
    HP, WP = H // 4, W // 4
    eps = 1e-5

    # OIHW -> HWIO
    w1 = np.transpose(np.asarray(params["conv1_w"], np.float32), (2, 3, 1, 0))
    w2 = np.transpose(np.asarray(params["conv2_w"], np.float32), (2, 3, 1, 0))

    # Fold BN2 running stats + affine: scale into conv2 weights, keep bias.
    gamma = np.asarray(params["bn2_gamma"], np.float32)
    beta = np.asarray(params["bn2_beta"], np.float32)
    mean = np.asarray(params["bn2_mean"], np.float32)
    var = np.asarray(params["bn2_var"], np.float32)
    scale = gamma / np.sqrt(var + eps)
    bias = beta - mean * scale
    w2 = w2 * scale[None, None, None, :]

    w1_band = _banded_conv_weight(w1, W)             # (3, W*Cin, W*C)
    w2_band = _banded_conv_weight(w2, W)             # (3, W*C,   W*C)
    bias_lane = np.tile(bias, W).reshape(1, W * C)   # lane = w*C + c

    # Fuse avg_pool(4) + value head + PyTorch CHW flatten into weff[h, w*C+c].
    fc_w = np.asarray(params["fc_w"], np.float32).reshape(C, HP, WP)
    weff = np.repeat(np.repeat(fc_w, 4, axis=1), 4, axis=2) / 16.0  # (C,H,W)
    weff = np.transpose(weff, (1, 2, 0)).reshape(H, W * C)
    bv = np.asarray(params["fc_b"], np.float32).reshape(1, 1)

    return {
        "H": H, "W": W, "Cin": int(w1.shape[2]), "dtype": compute_dtype,
        "w1_band": jnp.asarray(w1_band, compute_dtype),
        "w2_band": jnp.asarray(w2_band, compute_dtype),
        "bias": jnp.asarray(bias_lane, jnp.float32),
        "weff": jnp.asarray(weff, jnp.float32),
        "bv": jnp.asarray(bv, jnp.float32),
    }


def _make_critic_kernel(Bt, H, W, Cin, cdtype):
    C = _C
    WC = W * C
    WC1 = W * Cin
    M = Bt * H
    f32 = jnp.float32

    def kernel(x_ref, w1_ref, w2_ref, bias_ref, weff_ref, bv_ref,
               out_ref, pad_ref):
        # ---- conv1: 3 banded MXU dots (one per kh) + ReLU -------------------
        # Width zero-padding is folded into w1_band; height padding comes from
        # the (already padded) input rows.
        t1 = [jnp.dot(x_ref[:, kh:kh + H, :].reshape(M, WC1), w1_ref[kh],
                      preferred_element_type=f32) for kh in range(3)]
        h1 = jnp.maximum(t1[0] + t1[1] + t1[2], 0.0)

        # ---- height re-pad into lane-dense persistent scratch ---------------
        # Only the two border rows are zeroed; interior is fully overwritten.
        # Re-zeroing every step keeps this correct under megacore sharding.
        zrow = jnp.zeros((Bt, 1, WC), cdtype)
        pad_ref[:, 0:1, :] = zrow
        pad_ref[:, H + 1:H + 2, :] = zrow
        pad_ref[:, 1:H + 1, :] = h1.reshape(Bt, H, WC).astype(cdtype)

        # ---- conv2 (BN2 scale folded into w2_band) + bias + ReLU ------------
        t2 = [jnp.dot(pad_ref[:, kh:kh + H, :].reshape(M, WC), w2_ref[kh],
                      preferred_element_type=f32) for kh in range(3)]
        h2 = jnp.maximum(t2[0] + t2[1] + t2[2] + bias_ref[...], 0.0)

        # ---- fused avg_pool2d(4) + value head --------------------------------
        # weff folds the 1/16 pooling average and PyTorch's CHW flatten:
        # val[b] = sum_{h, w*C+c} h2[b,h,l] * weff[h,l] + fc_bias
        prod = h2.reshape(Bt, H, WC) * weff_ref[...]
        v = jnp.sum(prod, axis=2)                  # (Bt, H)
        v = jnp.sum(v, axis=1, keepdims=True)      # (Bt, 1)
        out_ref[...] = v + bv_ref[...]

    return kernel


def critic_net_forward(x_nchw, prep, batch_tile=32):
    H, W, Cin = prep["H"], prep["W"], prep["Cin"]
    C = _C
    cdtype = prep["dtype"]
    B = int(x_nchw.shape[0])
    assert x_nchw.shape[1:] == (Cin, H, W)

    # Batch tile: multiple of 8 (aligned output blocks).  If the whole batch
    # would fit in one step, halve Bt so the "parallel" grid axis has >= 2
    # steps and both v7x TensorCores get work.
    Bt = max(8, (min(int(batch_tile), max(B, 8)) // 8) * 8)
    if pl.cdiv(B, Bt) < 2 and Bt > 8:
        Bt = max(8, ((Bt // 2) // 8) * 8)
    nb = max(1, pl.cdiv(B, Bt))
    Bp = nb * Bt

    # Per-call layout glue only: NCHW -> NHWC, pad batch + height, flatten
    # (w, ci) onto the lane axis.
    x = jnp.transpose(x_nchw, (0, 2, 3, 1)).astype(cdtype)
    x = jnp.pad(x, ((0, Bp - B), (1, 1), (0, 0), (0, 0)))
    x = x.reshape(Bp, H + 2, W * Cin)

    kernel = _make_critic_kernel(Bt, H, W, Cin, cdtype)
    out = pl.pallas_call(
        kernel,
        out_shape=jax.ShapeDtypeStruct((Bp, 1), jnp.float32),
        grid=(nb,),
        in_specs=[
            pl.BlockSpec((Bt, H + 2, W * Cin), lambda i: (i, 0, 0)),
            pl.BlockSpec((3, W * Cin, W * C), lambda i: (0, 0, 0)),
            pl.BlockSpec((3, W * C, W * C), lambda i: (0, 0, 0)),
            pl.BlockSpec((1, W * C), lambda i: (0, 0)),
            pl.BlockSpec((H, W * C), lambda i: (0, 0)),
            pl.BlockSpec((1, 1), lambda i: (0, 0)),
        ],
        out_specs=pl.BlockSpec((Bt, 1), lambda i: (i, 0)),
        scratch_shapes=[pltpu.VMEM((Bt, H + 2, W * C), cdtype)],
        compiler_params=pltpu.CompilerParams(
            dimension_semantics=("parallel",),
            vmem_limit_bytes=40 * 1024 * 1024),
    )(x, prep["w1_band"], prep["w2_band"], prep["bias"], prep["weff"],
      prep["bv"])
    return out[:B]


def init_params(key, in_channels, H, W):
    C = 32
    HP, WP = H // 4, W // 4
    ks = jax.random.split(key, 8)
    return {
        "conv1_w": 0.1 * jax.random.normal(ks[0], (C, in_channels, 3, 3), jnp.float32),
        "conv2_w": 0.1 * jax.random.normal(ks[1], (C, C, 3, 3), jnp.float32),
        "bn2_gamma": 1.0 + 0.1 * jax.random.normal(ks[2], (C,), jnp.float32),
        "bn2_beta": 0.1 * jax.random.normal(ks[3], (C,), jnp.float32),
        "bn2_mean": 0.1 * jax.random.normal(ks[4], (C,), jnp.float32),
        "bn2_var": jax.random.uniform(ks[5], (C,), jnp.float32, 0.5, 1.5),
        "fc_w": 0.1 * jax.random.normal(ks[6], (1, C * HP * WP), jnp.float32),
        "fc_b": 0.1 * jax.random.normal(ks[7], (1,), jnp.float32),
    }


def ref_forward(x, p):
    """Pure-JAX NCHW reference (mirrors the PyTorch forward, eval-mode BN)."""
    eps = 1e-5
    dn = ("NCHW", "OIHW", "NCHW")
    y = lax.conv_general_dilated(x, p["conv1_w"], (1, 1), "SAME",
                                 dimension_numbers=dn)
    y = jnp.maximum(y, 0.0)
    y = lax.conv_general_dilated(y, p["conv2_w"], (1, 1), "SAME",
                                 dimension_numbers=dn)
    y = (y - p["bn2_mean"][None, :, None, None]) \
        / jnp.sqrt(p["bn2_var"] + eps)[None, :, None, None]
    y = y * p["bn2_gamma"][None, :, None, None] + p["bn2_beta"][None, :, None, None]
    y = jnp.maximum(y, 0.0)
    B, C, H, W = y.shape
    y = y.reshape(B, C, H // 4, 4, W // 4, 4).mean(axis=(3, 5))
    y = y.reshape(B, -1)
    return y @ p["fc_w"].T + p["fc_b"]


if __name__ == "__main__":
    key = jax.random.PRNGKey(0)
    kx, kp = jax.random.split(key)
    B, Cin, H, W = 2, 4, 16, 16
    x = jax.random.normal(kx, (B, Cin, H, W), jnp.float32)
    params = init_params(kp, Cin, H, W)

    prep = prepare_critic_params(params, H, W)          # one-time prep
    out = critic_net_forward(x, prep)
    out = jax.block_until_ready(out)

    ref = ref_forward(x, params)
    assert out.shape == (B, 1)
    np.testing.assert_allclose(np.asarray(out), np.asarray(ref),
                               rtol=1e-4, atol=1e-4)
    print("KERNEL_OK")
</pallas_src>

<mosaic_0001>
module attributes {stable_mosaic.version = 11 : i64} {
  func.func @kernel(%arg0: i32, %arg1: memref<8x18x64xf32, #tpu.memory_space<vmem>>, %arg2: memref<3x64x512xf32, #tpu.memory_space<vmem>>, %arg3: memref<3x512x512xf32, #tpu.memory_space<vmem>>, %arg4: memref<1x512xf32, #tpu.memory_space<vmem>>, %arg5: memref<16x512xf32, #tpu.memory_space<vmem>>, %arg6: memref<1x1xf32, #tpu.memory_space<vmem>>, %arg7: memref<8x1xf32, #tpu.memory_space<vmem>>, %arg8: memref<8x18x512xf32, #tpu.memory_space<vmem>>) attributes {dimension_semantics = [#tpu.dimension_semantics<parallel>], iteration_bounds = array<i64: 1>, scalar_prefetch = 0 : i64, scratch_operands = 1 : i64, tpu.core_type = #tpu.core_type<tc>, window_params = [{transform_indices = @transform_0, window_bounds = array<i64: 8, 18, 64>}, {pipeline_mode = #tpu.pipeline_mode<synchronous>, transform_indices = @transform_1, window_bounds = array<i64: 3, 64, 512>}, {pipeline_mode = #tpu.pipeline_mode<synchronous>, transform_indices = @transform_2, window_bounds = array<i64: 3, 512, 512>}, {pipeline_mode = #tpu.pipeline_mode<synchronous>, transform_indices = @transform_3, window_bounds = array<i64: 1, 512>}, {pipeline_mode = #tpu.pipeline_mode<synchronous>, transform_indices = @transform_4, window_bounds = array<i64: 16, 512>}, {pipeline_mode = #tpu.pipeline_mode<synchronous>, transform_indices = @transform_5, window_bounds = array<i64: 1, 1>}, {transform_indices = @transform_6, window_bounds = array<i64: 8, 1>}]} {
    %c0 = arith.constant 0 : index
    %c0_0 = arith.constant 0 : index
    %c0_1 = arith.constant 0 : index
    %0 = vector.load %arg1[%c0, %c0_0, %c0_1] : memref<8x18x64xf32, #tpu.memory_space<vmem>>, vector<8x16x64xf32>
    %1 = vector.shape_cast %0 : vector<8x16x64xf32> to vector<128x64xf32>
    %c0_2 = arith.constant 0 : index
    %c0_3 = arith.constant 0 : index
    %c0_4 = arith.constant 0 : index
    %2 = vector.load %arg2[%c0_2, %c0_3, %c0_4] : memref<3x64x512xf32, #tpu.memory_space<vmem>>, vector<1x64x512xf32>
    %3 = vector.shape_cast %2 : vector<1x64x512xf32> to vector<64x512xf32>
    %cst = arith.constant dense<0.000000e+00> : vector<128x512xf32>
    %4 = tpu.matmul %1, %3, %cst {dimension_numbers = #tpu.dot_dimension_numbers<[1], [0], [0], [1], [0, 0, 1, 1], [], []>} : vector<128x64xf32>, vector<64x512xf32>, vector<128x512xf32> -> vector<128x512xf32>
    %c0_5 = arith.constant 0 : index
    %c1 = arith.constant 1 : index
    %c0_6 = arith.constant 0 : index
    %5 = vector.load %arg1[%c0_5, %c1, %c0_6] : memref<8x18x64xf32, #tpu.memory_space<vmem>>, vector<8x16x64xf32>
    %6 = vector.shape_cast %5 : vector<8x16x64xf32> to vector<128x64xf32>
    %c1_7 = arith.constant 1 : index
    %c0_8 = arith.constant 0 : index
    %c0_9 = arith.constant 0 : index
    %7 = vector.load %arg2[%c1_7, %c0_8, %c0_9] : memref<3x64x512xf32, #tpu.memory_space<vmem>>, vector<1x64x512xf32>
    %8 = vector.shape_cast %7 : vector<1x64x512xf32> to vector<64x512xf32>
    %cst_10 = arith.constant dense<0.000000e+00> : vector<128x512xf32>
    %9 = tpu.matmul %6, %8, %cst_10 {dimension_numbers = #tpu.dot_dimension_numbers<[1], [0], [0], [1], [0, 0, 1, 1], [], []>} : vector<128x64xf32>, vector<64x512xf32>, vector<128x512xf32> -> vector<128x512xf32>
    %c0_11 = arith.constant 0 : index
    %c2 = arith.constant 2 : index
    %c0_12 = arith.constant 0 : index
    %10 = vector.load %arg1[%c0_11, %c2, %c0_12] : memref<8x18x64xf32, #tpu.memory_space<vmem>>, vector<8x16x64xf32>
    %11 = vector.shape_cast %10 : vector<8x16x64xf32> to vector<128x64xf32>
    %c2_13 = arith.constant 2 : index
    %c0_14 = arith.constant 0 : index
    %c0_15 = arith.constant 0 : index
    %12 = vector.load %arg2[%c2_13, %c0_14, %c0_15] : memref<3x64x512xf32, #tpu.memory_space<vmem>>, vector<1x64x512xf32>
    %13 = vector.shape_cast %12 : vector<1x64x512xf32> to vector<64x512xf32>
    %cst_16 = arith.constant dense<0.000000e+00> : vector<128x512xf32>
    %14 = tpu.matmul %11, %13, %cst_16 {dimension_numbers = #tpu.dot_dimension_numbers<[1], [0], [0], [1], [0, 0, 1, 1], [], []>} : vector<128x64xf32>, vector<64x512xf32>, vector<128x512xf32> -> vector<128x512xf32>
    %15 = arith.addf %4, %9 : vector<128x512xf32>
    %16 = arith.addf %15, %14 : vector<128x512xf32>
    %cst_17 = arith.constant 0.000000e+00 : f32
    %17 = vector.broadcast %cst_17 : f32 to vector<128x512xf32>
    %18 = arith.maximumf %16, %17 : vector<128x512xf32>
    %cst_18 = arith.constant 0.000000e+00 : f32
    %19 = vector.broadcast %cst_18 : f32 to vector<8x1x512xf32>
    %c0_19 = arith.constant 0 : index
    %c0_20 = arith.constant 0 : index
    %c0_21 = arith.constant 0 : index
    %20 = vector.load %arg8[%c0_19, %c0_20, %c0_21] : memref<8x18x512xf32, #tpu.memory_space<vmem>>, vector<8x1x512xf32>
    tpu.vector_store %arg8[%c0_19, %c0_20, %c0_21], %19 {strides = array<i32>} : memref<8x18x512xf32, #tpu.memory_space<vmem>>, vector<8x1x512xf32>,
    %c0_22 = arith.constant 0 : index
    %c17 = arith.constant 17 : index
    %c0_23 = arith.constant 0 : index
    %21 = vector.load %arg8[%c0_22, %c17, %c0_23] : memref<8x18x512xf32, #tpu.memory_space<vmem>>, vector<8x1x512xf32>
    tpu.vector_store %arg8[%c0_22, %c17, %c0_23], %19 {strides = array<i32>} : memref<8x18x512xf32, #tpu.memory_space<vmem>>, vector<8x1x512xf32>,
    %22 = vector.shape_cast %18 : vector<128x512xf32> to vector<8x16x512xf32>
    %c0_24 = arith.constant 0 : index
    %c1_25 = arith.constant 1 : index
    %c0_26 = arith.constant 0 : index
    %23 = vector.load %arg8[%c0_24, %c1_25, %c0_26] : memref<8x18x512xf32, #tpu.memory_space<vmem>>, vector<8x16x512xf32>
    tpu.vector_store %arg8[%c0_24, %c1_25, %c0_26], %22 {strides = array<i32>} : memref<8x18x512xf32, #tpu.memory_space<vmem>>, vector<8x16x512xf32>,
    %c0_27 = arith.constant 0 : index
    %c0_28 = arith.constant 0 : index
    %c0_29 = arith.constant 0 : index
    %24 = vector.load %arg8[%c0_27, %c0_28, %c0_29] : memref<8x18x512xf32, #tpu.memory_space<vmem>>, vector<8x16x512xf32>
    %25 = vector.shape_cast %24 : vector<8x16x512xf32> to vector<128x512xf32>
    %c0_30 = arith.constant 0 : index
    %c0_31 = arith.constant 0 : index
    %c0_32 = arith.constant 0 : index
    %26 = vector.load %arg3[%c0_30, %c0_31, %c0_32] : memref<3x512x512xf32, #tpu.memory_space<vmem>>, vector<1x512x512xf32>
    %27 = vector.shape_cast %26 : vector<1x512x512xf32> to vector<512x512xf32>
    %cst_33 = arith.constant dense<0.000000e+00> : vector<128x512xf32>
    %28 = tpu.matmul %25, %27, %cst_33 {dimension_numbers = #tpu.dot_dimension_numbers<[1], [0], [0], [1], [0, 0, 1, 1], [], []>} : vector<128x512xf32>, vector<512x512xf32>, vector<128x512xf32> -> vector<128x512xf32>
    %c0_34 = arith.constant 0 : index
    %c1_35 = arith.constant 1 : index
    %c0_36 = arith.constant 0 : index
    %29 = vector.load %arg8[%c0_34, %c1_35, %c0_36] : memref<8x18x512xf32, #tpu.memory_space<vmem>>, vector<8x16x512xf32>
    %30 = vector.shape_cast %29 : vector<8x16x512xf32> to vector<128x512xf32>
    %c1_37 = arith.constant 1 : index
    %c0_38 = arith.constant 0 : index
    %c0_39 = arith.constant 0 : index
    %31 = vector.load %arg3[%c1_37, %c0_38, %c0_39] : memref<3x512x512xf32, #tpu.memory_space<vmem>>, vector<1x512x512xf32>
    %32 = vector.shape_cast %31 : vector<1x512x512xf32> to vector<512x512xf32>
    %cst_40 = arith.constant dense<0.000000e+00> : vector<128x512xf32>
    %33 = tpu.matmul %30, %32, %cst_40 {dimension_numbers = #tpu.dot_dimension_numbers<[1], [0], [0], [1], [0, 0, 1, 1], [], []>} : vector<128x512xf32>, vector<512x512xf32>, vector<128x512xf32> -> vector<128x512xf32>
    %c0_41 = arith.constant 0 : index
    %c2_42 = arith.constant 2 : index
    %c0_43 = arith.constant 0 : index
    %34 = vector.load %arg8[%c0_41, %c2_42, %c0_43] : memref<8x18x512xf32, #tpu.memory_space<vmem>>, vector<8x16x512xf32>
    %35 = vector.shape_cast %34 : vector<8x16x512xf32> to vector<128x512xf32>
    %c2_44 = arith.constant 2 : index
    %c0_45 = arith.constant 0 : index
    %c0_46 = arith.constant 0 : index
    %36 = vector.load %arg3[%c2_44, %c0_45, %c0_46] : memref<3x512x512xf32, #tpu.memory_space<vmem>>, vector<1x512x512xf32>
    %37 = vector.shape_cast %36 : vector<1x512x512xf32> to vector<512x512xf32>
    %cst_47 = arith.constant dense<0.000000e+00> : vector<128x512xf32>
    %38 = tpu.matmul %35, %37, %cst_47 {dimension_numbers = #tpu.dot_dimension_numbers<[1], [0], [0], [1], [0, 0, 1, 1], [], []>} : vector<128x512xf32>, vector<512x512xf32>, vector<128x512xf32> -> vector<128x512xf32>
    %39 = arith.addf %28, %33 : vector<128x512xf32>
    %40 = arith.addf %39, %38 : vector<128x512xf32>
    %c0_48 = arith.constant 0 : index
    %c0_49 = arith.constant 0 : index
    %41 = vector.load %arg4[%c0_48, %c0_49] : memref<1x512xf32, #tpu.memory_space<vmem>>, vector<1x512xf32>
    %42 = vector.broadcast %41 : vector<1x512xf32> to vector<128x512xf32>
    %43 = arith.addf %40, %42 : vector<128x512xf32>
    %cst_50 = arith.constant 0.000000e+00 : f32
    %44 = vector.broadcast %cst_50 : f32 to vector<128x512xf32>
    %45 = arith.maximumf %43, %44 : vector<128x512xf32>
    %46 = vector.shape_cast %45 : vector<128x512xf32> to vector<8x16x512xf32>
    %c0_51 = arith.constant 0 : index
    %c0_52 = arith.constant 0 : index
    %47 = vector.load %arg5[%c0_51, %c0_52] : memref<16x512xf32, #tpu.memory_space<vmem>>, vector<16x512xf32>
    %48 = vector.shape_cast %47 : vector<16x512xf32> to vector<1x16x512xf32>
    %49 = vector.broadcast %48 : vector<1x16x512xf32> to vector<8x16x512xf32>
    %50 = arith.mulf %46, %49 : vector<8x16x512xf32>
    %cst_53 = arith.constant dense<0.000000e+00> : vector<8x16xf32>
    %51 = vector.multi_reduction <add>, %50, %cst_53 [2] : vector<8x16x512xf32> to vector<8x16xf32>
    %cst_54 = arith.constant dense<0.000000e+00> : vector<8xf32>
    %52 = vector.multi_reduction <add>, %51, %cst_54 [1] : vector<8x16xf32> to vector<8xf32>
    %53 = vector.shape_cast %52 : vector<8xf32> to vector<8x1xf32>
    %c0_55 = arith.constant 0 : index
    %c0_56 = arith.constant 0 : index
    %54 = vector.load %arg6[%c0_55, %c0_56] : memref<1x1xf32, #tpu.memory_space<vmem>>, vector<1x1xf32>
    %55 = vector.broadcast %54 : vector<1x1xf32> to vector<8x1xf32>
    %56 = arith.addf %53, %55 : vector<8x1xf32>
    %c0_57 = arith.constant 0 : index
    %c0_58 = arith.constant 0 : index
    %57 = vector.load %arg7[%c0_57, %c0_58] : memref<8x1xf32, #tpu.memory_space<vmem>>, vector<8x1xf32>
    tpu.vector_store %arg7[%c0_57, %c0_58], %56 {strides = array<i32>} : memref<8x1xf32, #tpu.memory_space<vmem>>, vector<8x1xf32>,
    return
  }
  func.func @transform_0(%arg0: i32) -> (i32, i32, i32) {
    %c0_i32 = arith.constant 0 : i32
    %c0_i32_0 = arith.constant 0 : i32
    %c0_i32_1 = arith.constant 0 : i32
    return %arg0, %c0_i32, %c0_i32_0 : i32, i32, i32
  }
  func.func @transform_1(%arg0: i32) -> (i32, i32, i32) {
    %c0_i32 = arith.constant 0 : i32
    %c0_i32_0 = arith.constant 0 : i32
    %c0_i32_1 = arith.constant 0 : i32
    %c0_i32_2 = arith.constant 0 : i32
    return %c0_i32, %c0_i32_0, %c0_i32_1 : i32, i32, i32
  }
  func.func @transform_2(%arg0: i32) -> (i32, i32, i32) {
    %c0_i32 = arith.constant 0 : i32
    %c0_i32_0 = arith.constant 0 : i32
    %c0_i32_1 = arith.constant 0 : i32
    %c0_i32_2 = arith.constant 0 : i32
    return %c0_i32, %c0_i32_0, %c0_i32_1 : i32, i32, i32
  }
  func.func @transform_3(%arg0: i32) -> (i32, i32) {
    %c0_i32 = arith.constant 0 : i32
    %c0_i32_0 = arith.constant 0 : i32
    %c0_i32_1 = arith.constant 0 : i32
    return %c0_i32, %c0_i32_0 : i32, i32
  }
  func.func @transform_4(%arg0: i32) -> (i32, i32) {
    %c0_i32 = arith.constant 0 : i32
    %c0_i32_0 = arith.constant 0 : i32
    %c0_i32_1 = arith.constant 0 : i32
    return %c0_i32, %c0_i32_0 : i32, i32
  }
  func.func @transform_5(%arg0: i32) -> (i32, i32) {
    %c0_i32 = arith.constant 0 : i32
    %c0_i32_0 = arith.constant 0 : i32
    %c0_i32_1 = arith.constant 0 : i32
    return %c0_i32, %c0_i32_0 : i32, i32
  }
  func.func @transform_6(%arg0: i32) -> (i32, i32) {
    %c0_i32 = arith.constant 0 : i32
    %c0_i32_0 = arith.constant 0 : i32
    return %arg0, %c0_i32 : i32, i32
  }
}

</mosaic_0001>

<bundles_post_ra>
// kernel: tpu_custom_call.1
= control target key start
LH: loop header
LB: loop body
LE: loop exit
PB: predicated region body
PF: predicated region fallthrough
CT: control target
= control target key end

     0   :  { %s8922_s0 = inlined_call_operand.vmem [shape: f32[8,18,64], index: 0, kind: input, shape index: {}]   ;;  %s8923_s1 = inlined_call_operand.hbm [shape: f32[3,64,512], index: 1, kind: input, shape index: {}]   ;;  %s8924_s2 = inlined_call_operand.hbm [shape: f32[3,512,512], index: 2, kind: input, shape index: {}]   ;;  %s8925_s3 = inlined_call_operand.hbm [shape: f32[1,512], index: 3, kind: input, shape index: {}]   ;;  %s8926_s4 = inlined_call_operand.hbm [shape: f32[16,512], index: 4, kind: input, shape index: {}]   ;;  %s8927_s5 = inlined_call_operand.<no memory space> [shape: f32[1,1], index: 5, kind: input, shape index: {}]   ;;  %s8928_s6 = inlined_call_operand.vmem [shape: f32[8,1], index: 6, kind: output, shape index: {}]  }
   0x1   :  { %v11_v0 = vstv %s8927_s5 }
   0x2   :  { %12 = vst [vmem:[#allocation3] sm:$0x1] %v11_v0 }
   0x3   :  { %13 = vsyncpa [#allocation5], 0 }
   0x4   :  { %14 = vsyncpa [#allocation7], 0 }
   0x5   :  { %15 = vsyncpa [#allocation10], 0  ;;  %s7436_s23 = smov [#allocation6]   ;;  %s7437_s25 = smov [#allocation4]  }
   0x6   :  { %s35_s24 = sshll.u32 %s7436_s23, 4  ;;  %s23_s26 = sshll.u32 %s7437_s25, 4  ;;  %s36_s24 = int_to_ptr.vmem [resolvable:$true] %s35_s24  ;;  %s7481_s26 = int_to_ptr.vmem [resolvable:$true] %s23_s26 }
   0x7   :  { %s7342_s29 = scalar_lea.hbm %s8924_s2, 98304 }
   0x8   :  { %p7343_p0 = scmp.ne.s32.totalorder %s8924_s2, %s7342_s29  ;;  %p7346_p1 = scmp.lt.u32.totalorder %s7342_s29, %s8924_s2 }
   0xa   :  { %p7348_p2 = pnand %p7346_p1, %p7343_p0 }
   0xc   :  { %7351 = shalt.err (!%p7348_p2)
}
   0xd   :  { %s7352_s9 = scalar_lea.vmem %s36_s24, 98304  ;;  %p7357_p4 = scmp.lt.s32.totalorder %s36_s24, %s36_s24 }
   0xe   :  { %p7353_p3 = scmp.ne.s32.totalorder %s36_s24, %s7352_s9  ;;  %p7358_p5 = scmp.lt.s32.totalorder %s7352_s9, %s7352_s9 }
  0x10   :  { %p7359_p6 = por %p7358_p5, %p7357_p4 }
  0x12   :  { %p7360_p7 = pnand %p7359_p6, %p7353_p3 }
  0x14   :  { %7363 = shalt.err (!%p7360_p7)
}
  0x15   :  { %s7438_s10 = smov 512   ;;  %s7439_s11 = smov 32  }
  0x16   :  { %41 = dma.hbm_to_vmem [thread:$0]  %s8924_s2, 98304, %s36_s24, [#allocation7], %s7438_s10, %s7438_s10, %s7439_s11  }
  0x17   :  { %s7364_s16 = scalar_lea.hbm %s8923_s1, 12288 }
  0x18   :  { %p7365_p8 = scmp.ne.s32.totalorder %s8923_s1, %s7364_s16  ;;  %p7368_p9 = scmp.lt.u32.totalorder %s7364_s16, %s8923_s1 }
  0x1a   :  { %p7370_p10 = pnand %p7368_p9, %p7365_p8 }
  0x1c   :  { %7373 = shalt.err (!%p7370_p10)
}
  0x1d   :  { %s7374_s21 = scalar_lea.vmem %s7481_s26, 12288  ;;  %p7379_p12 = scmp.lt.s32.totalorder %s7481_s26, %s7481_s26 }
  0x1e   :  { %p7375_p11 = scmp.ne.s32.totalorder %s7481_s26, %s7374_s21  ;;  %p7380_p13 = scmp.lt.s32.totalorder %s7374_s21, %s7374_s21 }
  0x20   :  { %p7381_p0 = por %p7380_p13, %p7379_p12 }
  0x22   :  { %p7382_p1 = pnand %p7381_p0, %p7375_p11 }
  0x24   :  { %7385 = shalt.err (!%p7382_p1)
}
  0x25   :  { %29 = dma.hbm_to_vmem [thread:$0]  %s8923_s1, 12288, %s7481_s26, [#allocation5], %s7438_s10, %s7438_s10, %s7439_s11  }
  0x26   :  { %s7440_s23 = smov [#allocation8]   ;;  %s7441_s25 = smov [#allocation9]  }
  0x27   :  { %s48_s24 = sshll.u32 %s7440_s23, 4  ;;  %s57_s27 = sshll.u32 %s7441_s25, 4  ;;  %s49_s24 = int_to_ptr.vmem [resolvable:$true] %s48_s24  ;;  %s7518_s27 = int_to_ptr.vmem [resolvable:$true] %s57_s27 }
  0x28   :  { %s7386_s30 = scalar_lea.hbm %s8925_s3, 64 }
  0x29   :  { %p7387_p2 = scmp.ne.s32.totalorder %s8925_s3, %s7386_s30  ;;  %p7390_p3 = scmp.lt.u32.totalorder %s7386_s30, %s8925_s3 }
  0x2b   :  { %p7392_p4 = pnand %p7390_p3, %p7387_p2 }
  0x2d   :  { %7395 = shalt.err (!%p7392_p4)
}
  0x2e   :  { %s7396_s1 = scalar_lea.vmem %s49_s24, 64  ;;  %p7401_p6 = scmp.lt.s32.totalorder %s49_s24, %s49_s24 }
  0x2f   :  { %p7397_p5 = scmp.ne.s32.totalorder %s49_s24, %s7396_s1  ;;  %p7402_p7 = scmp.lt.s32.totalorder %s7396_s1, %s7396_s1 }
  0x31   :  { %p7403_p8 = por %p7402_p7, %p7401_p6 }
  0x33   :  { %p7404_p9 = pnand %p7403_p8, %p7397_p5 }
  0x35   :  { %7407 = shalt.err (!%p7404_p9)
}
  0x36   :  { %51 = dma.hbm_to_vmem [thread:$0]  %s8925_s3, 64, %s49_s24, [#allocation7]  }
  0x37   :  { %s7408_s15 = scalar_lea.hbm %s8926_s4, 1024 }
  0x38   :  { %p7409_p10 = scmp.ne.s32.totalorder %s8926_s4, %s7408_s15  ;;  %p7412_p11 = scmp.lt.u32.totalorder %s7408_s15, %s8926_s4 }
  0x3a   :  { %p7414_p12 = pnand %p7412_p11, %p7409_p10 }
  0x3c   :  { %7417 = shalt.err (!%p7414_p12)
}
  0x3d   :  { %s7418_s20 = scalar_lea.vmem %s7518_s27, 1024  ;;  %p7423_p0 = scmp.lt.s32.totalorder %s7518_s27, %s7518_s27 }
  0x3e   :  { %p7419_p13 = scmp.ne.s32.totalorder %s7518_s27, %s7418_s20  ;;  %p7424_p1 = scmp.lt.s32.totalorder %s7418_s20, %s7418_s20 }
  0x40   :  { %p7425_p2 = por %p7424_p1, %p7423_p0 }
  0x42   :  { %p7426_p3 = pnand %p7425_p2, %p7419_p13 }
  0x44   :  { %7429 = shalt.err (!%p7426_p3)
}
  0x45   :  { %63 = dma.hbm_to_vmem [thread:$0]  %s8926_s4, 1024, %s7518_s27, [#allocation10], %s7438_s10, %s7438_s10, %s7439_s11  }
  0x46   :  { %7430 = dma.done.wait [#allocation5], 12288  }
  0x47   :  { %7431 = vsyncadd [#allocation5], 4294955008 }
  0x48   :  { %7432 = dma.done.wait [#allocation7], 98368  }
  0x49   :  { %7433 = vsyncadd [#allocation7], 4294868928 }
  0x4a   :  { %7434 = dma.done.wait [#allocation10], 1024  }
  0x4b   :  { %7435 = vsyncadd [#allocation10], 4294966272  ;;  %v7442_v1 = vmov 0.0   ;;  %v144_v2 = vld [vmem:[#allocation4 + $0x108] sm:$0xff]  ;;  %v146_v4 = vld [vmem:[#allocation4 + $0x118] sm:$0xff]  ;;  %vm175_vm0 = vcmask 523264  }
  0x4c   :  { %288 = vmatprep.mubr.f32.mxu0 %v7442_v1  ;;  %449 = vmatprep.mubr.f32.mxu1 %v7442_v1  ;;  %v148_v3 = vld [vmem:[#allocation4 + $0x128] sm:$0xff]  ;;  %v150_v6 = vld [vmem:[#allocation4 + $0x138] sm:$0xff]  ;;  %v143_v7 = vld [vmem:[#allocation4 + $0x100] sm:$0xff]  ;;  %vm1578_vm2 = vcmask 1040384   ;;  %vm2347_vm3 = vcmask 1046528   ;;  %vm3601_vm4 = vcmask 1045504  }
  0x4d   :  { %v5962_v5 = vpack.c.bf16 %v148_v3, %v144_v2  ;;  %v147_v8 = vld [vmem:[#allocation4 + $0x120] sm:$0xff]  ;;  %v5978_v9 = vpack.c.bf16 %v150_v6, %v146_v4  ;;  %v145_v11 = vld [vmem:[#allocation4 + $0x110] sm:$0xff]  ;;  %v152_v13 = vld [vmem:[#allocation4 + $0x148] sm:$0xff]  ;;  %vm5764_vm5 = vcmask 130112   ;;  %vm5829_vm6 = vcmask 1041409  }
  0x4e   :  { %v5964_v10 = vpack.c.bf16 %v147_v8, %v143_v7  ;;  %v149_v12 = vld [vmem:[#allocation4 + $0x130] sm:$0xff]  ;;  %v156_v15 = vld [vmem:[#allocation4 + $0x168] sm:$0xff]  ;;  %v154_v16 = vld [vmem:[#allocation4 + $0x158] sm:$0xff]  ;;  %vm5831_vm7 = vcmask 1042434   ;;  %vm5833_vm8 = vcmask 1043459   ;;  %vm5835_vm9 = vcmask 1044484  }
  0x4f   :  { %5963 = vmatprep.subr.bf16.mxu0 %v5962_v5  ;;  %v5980_v14 = vpack.c.bf16 %v149_v12, %v145_v11  ;;  %v158_v17 = vld [vmem:[#allocation4 + $0x178] sm:$0xff]  ;;  %5979 = vmatprep.subr.bf16.mxu1 %v5978_v9  ;;  %v5966_v18 = vpack.c.bf16 %v156_v15, %v152_v13  ;;  %v151_v20 = vld [vmem:[#allocation4 + $0x140] sm:$0xff]  ;;  %v153_v22 = vld [vmem:[#allocation4 + $0x150] sm:$0xff]  ;;  %vm5837_vm10 = vcmask 1045509   ;;  %vm5839_vm11 = vcmask 1046534  }
  0x50   :  { %5965 = vmatpush1.bf16.msra.mxu0 %v5964_v10  ;;  %v5982_v19 = vpack.c.bf16 %v158_v17, %v154_v16  ;;  %v155_v21 = vld [vmem:[#allocation4 + $0x160] sm:$0xff]  ;;  %v157_v24 = vld [vmem:[#allocation4 + $0x170] sm:$0xff]  ;;  %v160_v25 = vld [vmem:[#allocation4 + $0x188] sm:$0xff]  ;;  %vm5841_vm12 = vcmask 1047559   ;;  %vm5844_vm13 = vcmask 130048   ;;  %vm5856_vm14 = vcmask 7168  }
  0x51   :  { %5981 = vmatpush1.bf16.msra.mxu1 %v5980_v14  ;;  %v5968_v23 = vpack.c.bf16 %v155_v21, %v151_v20  ;;  %v164_v26 = vld [vmem:[#allocation4 + $0x1a8] sm:$0xff]  ;;  %5967 = vmatprep.subr.bf16.mxu0 %v5966_v18  ;;  %v5984_v27 = vpack.c.bf16 %v157_v24, %v153_v22  ;;  %v162_v29 = vld [vmem:[#allocation4 + $0x198] sm:$0xff]  ;;  %v159_v31 = vld [vmem:[#allocation4 + $0x180] sm:$0xff] }
  0x52   :  { %5983 = vmatprep.subr.bf16.mxu1 %v5982_v19  ;;  %v5970_v28 = vpack.c.bf16 %v164_v26, %v160_v25  ;;  %v166_v30 = vld [vmem:[#allocation4 + $0x1b8] sm:$0xff]  ;;  %v163_v33 = vld [vmem:[#allocation4 + $0x1a0] sm:$0xff]  ;;  %v161_v34 = vld [vmem:[#allocation4 + $0x190] sm:$0xff] }
  0x53   :  { %v5986_v32 = vpack.c.bf16 %v166_v30, %v162_v29  ;;  %v165_v35 = vld [vmem:[#allocation4 + $0x1b0] sm:$0xff]  ;;  %v5972_v36 = vpack.c.bf16 %v163_v33, %v159_v31  ;;  %v168_v37 = vld [vmem:[#allocation4 + $0x1c8] sm:$0xff]  ;;  %v170_v39 = vld [vmem:[#allocation4 + $0x1d8] sm:$0xff] }
  0x54   :  { %5969 = vmatpush1.bf16.msra.mxu0 %v5968_v23  ;;  %v172_v38 = vld [vmem:[#allocation4 + $0x1e8] sm:$0xff]  ;;  %v5988_v40 = vpack.c.bf16 %v165_v35, %v161_v34  ;;  %v174_v42 = vld [vmem:[#allocation4 + $0x1f8] sm:$0xff]  ;;  %v167_v43 = vld [vmem:[#allocation4 + $0x1c0] sm:$0xff] }
  0x55   :  { %5985 = vmatpush1.bf16.msra.mxu1 %v5984_v27  ;;  %5971 = vmatprep.subr.bf16.mxu0 %v5970_v28  ;;  %v5974_v41 = vpack.c.bf16 %v172_v38, %v168_v37  ;;  %v171_v44 = vld [vmem:[#allocation4 + $0x1e0] sm:$0xff]  ;;  %v5990_v45 = vpack.c.bf16 %v174_v42, %v170_v39  ;;  %v169_v46 = vld [vmem:[#allocation4 + $0x1d0] sm:$0xff]  ;;  %v564_v48 = vld [vmem:[#allocation4 + $0x208] sm:$0xff] }
  0x56   :  { %5987 = vmatprep.subr.bf16.mxu1 %v5986_v32  ;;  %v173_v47 = vld [vmem:[#allocation4 + $0x1f0] sm:$0xff]  ;;  %v568_v49 = vld [vmem:[#allocation4 + $0x228] sm:$0xff]  ;;  %v5976_v50 = vpack.c.bf16 %v171_v44, %v167_v43  ;;  %v563_v53 = vld [vmem:[#allocation4 + $0x200] sm:$0xff] }
  0x57   :  { %v5992_v51 = vpack.c.bf16 %v173_v47, %v169_v46  ;;  %v5994_v52 = vpack.c.bf16 %v568_v49, %v564_v48  ;;  %v567_v54 = vld [vmem:[#allocation4 + $0x220] sm:$0xff]  ;;  %v572_v55 = vld [vmem:[#allocation4 + $0x248] sm:$0xff]  ;;  %v566_v0 = vld [vmem:[#allocation4 + $0x218] sm:$0xff] }
  0x58   :  { %5973 = vmatpush1.bf16.msra.mxu0 %v5972_v36  ;;  %v576_v56 = vld [vmem:[#allocation4 + $0x268] sm:$0xff]  ;;  %v126_v57 = vld [vmem:[%s8922_s0 + $0x1] sm:$0xff]  ;;  %v5996_v58 = vpack.c.bf16 %v567_v54, %v563_v53  ;;  %v570_v4 = vld [vmem:[#allocation4 + $0x238] sm:$0xff] }
  0x59   :  { %5989 = vmatpush1.bf16.msra.mxu1 %v5988_v40  ;;  %5975 = vmatprep.subr.bf16.mxu0 %v5974_v41  ;;  %v5998_v59 = vpack.c.bf16 %v576_v56, %v572_v55  ;;  %v571_v60 = vld [vmem:[#allocation4 + $0x240] sm:$0xff]  ;;  %v580_v62 = vld [vmem:[#allocation4 + $0x288] sm:$0xff]  ;;  %v6010_v7 = vpack.c.bf16 %v570_v4, %v566_v0  ;;  %v565_v8 = vld [vmem:[#allocation4 + $0x210] sm:$0xff] }
  0x5a   :  { %5991 = vmatprep.subr.bf16.mxu1 %v5990_v45  ;;  %v575_v61 = vld [vmem:[#allocation4 + $0x260] sm:$0xff]  ;;  %v584_v63 = vld [vmem:[#allocation4 + $0x2a8] sm:$0xff]  ;;  %v569_v9 = vld [vmem:[#allocation4 + $0x230] sm:$0xff] }
  0x5b   :  { %v127_v2 = vld [vmem:[%s8922_s0 + $0x9] sm:$0xff]  ;;  %v579_v3 = vld [vmem:[#allocation4 + $0x280] sm:$0xff]  ;;  %v6000_v5 = vpack.c.bf16 %v575_v61, %v571_v60  ;;  %v6002_v10 = vpack.c.bf16 %v584_v63, %v580_v62  ;;  %v6012_v12 = vpack.c.bf16 %v569_v9, %v565_v8  ;;  %v574_v13 = vld [vmem:[#allocation4 + $0x258] sm:$0xff] }
  0x5c   :  { %5977 = vmatpush1.bf16.msra.mxu0 %v5976_v50  ;;  %v583_v6 = vld [vmem:[#allocation4 + $0x2a0] sm:$0xff]  ;;  %v588_v11 = vld [vmem:[#allocation4 + $0x2c8] sm:$0xff]  ;;  %v578_v14 = vld [vmem:[#allocation4 + $0x278] sm:$0xff] }
  0x5d   :  { %5993 = vmatpush1.bf16.msra.mxu1 %v5992_v51  ;;  %5995 = vmatprep.subr.bf16.mxu0 %v5994_v52  ;;  %v592_v15 = vld [vmem:[#allocation4 + $0x2e8] sm:$0xff]  ;;  %v6014_v16 = vpack.c.bf16 %v578_v14, %v574_v13  ;;  %v573_v17 = vld [vmem:[#allocation4 + $0x250] sm:$0xff]  ;;  %v128_v19 = vld [vmem:[%s8922_s0 + $0x19] sm:$0xff]  ;;  %v6004_v22 = vpack.c.bf16 %v583_v6, %v579_v3 }
  0x5e   :  { %6011 = vmatprep.subr.bf16.mxu1 %v6010_v7  ;;  %v577_v18 = vld [vmem:[#allocation4 + $0x270] sm:$0xff]  ;;  %v582_v20 = vld [vmem:[#allocation4 + $0x298] sm:$0xff]  ;;  %v6006_v23 = vpack.c.bf16 %v592_v15, %v588_v11  ;;  %v587_v24 = vld [vmem:[#allocation4 + $0x2c0] sm:$0xff] }
  0x5f   :  { %5865 = vmatmul.mubr.msk.f32.vlgmr.msra.gmra.mrb[0].mxu0 %vm175_vm0, %v126_v57  ;;  %v586_v21 = vld [vmem:[#allocation4 + $0x2b8] sm:$0xff]  ;;  %v591_v25 = vld [vmem:[#allocation4 + $0x2e0] sm:$0xff]  ;;  %v6016_v26 = vpack.c.bf16 %v577_v18, %v573_v17  ;;  %v581_v27 = vld [vmem:[#allocation4 + $0x290] sm:$0xff] }
  0x60   :  { %5881 = vmatmul.mubr.msk.f32.vlgmr.msra.gmra.mrb[0].mxu1 %vm175_vm0, %v126_v57  ;;  %5997 = vmatpush1.bf16.msra.mxu0 %v5996_v58  ;;  %v6018_v28 = vpack.c.bf16 %v586_v21, %v582_v20  ;;  %v585_v29 = vld [vmem:[#allocation4 + $0x2b0] sm:$0xff]  ;;  %v95_v30 = vld [vmem:[#allocation4 + $0x8] sm:$0xff]  ;;  %v129_v32 = vld [vmem:[%s8922_s0 + $0x21] sm:$0xff]  ;;  %v6008_v35 = vpack.c.bf16 %v591_v25, %v587_v24 }
  0x61   :  { %294 = vmatprep.mubr.f32.mxu0 %v7442_v1  ;;  %455 = vmatprep.mubr.f32.mxu1 %v7442_v1  ;;  %v99_v31 = vld [vmem:[#allocation4 + $0x28] sm:$0xff]  ;;  %v590_v33 = vld [vmem:[#allocation4 + $0x2d8] sm:$0xff]  ;;  %v6020_v36 = vpack.c.bf16 %v585_v29, %v581_v27  ;;  %v589_v39 = vld [vmem:[#allocation4 + $0x2d0] sm:$0xff] }
  0x62   :  { %5999 = vmatprep.subr.bf16.mxu0 %v5998_v59  ;;  %6013 = vmatpush1.bf16.msra.mxu1 %v6012_v12  ;;  %v594_v34 = vld [vmem:[#allocation4 + $0x2f8] sm:$0xff]  ;;  %v6026_v37 = vpack.c.bf16 %v99_v31, %v95_v30  ;;  %v593_v40 = vld [vmem:[#allocation4 + $0x2f0] sm:$0xff]  ;;  %v132_v47 = vld [vmem:[%s8922_s0 + $0x49] sm:$0xff] }
  0x63   :  { %5866 = vmatmul.mubr.msk.f32.gmra.mrb[2].mxu0 %vm175_vm0, %v127_v2  ;;  %6015 = vmatprep.subr.bf16.mxu1 %v6014_v16  ;;  %v6022_v38 = vpack.c.bf16 %v594_v34, %v590_v33  ;;  %v130_v41 = vld [vmem:[%s8922_s0 + $0x31] sm:$0xff]  ;;  %v6024_v42 = vpack.c.bf16 %v593_v40, %v589_v39  ;;  %v97_v43 = vld [vmem:[#allocation4 + $0x18] sm:$0xff]  ;;  %v134_v49 = vld [vmem:[%s8922_s0 + $0x61] sm:$0xff] }
  0x64   :  { %5882 = vmatmul.mubr.msk.f32.gmra.mrb[2].mxu1 %vm175_vm0, %v127_v2  ;;  %300 = vmatprep.mubr.f32.mxu0 %v7442_v1  ;;  %v131_v44 = vld [vmem:[%s8922_s0 + $0x39] sm:$0xff]  ;;  %v133_v48 = vld [vmem:[%s8922_s0 + $0x51] sm:$0xff]  ;;  %v135_v50 = vld [vmem:[%s8922_s0 + $0x69] sm:$0xff] }
  0x65   :  { %461 = vmatprep.mubr.f32.mxu1 %v7442_v1  ;;  %6001 = vmatpush1.bf16.msra.mxu0 %v6000_v5  ;;  %v101_v45 = vld [vmem:[#allocation4 + $0x38] sm:$0xff]  ;;  %v137_v52 = vld [vmem:[%s8922_s0 + $0x81] sm:$0xff]  ;;  %v138_v53 = vld [vmem:[%s8922_s0 + $0x91] sm:$0xff] }
  0x66   :  { %6003 = vmatprep.subr.bf16.mxu0 %v6002_v10  ;;  %6017 = vmatpush1.bf16.msra.mxu1 %v6016_v26  ;;  %v6042_v46 = vpack.c.bf16 %v101_v45, %v97_v43  ;;  %v136_v51 = vld [vmem:[%s8922_s0 + $0x79] sm:$0xff]  ;;  %v140_v55 = vld [vmem:[%s8922_s0 + $0xa9] sm:$0xff]  ;;  %v141_v56 = vld [vmem:[%s8922_s0 + $0xb1] sm:$0xff] }
  0x67   :  { %5867 = vmatmul.mubr.msk.f32.gmra.mrb[4].mxu0 %vm175_vm0, %v128_v19  ;;  %6019 = vmatprep.subr.bf16.mxu1 %v6018_v28  ;;  %v139_v54 = vld [vmem:[%s8922_s0 + $0x99] sm:$0xff]  ;;  %v94_v57 = vld [vmem:[#allocation4] sm:$0xff]  ;;  %v103_v59 = vld [vmem:[#allocation4 + $0x48] sm:$0xff] }
  0x68   :  { %5883 = vmatmul.mubr.msk.f32.gmra.mrb[4].mxu1 %vm175_vm0, %v128_v19  ;;  %306 = vmatprep.mubr.f32.mxu0 %v7442_v1  ;;  %v98_v58 = vld [vmem:[#allocation4 + $0x20] sm:$0xff]  ;;  %v107_v60 = vld [vmem:[#allocation4 + $0x68] sm:$0xff]  ;;  %v96_v61 = vld [vmem:[#allocation4 + $0x10] sm:$0xff] }
  0x69   :  { %467 = vmatprep.mubr.f32.mxu1 %v7442_v1  ;;  %6005 = vmatpush1.bf16.msra.mxu0 %v6004_v22  ;;  %v100_v62 = vld [vmem:[#allocation4 + $0x30] sm:$0xff]  ;;  %v546_v63 = vld [vmem:[%s8922_s0 + $0x2] sm:$0xff]  ;;  %v6028_v0 = vpack.c.bf16 %v98_v58, %v94_v57  ;;  %v105_v2 = vld [vmem:[#allocation4 + $0x58] sm:$0xff]  ;;  %v6030_v4 = vpack.c.bf16 %v107_v60, %v103_v59 }
  0x6a   :  { %6007 = vmatprep.subr.bf16.mxu0 %v6006_v23  ;;  %6021 = vmatpush1.bf16.msra.mxu1 %v6020_v36  ;;  %v109_v3 = vld [vmem:[#allocation4 + $0x78] sm:$0xff]  ;;  %v102_v5 = vld [vmem:[#allocation4 + $0x40] sm:$0xff]  ;;  %v111_v7 = vld [vmem:[#allocation4 + $0x88] sm:$0xff]  ;;  %v6044_v8 = vpack.c.bf16 %v100_v62, %v96_v61 }
  0x6b   :  { %5868 = vmatmul.mubr.msk.f32.gmra.mrb[6].mxu0 %vm175_vm0, %v129_v32  ;;  %6023 = vmatprep.subr.bf16.mxu1 %v6022_v38  ;;  %v106_v6 = vld [vmem:[#allocation4 + $0x60] sm:$0xff]  ;;  %v115_v9 = vld [vmem:[#allocation4 + $0xa8] sm:$0xff]  ;;  %v6046_v10 = vpack.c.bf16 %v109_v3, %v105_v2  ;;  %v104_v11 = vld [vmem:[#allocation4 + $0x50] sm:$0xff] }
  0x6c   :  { %5884 = vmatmul.mubr.msk.f32.gmra.mrb[6].mxu1 %vm175_vm0, %v129_v32  ;;  %312 = vmatprep.mubr.f32.mxu0 %v7442_v1  ;;  %v108_v12 = vld [vmem:[#allocation4 + $0x70] sm:$0xff]  ;;  %v113_v14 = vld [vmem:[#allocation4 + $0x98] sm:$0xff]  ;;  %v6032_v16 = vpack.c.bf16 %v106_v6, %v102_v5  ;;  %v6034_v17 = vpack.c.bf16 %v115_v9, %v111_v7  ;;  %v110_v18 = vld [vmem:[#allocation4 + $0x80] sm:$0xff] }
  0x6d   :  { %473 = vmatprep.mubr.f32.mxu1 %v7442_v1  ;;  %6009 = vmatpush1.bf16.msra.mxu0 %v6008_v35  ;;  %v547_v13 = vld [vmem:[%s8922_s0 + $0xa] sm:$0xff]  ;;  %v117_v15 = vld [vmem:[#allocation4 + $0xb8] sm:$0xff]  ;;  %v114_v19 = vld [vmem:[#allocation4 + $0xa0] sm:$0xff]  ;;  %v6048_v21 = vpack.c.bf16 %v108_v12, %v104_v11 }
  0x6e   :  { %6027 = vmatprep.subr.bf16.mxu0 %v6026_v37  ;;  %6025 = vmatpush1.bf16.msra.mxu1 %v6024_v42  ;;  %v119_v20 = vld [vmem:[#allocation4 + $0xc8] sm:$0xff]  ;;  %v6050_v23 = vpack.c.bf16 %v117_v15, %v113_v14  ;;  %v112_v24 = vld [vmem:[#allocation4 + $0x90] sm:$0xff]  ;;  %v548_v26 = vld [vmem:[%s8922_s0 + $0x1a] sm:$0xff]  ;;  %v6036_v29 = vpack.c.bf16 %v114_v19, %v110_v18 }
  0x6f   :  { %5869 = vmatmul.mubr.msk.f32.gmra.mrb[8].mxu0 %vm175_vm0, %v130_v41  ;;  %6043 = vmatprep.subr.bf16.mxu1 %v6042_v46  ;;  %v123_v22 = vld [vmem:[#allocation4 + $0xe8] sm:$0xff]  ;;  %v116_v25 = vld [vmem:[#allocation4 + $0xb0] sm:$0xff]  ;;  %v121_v27 = vld [vmem:[#allocation4 + $0xd8] sm:$0xff] }
  0x70   :  { %5885 = vmatmul.mubr.msk.f32.gmra.mrb[8].mxu1 %vm175_vm0, %v130_v41  ;;  %318 = vmatprep.mubr.f32.mxu0 %v7442_v1  ;;  %v125_v28 = vld [vmem:[#allocation4 + $0xf8] sm:$0xff]  ;;  %v6038_v30 = vpack.c.bf16 %v123_v22, %v119_v20  ;;  %v118_v31 = vld [vmem:[#allocation4 + $0xc0] sm:$0xff]  ;;  %v6052_v33 = vpack.c.bf16 %v116_v25, %v112_v24  ;;  %v120_v34 = vld [vmem:[#allocation4 + $0xd0] sm:$0xff] }
  0x71   :  { %479 = vmatprep.mubr.f32.mxu1 %v7442_v1  ;;  %v122_v32 = vld [vmem:[#allocation4 + $0xe0] sm:$0xff]  ;;  %v6054_v35 = vpack.c.bf16 %v125_v28, %v121_v27  ;;  %v124_v36 = vld [vmem:[#allocation4 + $0xf0] sm:$0xff]  ;;  %v2574_v37 = vld [vmem:[#allocation6 + $0x808] sm:$0xff] }
  0x72   :  { %v2578_v38 = vld [vmem:[#allocation6 + $0x828] sm:$0xff]  ;;  %v2576_v40 = vld [vmem:[#allocation6 + $0x818] sm:$0xff]  ;;  %v6040_v42 = vpack.c.bf16 %v122_v32, %v118_v31  ;;  %v6056_v43 = vpack.c.bf16 %v124_v36, %v120_v34  ;;  %v2573_v58 = vld [vmem:[#allocation6 + $0x800] sm:$0xff] }
  0x73   :  { %5870 = vmatmul.mubr.msk.f32.gmra.mrb[10].mxu0 %vm175_vm0, %v131_v44  ;;  %v549_v39 = vld [vmem:[%s8922_s0 + $0x22] sm:$0xff]  ;;  %v2580_v41 = vld [vmem:[#allocation6 + $0x838] sm:$0xff]  ;;  %v2575_v60 = vld [vmem:[#allocation6 + $0x810] sm:$0xff] }
  0x74   :  { %5886 = vmatmul.mubr.msk.f32.gmra.mrb[10].mxu1 %vm175_vm0, %v131_v44  ;;  %324 = vmatprep.mubr.f32.mxu0 %v7442_v1  ;;  %v6058_v44 = vpack.c.bf16 %v2578_v38, %v2574_v37  ;;  %v6186_v45 = vpack.c.bf16 %v2580_v41, %v2576_v40  ;;  %v550_v46 = vld [vmem:[%s8922_s0 + $0x32] sm:$0xff]  ;;  %v2577_v59 = vld [vmem:[#allocation6 + $0x820] sm:$0xff]  ;;  %v2582_v62 = vld [vmem:[#allocation6 + $0x848] sm:$0xff] }
  0x75   :  { %485 = vmatprep.mubr.f32.mxu1 %v7442_v1  ;;  %v561_v57 = vld [vmem:[%s8922_s0 + $0xb2] sm:$0xff]  ;;  %v2581_v7 = vld [vmem:[#allocation6 + $0x840] sm:$0xff]  ;;  %v2590_v12 = vld [vmem:[#allocation6 + $0x888] sm:$0xff] }
  0x76   :  { %v2579_v61 = vld [vmem:[#allocation6 + $0x830] sm:$0xff]  ;;  %v2584_v2 = vld [vmem:[#allocation6 + $0x858] sm:$0xff]  ;;  %v79_v14 = vld [vmem:[%s8922_s0 + $0x8] sm:$0xff] }
  0x77   :  { %5871 = vmatmul.mubr.msk.f32.gmra.mrb[12].mxu0 %vm175_vm0, %v132_v47  ;;  %v2588_v3 = vld [vmem:[#allocation6 + $0x878] sm:$0xff]  ;;  %v6188_v5 = vpack.c.bf16 %v2579_v61, %v2575_v60  ;;  %v2583_v9 = vld [vmem:[#allocation6 + $0x850] sm:$0xff]  ;;  %v2589_v20 = vld [vmem:[#allocation6 + $0x880] sm:$0xff] }
  0x78   :  { %5887 = vmatmul.mubr.msk.f32.gmra.mrb[12].mxu1 %vm175_vm0, %v132_v47  ;;  %330 = vmatprep.mubr.f32.mxu0 %v7442_v1  ;;  %v551_v47 = vld [vmem:[%s8922_s0 + $0x3a] sm:$0xff]  ;;  %v2587_v11 = vld [vmem:[#allocation6 + $0x870] sm:$0xff]  ;;  %v2598_v25 = vld [vmem:[#allocation6 + $0x8c8] sm:$0xff] }
  0x79   :  { %491 = vmatprep.mubr.f32.mxu1 %v7442_v1  ;;  %v2592_v15 = vld [vmem:[#allocation6 + $0x898] sm:$0xff]  ;;  %v6192_v18 = vpack.c.bf16 %v2587_v11, %v2583_v9  ;;  %v2591_v22 = vld [vmem:[#allocation6 + $0x890] sm:$0xff]  ;;  %v2601_v34 = vld [vmem:[#allocation6 + $0x8e0] sm:$0xff] }
  0x7a   :  { %v2595_v24 = vld [vmem:[#allocation6 + $0x8b0] sm:$0xff]  ;;  %v2600_v28 = vld [vmem:[#allocation6 + $0x8d8] sm:$0xff]  ;;  %v2606_v38 = vld [vmem:[#allocation6 + $0x908] sm:$0xff] }
  0x7b   :  { %5872 = vmatmul.mubr.msk.f32.gmra.mrb[14].mxu0 %vm175_vm0, %v133_v48  ;;  %v80_v27 = vld [vmem:[%s8922_s0 + $0x18] sm:$0xff]  ;;  %v6196_v31 = vpack.c.bf16 %v2595_v24, %v2591_v22  ;;  %v81_v40 = vld [vmem:[%s8922_s0 + $0x20] sm:$0xff] }
  0x7c   :  { %5888 = vmatmul.mubr.msk.f32.gmra.mrb[14].mxu1 %vm175_vm0, %v133_v48  ;;  %336 = vmatprep.mubr.f32.mxu0 %v7442_v1  ;;  %v552_v48 = vld [vmem:[%s8922_s0 + $0x4a] sm:$0xff]  ;;  %v2608_v41 = vld [vmem:[#allocation6 + $0x918] sm:$0xff]  ;;  %v2617_v60 = vld [vmem:[#allocation6 + $0x960] sm:$0xff] }
  0x7d   :  { %497 = vmatprep.mubr.f32.mxu1 %v7442_v1  ;;  %v2603_v37 = vld [vmem:[#allocation6 + $0x8f0] sm:$0xff]  ;;  %v2621_v9 = vld [vmem:[#allocation6 + $0x980] sm:$0xff] }
  0x7e   :  { %v2615_v61 = vld [vmem:[#allocation6 + $0x950] sm:$0xff]  ;;  %v2629_v22 = vld [vmem:[#allocation6 + $0x9c0] sm:$0xff] }
  0x7f   :  { %5873 = vmatmul.mubr.msk.f32.gmra.mrb[16].mxu0 %vm175_vm0, %v134_v49  ;;  %v2623_v11 = vld [vmem:[#allocation6 + $0x990] sm:$0xff] }
  0x80   :  { %5889 = vmatmul.mubr.msk.f32.gmra.mrb[16].mxu1 %vm175_vm0, %v134_v49  ;;  %342 = vmatprep.mubr.f32.mxu0 %v7442_v1  ;;  %v553_v49 = vld [vmem:[%s8922_s0 + $0x52] sm:$0xff] }
  0x81   :  { %503 = vmatprep.mubr.f32.mxu1 %v7442_v1  ;;  %v2631_v24 = vld [vmem:[#allocation6 + $0x9d0] sm:$0xff] }
  0x83   :  { %5874 = vmatmul.mubr.msk.f32.gmra.mrb[18].mxu0 %vm175_vm0, %v135_v50 }
  0x84   :  { %5890 = vmatmul.mubr.msk.f32.gmra.mrb[18].mxu1 %vm175_vm0, %v135_v50  ;;  %348 = vmatprep.mubr.f32.mxu0 %v7442_v1  ;;  %v554_v50 = vld [vmem:[%s8922_s0 + $0x62] sm:$0xff] }
  0x85   :  { %509 = vmatprep.mubr.f32.mxu1 %v7442_v1 }
  0x87   :  { %5875 = vmatmul.mubr.msk.f32.gmra.mrb[20].mxu0 %vm175_vm0, %v136_v51 }
  0x88   :  { %5891 = vmatmul.mubr.msk.f32.gmra.mrb[20].mxu1 %vm175_vm0, %v136_v51  ;;  %354 = vmatprep.mubr.f32.mxu0 %v7442_v1  ;;  %v555_v51 = vld [vmem:[%s8922_s0 + $0x6a] sm:$0xff] }
  0x89   :  { %515 = vmatprep.mubr.f32.mxu1 %v7442_v1 }
  0x8b   :  { %5876 = vmatmul.mubr.msk.f32.gmra.mrb[22].mxu0 %vm175_vm0, %v137_v52 }
  0x8c   :  { %5892 = vmatmul.mubr.msk.f32.gmra.mrb[22].mxu1 %vm175_vm0, %v137_v52  ;;  %360 = vmatprep.mubr.f32.mxu0 %v7442_v1  ;;  %v556_v52 = vld [vmem:[%s8922_s0 + $0x7a] sm:$0xff] }
  0x8d   :  { %521 = vmatprep.mubr.f32.mxu1 %v7442_v1 }
  0x8f   :  { %5877 = vmatmul.mubr.msk.f32.gmra.mrb[24].mxu0 %vm175_vm0, %v138_v53 }
  0x90   :  { %5893 = vmatmul.mubr.msk.f32.gmra.mrb[24].mxu1 %vm175_vm0, %v138_v53  ;;  %366 = vmatprep.mubr.f32.mxu0 %v7442_v1  ;;  %v557_v53 = vld [vmem:[%s8922_s0 + $0x82] sm:$0xff] }
  0x91   :  { %527 = vmatprep.mubr.f32.mxu1 %v7442_v1 }
  0x93   :  { %5878 = vmatmul.mubr.msk.f32.gmra.mrb[26].mxu0 %vm175_vm0, %v139_v54 }
  0x94   :  { %5894 = vmatmul.mubr.msk.f32.gmra.mrb[26].mxu1 %vm175_vm0, %v139_v54  ;;  %372 = vmatprep.mubr.f32.mxu0 %v7442_v1  ;;  %v558_v54 = vld [vmem:[%s8922_s0 + $0x92] sm:$0xff] }
  0x95   :  { %533 = vmatprep.mubr.f32.mxu1 %v7442_v1 }
  0x97   :  { %5879 = vmatmul.mubr.msk.f32.gmra.mrb[28].mxu0 %vm175_vm0, %v140_v55 }
  0x98   :  { %5895 = vmatmul.mubr.msk.f32.gmra.mrb[28].mxu1 %vm175_vm0, %v140_v55  ;;  %378 = vmatprep.mubr.f32.mxu0 %v7442_v1  ;;  %v559_v55 = vld [vmem:[%s8922_s0 + $0x9a] sm:$0xff] }
  0x99   :  { %539 = vmatprep.mubr.f32.mxu1 %v7442_v1 }
  0x9b   :  { %5880 = vmatmul.mubr.msk.f32.gmra.mrb[30].mxu0 %vm175_vm0, %v141_v56 }
  0x9c   :  { %5896 = vmatmul.mubr.msk.f32.gmra.mrb[30].mxu1 %vm175_vm0, %v141_v56  ;;  %707 = vmatprep.mubr.f32.mxu0 %v7442_v1  ;;  %v560_v56 = vld [vmem:[%s8922_s0 + $0xaa] sm:$0xff] }
  0x9d   :  { %868 = vmatprep.mubr.f32.mxu1 %v7442_v1 }
  0x9f   :  { %5897 = vmatmul.mubr.msk.f32.vlgmr.msra.gmra.mrb[0].mxu0 %vm175_vm0, %v546_v63 }
  0xa0   :  { %5913 = vmatmul.mubr.msk.f32.vlgmr.msra.gmra.mrb[0].mxu1 %vm175_vm0, %v546_v63  ;;  %6029 = vmatpush1.bf16.msra.mxu0 %v6028_v0  ;;  %v2586_v63 = vld [vmem:[#allocation6 + $0x868] sm:$0xff]  ;;  %v78_v0 = vld [vmem:[%s8922_s0] sm:$0xff] }
  0xa1   :  { %713 = vmatprep.mubr.f32.mxu0 %v7442_v1  ;;  %874 = vmatprep.mubr.f32.mxu1 %v7442_v1  ;;  %v6062_v6 = vpack.c.bf16 %v2586_v63, %v2582_v62  ;;  %v2619_v63 = vld [vmem:[#allocation6 + $0x970] sm:$0xff] }
  0xa2   :  { %6031 = vmatprep.subr.bf16.mxu0 %v6030_v4  ;;  %6045 = vmatpush1.bf16.msra.mxu1 %v6044_v8  ;;  %v6060_v4 = vpack.c.bf16 %v2577_v59, %v2573_v58  ;;  %v2585_v8 = vld [vmem:[#allocation6 + $0x860] sm:$0xff] }
  0xa3   :  { %5898 = vmatmul.mubr.msk.f32.gmra.mrb[2].mxu0 %vm175_vm0, %v547_v13  ;;  %6047 = vmatprep.subr.bf16.mxu1 %v6046_v10  ;;  %v6190_v10 = vpack.c.bf16 %v2588_v3, %v2584_v2  ;;  %v2613_v59 = vld [vmem:[#allocation6 + $0x940] sm:$0xff]  ;;  %v2626_v2 = vld [vmem:[#allocation6 + $0x9a8] sm:$0xff]  ;;  %v83_v3 = vld [vmem:[%s8922_s0 + $0x38] sm:$0xff] }
  0xa4   :  { %5914 = vmatmul.mubr.msk.f32.gmra.mrb[2].mxu1 %vm175_vm0, %v547_v13  ;;  %719 = vmatprep.mubr.f32.mxu0 %v7442_v1  ;;  %v2594_v13 = vld [vmem:[#allocation6 + $0x8a8] sm:$0xff] }
  0xa5   :  { %880 = vmatprep.mubr.f32.mxu1 %v7442_v1  ;;  %6033 = vmatpush1.bf16.msra.mxu0 %v6032_v16  ;;  %v2596_v16 = vld [vmem:[#allocation6 + $0x8b8] sm:$0xff]  ;;  %v6066_v19 = vpack.c.bf16 %v2594_v13, %v2590_v12  ;;  %v2627_v13 = vld [vmem:[#allocation6 + $0x9b0] sm:$0xff] }
  0xa6   :  { %6035 = vmatprep.subr.bf16.mxu0 %v6034_v17  ;;  %6049 = vmatpush1.bf16.msra.mxu1 %v6048_v21  ;;  %v6064_v17 = vpack.c.bf16 %v2585_v8, %v2581_v7  ;;  %v2593_v21 = vld [vmem:[#allocation6 + $0x8a0] sm:$0xff]  ;;  %v6208_v7 = vpack.c.bf16 %v2619_v63, %v2615_v61 }
  0xa7   :  { %5899 = vmatmul.mubr.msk.f32.gmra.mrb[4].mxu0 %vm175_vm0, %v548_v26  ;;  %6051 = vmatprep.subr.bf16.mxu1 %v6050_v23  ;;  %v6194_v23 = vpack.c.bf16 %v2596_v16, %v2592_v15  ;;  %v2634_v15 = vld [vmem:[#allocation6 + $0x9e8] sm:$0xff]  ;;  %v89_v63 = vld [vmem:[%s8922_s0 + $0x80] sm:$0xff] }
  0xa8   :  { %5915 = vmatmul.mubr.msk.f32.gmra.mrb[4].mxu1 %vm175_vm0, %v548_v26  ;;  %725 = vmatprep.mubr.f32.mxu0 %v7442_v1  ;;  %v2602_v26 = vld [vmem:[#allocation6 + $0x8e8] sm:$0xff] }
  0xa9   :  { %886 = vmatprep.mubr.f32.mxu1 %v7442_v1  ;;  %6037 = vmatpush1.bf16.msra.mxu0 %v6036_v29  ;;  %v2604_v29 = vld [vmem:[#allocation6 + $0x8f8] sm:$0xff]  ;;  %v6070_v32 = vpack.c.bf16 %v2602_v26, %v2598_v25  ;;  %v84_v16 = vld [vmem:[%s8922_s0 + $0x48] sm:$0xff]  ;;  %v2635_v26 = vld [vmem:[#allocation6 + $0x9f0] sm:$0xff] }
  0xaa   :  { %6039 = vmatprep.subr.bf16.mxu0 %v6038_v30  ;;  %6053 = vmatpush1.bf16.msra.mxu1 %v6052_v33  ;;  %v6068_v30 = vpack.c.bf16 %v2593_v21, %v2589_v20  ;;  %v2597_v33 = vld [vmem:[#allocation6 + $0x8c0] sm:$0xff]  ;;  %v6198_v36 = vpack.c.bf16 %v2604_v29, %v2600_v28  ;;  %v6212_v20 = vpack.c.bf16 %v2627_v13, %v2623_v11  ;;  %v2642_v28 = vld [vmem:[#allocation6 + $0xa28] sm:$0xff]  ;;  %v2664_v13 = vld [vmem:[#allocation6 + $0xad8] sm:$0xff] }
  0xab   :  { %5900 = vmatmul.mubr.msk.f32.gmra.mrb[6].mxu0 %vm175_vm0, %v549_v39  ;;  %6055 = vmatprep.subr.bf16.mxu1 %v6054_v35  ;;  %v2599_v35 = vld [vmem:[#allocation6 + $0x8d0] sm:$0xff]  ;;  %v2662_v11 = vld [vmem:[#allocation6 + $0xac8] sm:$0xff] }
  0xac   :  { %5916 = vmatmul.mubr.msk.f32.gmra.mrb[6].mxu1 %vm175_vm0, %v549_v39  ;;  %731 = vmatprep.mubr.f32.mxu0 %v7442_v1  ;;  %v2610_v39 = vld [vmem:[#allocation6 + $0x928] sm:$0xff] }
  0xad   :  { %892 = vmatprep.mubr.f32.mxu1 %v7442_v1  ;;  %6041 = vmatpush1.bf16.msra.mxu0 %v6040_v42  ;;  %v2612_v42 = vld [vmem:[#allocation6 + $0x938] sm:$0xff]  ;;  %v85_v29 = vld [vmem:[%s8922_s0 + $0x50] sm:$0xff] }
  0xae   :  { %6057 = vmatpush1.bf16.msra.mxu1 %v6056_v43  ;;  %6059 = vmatprep.subr.bf16.mxu0 %v6058_v44  ;;  %v6072_v43 = vpack.c.bf16 %v2601_v34, %v2597_v33  ;;  %v6200_v44 = vpack.c.bf16 %v2603_v37, %v2599_v35  ;;  %v6216_v33 = vpack.c.bf16 %v2635_v26, %v2631_v24  ;;  %v2637_v35 = vld [vmem:[#allocation6 + $0xa00] sm:$0xff]  ;;  %v2639_v37 = vld [vmem:[#allocation6 + $0xa10] sm:$0xff]  ;;  %v2674_v24 = vld [vmem:[#allocation6 + $0xb28] sm:$0xff] }
  0xaf   :  { %5901 = vmatmul.mubr.msk.f32.gmra.mrb[8].mxu0 %vm175_vm0, %v550_v46  ;;  %6187 = vmatprep.subr.bf16.mxu1 %v6186_v45  ;;  %v6074_v45 = vpack.c.bf16 %v2610_v39, %v2606_v38  ;;  %v2643_v39 = vld [vmem:[#allocation6 + $0xa30] sm:$0xff] }
  0xb0   :  { %5917 = vmatmul.mubr.msk.f32.gmra.mrb[8].mxu1 %vm175_vm0, %v550_v46  ;;  %737 = vmatprep.mubr.f32.mxu0 %v7442_v1  ;;  %v2605_v46 = vld [vmem:[#allocation6 + $0x900] sm:$0xff] }
  0xb1   :  { %898 = vmatprep.mubr.f32.mxu1 %v7442_v1 }
  0xb3   :  { %5902 = vmatmul.mubr.msk.f32.gmra.mrb[10].mxu0 %vm175_vm0, %v551_v47 }
  0xb4   :  { %5918 = vmatmul.mubr.msk.f32.gmra.mrb[10].mxu1 %vm175_vm0, %v551_v47  ;;  %743 = vmatprep.mubr.f32.mxu0 %v7442_v1  ;;  %v2609_v47 = vld [vmem:[#allocation6 + $0x920] sm:$0xff] }
  0xb5   :  { %904 = vmatprep.mubr.f32.mxu1 %v7442_v1 }
  0xb7   :  { %5903 = vmatmul.mubr.msk.f32.gmra.mrb[12].mxu0 %vm175_vm0, %v552_v48 }
  0xb8   :  { %5919 = vmatmul.mubr.msk.f32.gmra.mrb[12].mxu1 %vm175_vm0, %v552_v48  ;;  %749 = vmatprep.mubr.f32.mxu0 %v7442_v1  ;;  %v2607_v48 = vld [vmem:[#allocation6 + $0x910] sm:$0xff] }
  0xb9   :  { %910 = vmatprep.mubr.f32.mxu1 %v7442_v1 }
  0xbb   :  { %5904 = vmatmul.mubr.msk.f32.gmra.mrb[14].mxu0 %vm175_vm0, %v553_v49 }
  0xbc   :  { %5920 = vmatmul.mubr.msk.f32.gmra.mrb[14].mxu1 %vm175_vm0, %v553_v49  ;;  %755 = vmatprep.mubr.f32.mxu0 %v7442_v1  ;;  %v6202_v49 = vpack.c.bf16 %v2612_v42, %v2608_v41  ;;  %v2650_v41 = vld [vmem:[#allocation6 + $0xa68] sm:$0xff]  ;;  %v86_v42 = vld [vmem:[%s8922_s0 + $0x60] sm:$0xff] }
  0xbd   :  { %916 = vmatprep.mubr.f32.mxu1 %v7442_v1 }
  0xbf   :  { %5905 = vmatmul.mubr.msk.f32.gmra.mrb[16].mxu0 %vm175_vm0, %v554_v50 }
  0xc0   :  { %5921 = vmatmul.mubr.msk.f32.gmra.mrb[16].mxu1 %vm175_vm0, %v554_v50  ;;  %761 = vmatprep.mubr.f32.mxu0 %v7442_v1  ;;  %v2611_v50 = vld [vmem:[#allocation6 + $0x930] sm:$0xff] }
  0xc1   :  { %922 = vmatprep.mubr.f32.mxu1 %v7442_v1 }
  0xc3   :  { %5906 = vmatmul.mubr.msk.f32.gmra.mrb[18].mxu0 %vm175_vm0, %v555_v51 }
  0xc4   :  { %5922 = vmatmul.mubr.msk.f32.gmra.mrb[18].mxu1 %vm175_vm0, %v555_v51  ;;  %767 = vmatprep.mubr.f32.mxu0 %v7442_v1  ;;  %v2614_v51 = vld [vmem:[#allocation6 + $0x948] sm:$0xff] }
  0xc5   :  { %928 = vmatprep.mubr.f32.mxu1 %v7442_v1 }
  0xc7   :  { %5907 = vmatmul.mubr.msk.f32.gmra.mrb[20].mxu0 %vm175_vm0, %v556_v52 }
  0xc8   :  { %5923 = vmatmul.mubr.msk.f32.gmra.mrb[20].mxu1 %vm175_vm0, %v556_v52  ;;  %773 = vmatprep.mubr.f32.mxu0 %v7442_v1  ;;  %v2618_v52 = vld [vmem:[#allocation6 + $0x968] sm:$0xff] }
  0xc9   :  { %934 = vmatprep.mubr.f32.mxu1 %v7442_v1  ;;  %v6078_v58 = vpack.c.bf16 %v2618_v52, %v2614_v51  ;;  %v2651_v52 = vld [vmem:[#allocation6 + $0xa70] sm:$0xff] }
  0xcb   :  { %5908 = vmatmul.mubr.msk.f32.gmra.mrb[22].mxu0 %vm175_vm0, %v557_v53 }
  0xcc   :  { %5924 = vmatmul.mubr.msk.f32.gmra.mrb[22].mxu1 %vm175_vm0, %v557_v53  ;;  %779 = vmatprep.mubr.f32.mxu0 %v7442_v1  ;;  %v82_v53 = vld [vmem:[%s8922_s0 + $0x30] sm:$0xff] }
  0xcd   :  { %940 = vmatprep.mubr.f32.mxu1 %v7442_v1 }
  0xcf   :  { %5909 = vmatmul.mubr.msk.f32.gmra.mrb[24].mxu0 %vm175_vm0, %v558_v54 }
  0xd0   :  { %5925 = vmatmul.mubr.msk.f32.gmra.mrb[24].mxu1 %vm175_vm0, %v558_v54  ;;  %785 = vmatprep.mubr.f32.mxu0 %v7442_v1  ;;  %v2616_v54 = vld [vmem:[#allocation6 + $0x958] sm:$0xff] }
  0xd1   :  { %946 = vmatprep.mubr.f32.mxu1 %v7442_v1 }
  0xd3   :  { %5910 = vmatmul.mubr.msk.f32.gmra.mrb[26].mxu0 %vm175_vm0, %v559_v55 }
  0xd4   :  { %5926 = vmatmul.mubr.msk.f32.gmra.mrb[26].mxu1 %vm175_vm0, %v559_v55  ;;  %791 = vmatprep.mubr.f32.mxu0 %v7442_v1  ;;  %v2620_v55 = vld [vmem:[#allocation6 + $0x978] sm:$0xff] }
  0xd5   :  { %952 = vmatprep.mubr.f32.mxu1 %v7442_v1  ;;  %v6206_v62 = vpack.c.bf16 %v2620_v55, %v2616_v54  ;;  %v2658_v54 = vld [vmem:[#allocation6 + $0xaa8] sm:$0xff] }
  0xd6   :  { %v87_v55 = vld [vmem:[%s8922_s0 + $0x68] sm:$0xff] }
  0xd7   :  { %5911 = vmatmul.mubr.msk.f32.gmra.mrb[28].mxu0 %vm175_vm0, %v560_v56 }
  0xd8   :  { %5927 = vmatmul.mubr.msk.f32.gmra.mrb[28].mxu1 %vm175_vm0, %v560_v56  ;;  %797 = vmatprep.mubr.f32.mxu0 %v7442_v1  ;;  %v6076_v56 = vpack.c.bf16 %v2609_v47, %v2605_v46  ;;  %v6220_v46 = vpack.c.bf16 %v2643_v39, %v2639_v37  ;;  %v2680_v37 = vld [vmem:[#allocation6 + $0xb58] sm:$0xff] }
  0xd9   :  { %958 = vmatprep.mubr.f32.mxu1 %v7442_v1  ;;  %v2684_v39 = vld [vmem:[#allocation6 + $0xb78] sm:$0xff] }
  0xdb   :  { %5912 = vmatmul.mubr.msk.f32.gmra.mrb[30].mxu0 %vm175_vm0, %v561_v57 }
  0xdc   :  { %5928 = vmatmul.mubr.msk.f32.gmra.mrb[30].mxu1 %vm175_vm0, %v561_v57  ;;  %1077 = vmatprep.mubr.f32.mxu0 %v7442_v1  ;;  %v6204_v57 = vpack.c.bf16 %v2611_v50, %v2607_v48  ;;  %v2645_v48 = vld [vmem:[#allocation6 + $0xa40] sm:$0xff]  ;;  %v2647_v50 = vld [vmem:[#allocation6 + $0xa50] sm:$0xff] }
  0xdd   :  { %1238 = vmatprep.mubr.f32.mxu1 %v7442_v1 }
  0xdf   :  { %5929 = vmatmul.mubr.msk.f32.vlgmr.msra.gmra.mrb[0].mxu0 %vm175_vm0, %v78_v0 }
  0xe0   :  { %5945 = vmatmul.mubr.msk.f32.vlgmr.msra.gmra.mrb[0].mxu1 %vm175_vm0, %v78_v0  ;;  %1083 = vmatprep.mubr.f32.mxu0 %v7442_v1  ;;  %v2622_v0 = vld [vmem:[#allocation6 + $0x988] sm:$0xff] }
  0xe1   :  { %1244 = vmatprep.mubr.f32.mxu1 %v7442_v1  ;;  %6061 = vmatpush1.bf16.msra.mxu0 %v6060_v4  ;;  %v2624_v4 = vld [vmem:[#allocation6 + $0x998] sm:$0xff]  ;;  %v6082_v8 = vpack.c.bf16 %v2626_v2, %v2622_v0  ;;  %v90_v0 = vld [vmem:[%s8922_s0 + $0x90] sm:$0xff] }
  0xe2   :  { %6189 = vmatpush1.bf16.msra.mxu1 %v6188_v5  ;;  %6063 = vmatprep.subr.bf16.mxu0 %v6062_v6  ;;  %v2628_v5 = vld [vmem:[#allocation6 + $0x9b8] sm:$0xff]  ;;  %v6080_v6 = vpack.c.bf16 %v2617_v60, %v2613_v59  ;;  %v6224_v59 = vpack.c.bf16 %v2651_v52, %v2647_v50  ;;  %v2685_v52 = vld [vmem:[#allocation6 + $0xb80] sm:$0xff] }
  0xe3   :  { %5930 = vmatmul.mubr.msk.f32.gmra.mrb[2].mxu0 %vm175_vm0, %v79_v14  ;;  %6191 = vmatprep.subr.bf16.mxu1 %v6190_v10  ;;  %v2625_v10 = vld [vmem:[#allocation6 + $0x9a0] sm:$0xff]  ;;  %v6210_v12 = vpack.c.bf16 %v2628_v5, %v2624_v4  ;;  %v91_v2 = vld [vmem:[%s8922_s0 + $0x98] sm:$0xff]  ;;  %v93_v4 = vld [vmem:[%s8922_s0 + $0xb0] sm:$0xff] }
  0xe4   :  { %5946 = vmatmul.mubr.msk.f32.gmra.mrb[2].mxu1 %vm175_vm0, %v79_v14  ;;  %1089 = vmatprep.mubr.f32.mxu0 %v7442_v1  ;;  %v2630_v14 = vld [vmem:[#allocation6 + $0x9c8] sm:$0xff]  ;;  %v2653_v5 = vld [vmem:[#allocation6 + $0xa80] sm:$0xff] }
  0xe5   :  { %1250 = vmatprep.mubr.f32.mxu1 %v7442_v1  ;;  %6065 = vmatpush1.bf16.msra.mxu0 %v6064_v17  ;;  %v2632_v17 = vld [vmem:[#allocation6 + $0x9d8] sm:$0xff]  ;;  %v6086_v21 = vpack.c.bf16 %v2634_v15, %v2630_v14 }
  0xe6   :  { %6193 = vmatpush1.bf16.msra.mxu1 %v6192_v18  ;;  %6067 = vmatprep.subr.bf16.mxu0 %v6066_v19  ;;  %v2636_v18 = vld [vmem:[#allocation6 + $0x9f8] sm:$0xff]  ;;  %v6084_v19 = vpack.c.bf16 %v2625_v10, %v2621_v9  ;;  %v2659_v9 = vld [vmem:[#allocation6 + $0xab0] sm:$0xff] }
  0xe7   :  { %5931 = vmatmul.mubr.msk.f32.gmra.mrb[4].mxu0 %vm175_vm0, %v80_v27  ;;  %6195 = vmatprep.subr.bf16.mxu1 %v6194_v23  ;;  %v2633_v23 = vld [vmem:[#allocation6 + $0x9e0] sm:$0xff]  ;;  %v6214_v25 = vpack.c.bf16 %v2636_v18, %v2632_v17  ;;  %v2668_v15 = vld [vmem:[#allocation6 + $0xaf8] sm:$0xff] }
  0xe8   :  { %5947 = vmatmul.mubr.msk.f32.gmra.mrb[4].mxu1 %vm175_vm0, %v80_v27  ;;  %1095 = vmatprep.mubr.f32.mxu0 %v7442_v1  ;;  %v2638_v27 = vld [vmem:[#allocation6 + $0xa08] sm:$0xff]  ;;  %v2665_v17 = vld [vmem:[#allocation6 + $0xae0] sm:$0xff]  ;;  %v6230_v18 = vpack.c.bf16 %v2668_v15, %v2664_v13  ;;  %v8079_v15 = vld [vmem:[#allocation6 + $0xdb0] sm:$0xff] }
  0xe9   :  { %1256 = vmatprep.mubr.f32.mxu1 %v7442_v1  ;;  %6069 = vmatpush1.bf16.msra.mxu0 %v6068_v30  ;;  %v2640_v30 = vld [vmem:[#allocation6 + $0xa18] sm:$0xff]  ;;  %v6090_v34 = vpack.c.bf16 %v2642_v28, %v2638_v27  ;;  %v2669_v28 = vld [vmem:[#allocation6 + $0xb00] sm:$0xff]  ;;  %8990 = vst [vmem:[#allocation32_spill] sm:$0xff] %v8079_v15 }
  0xea   :  { %6197 = vmatpush1.bf16.msra.mxu1 %v6196_v31  ;;  %6071 = vmatprep.subr.bf16.mxu0 %v6070_v32  ;;  %v2644_v31 = vld [vmem:[#allocation6 + $0xa38] sm:$0xff]  ;;  %v6088_v32 = vpack.c.bf16 %v2633_v23, %v2629_v22  ;;  %v2670_v23 = vld [vmem:[#allocation6 + $0xb08] sm:$0xff] }
  0xeb   :  { %5932 = vmatmul.mubr.msk.f32.gmra.mrb[6].mxu0 %vm175_vm0, %v81_v40  ;;  %6199 = vmatprep.subr.bf16.mxu1 %v6198_v36  ;;  %v2641_v36 = vld [vmem:[#allocation6 + $0xa20] sm:$0xff]  ;;  %v6218_v38 = vpack.c.bf16 %v2644_v31, %v2640_v30  ;;  %v6106_v26 = vpack.c.bf16 %v2674_v24, %v2670_v23  ;;  %v2676_v27 = vld [vmem:[#allocation6 + $0xb38] sm:$0xff] }
  0xec   :  { %5948 = vmatmul.mubr.msk.f32.gmra.mrb[6].mxu1 %vm175_vm0, %v81_v40  ;;  %1101 = vmatprep.mubr.f32.mxu0 %v7442_v1  ;;  %v2646_v40 = vld [vmem:[#allocation6 + $0xa48] sm:$0xff]  ;;  %v7955_v23 = vld [vmem:[#allocation6 + $0xc78] sm:$0xff]  ;;  %v7957_v24 = vld [vmem:[#allocation6 + $0xc40] sm:$0xff] }
  0xed   :  { %1262 = vmatprep.mubr.f32.mxu1 %v7442_v1  ;;  %6073 = vmatpush1.bf16.msra.mxu0 %v6072_v43  ;;  %v2648_v43 = vld [vmem:[#allocation6 + $0xa58] sm:$0xff]  ;;  %v6094_v47 = vpack.c.bf16 %v2650_v41, %v2646_v40  ;;  %v2677_v40 = vld [vmem:[#allocation6 + $0xb40] sm:$0xff] }
  0xee   :  { %6201 = vmatpush1.bf16.msra.mxu1 %v6200_v44  ;;  %6075 = vmatprep.subr.bf16.mxu0 %v6074_v45  ;;  %v2652_v44 = vld [vmem:[#allocation6 + $0xa78] sm:$0xff]  ;;  %v6092_v45 = vpack.c.bf16 %v2641_v36, %v2637_v35  ;;  %v2678_v35 = vld [vmem:[#allocation6 + $0xb48] sm:$0xff]  ;;  %v2681_v41 = vld [vmem:[#allocation6 + $0xb60] sm:$0xff] }
  0xef   :  { %5933 = vmatmul.mubr.msk.f32.gmra.mrb[8].mxu0 %vm175_vm0, %v82_v53  ;;  %6203 = vmatprep.subr.bf16.mxu1 %v6202_v49  ;;  %v2649_v49 = vld [vmem:[#allocation6 + $0xa60] sm:$0xff]  ;;  %v6222_v51 = vpack.c.bf16 %v2652_v44, %v2648_v43  ;;  %v2682_v36 = vld [vmem:[#allocation6 + $0xb68] sm:$0xff]  ;;  %v6112_v43 = vpack.c.bf16 %v2681_v41, %v2677_v40  ;;  %v2679_v44 = vld [vmem:[#allocation6 + $0xb50] sm:$0xff] }
  0xf0   :  { %5949 = vmatmul.mubr.msk.f32.gmra.mrb[8].mxu1 %vm175_vm0, %v82_v53  ;;  %1107 = vmatprep.mubr.f32.mxu0 %v7442_v1  ;;  %v2654_v53 = vld [vmem:[#allocation6 + $0xa88] sm:$0xff]  ;;  %v7991_v40 = vld [vmem:[#allocation6 + $0xce0] sm:$0xff]  ;;  %v7993_v41 = vld [vmem:[#allocation6 + $0xcd0] sm:$0xff] }
  0xf1   :  { %1268 = vmatprep.mubr.f32.mxu1 %v7442_v1  ;;  %6077 = vmatpush1.bf16.msra.mxu0 %v6076_v56  ;;  %v2656_v56 = vld [vmem:[#allocation6 + $0xa98] sm:$0xff]  ;;  %v6098_v60 = vpack.c.bf16 %v2658_v54, %v2654_v53  ;;  %v2689_v53 = vld [vmem:[#allocation6 + $0xba0] sm:$0xff] }
  0xf2   :  { %6205 = vmatpush1.bf16.msra.mxu1 %v6204_v57  ;;  %6079 = vmatprep.subr.bf16.mxu0 %v6078_v58  ;;  %v2660_v57 = vld [vmem:[#allocation6 + $0xab8] sm:$0xff]  ;;  %v6096_v58 = vpack.c.bf16 %v2649_v49, %v2645_v48  ;;  %v2690_v48 = vld [vmem:[#allocation6 + $0xba8] sm:$0xff] }
  0xf3   :  { %5934 = vmatmul.mubr.msk.f32.gmra.mrb[10].mxu0 %vm175_vm0, %v83_v3  ;;  %6207 = vmatprep.subr.bf16.mxu1 %v6206_v62  ;;  %v6226_v61 = vpack.c.bf16 %v2660_v57, %v2656_v56  ;;  %v88_v62 = vld [vmem:[%s8922_s0 + $0x78] sm:$0xff] }
  0xf4   :  { %5950 = vmatmul.mubr.msk.f32.gmra.mrb[10].mxu1 %vm175_vm0, %v83_v3  ;;  %1113 = vmatprep.mubr.f32.mxu0 %v7442_v1  ;;  %v92_v3 = vld [vmem:[%s8922_s0 + $0xa8] sm:$0xff]  ;;  %v2688_v49 = vld [vmem:[#allocation6 + $0xb98] sm:$0xff]  ;;  %v2687_v56 = vld [vmem:[#allocation6 + $0xb90] sm:$0xff] }
  0xf5   :  { %1274 = vmatprep.mubr.f32.mxu1 %v7442_v1  ;;  %6081 = vmatpush1.bf16.msra.mxu0 %v6080_v6  ;;  %v2657_v6 = vld [vmem:[#allocation6 + $0xaa0] sm:$0xff]  ;;  %v2691_v57 = vld [vmem:[#allocation6 + $0xbb0] sm:$0xff] }
  0xf6   :  { %6209 = vmatpush1.bf16.msra.mxu1 %v6208_v7  ;;  %6083 = vmatprep.subr.bf16.mxu0 %v6082_v8  ;;  %v2655_v7 = vld [vmem:[#allocation6 + $0xa90] sm:$0xff]  ;;  %v6100_v8 = vpack.c.bf16 %v2657_v6, %v2653_v5 }
  0xf7   :  { %5935 = vmatmul.mubr.msk.f32.gmra.mrb[12].mxu0 %vm175_vm0, %v84_v16  ;;  %6211 = vmatprep.subr.bf16.mxu1 %v6210_v12  ;;  %v6228_v10 = vpack.c.bf16 %v2659_v9, %v2655_v7  ;;  %v2666_v12 = vld [vmem:[#allocation6 + $0xae8] sm:$0xff]  ;;  %v2695_v5 = vld [vmem:[#allocation6 + $0xbd0] sm:$0xff] }
  0xf8   :  { %5951 = vmatmul.mubr.msk.f32.gmra.mrb[12].mxu1 %vm175_vm0, %v84_v16  ;;  %1119 = vmatprep.mubr.f32.mxu0 %v7442_v1  ;;  %v6102_v14 = vpack.c.bf16 %v2666_v12, %v2662_v11  ;;  %v2661_v16 = vld [vmem:[#allocation6 + $0xac0] sm:$0xff]  ;;  %v2699_v6 = vld [vmem:[#allocation6 + $0xbf0] sm:$0xff]  ;;  %v2706_v9 = vld [vmem:[#allocation6 + $0xc28] sm:$0xff] }
  0xf9   :  { %1280 = vmatprep.mubr.f32.mxu1 %v7442_v1  ;;  %6085 = vmatpush1.bf16.msra.mxu0 %v6084_v19  ;;  %v6104_v19 = vpack.c.bf16 %v2665_v17, %v2661_v16  ;;  %v6248_v7 = vpack.c.bf16 %v2699_v6, %v2695_v5  ;;  %v2708_v12 = vld [vmem:[#allocation6 + $0xc38] sm:$0xff]  ;;  %v7941_v16 = vld [vmem:[#allocation6 + $0xc00] sm:$0xff] }
  0xfa   :  { %6213 = vmatpush1.bf16.msra.mxu1 %v6212_v20  ;;  %6087 = vmatprep.subr.bf16.mxu0 %v6086_v21  ;;  %v2663_v20 = vld [vmem:[#allocation6 + $0xad0] sm:$0xff]  ;;  %v7943_v17 = vld [vmem:[#allocation6 + $0xc20] sm:$0xff] }
  0xfb   :  { %5936 = vmatmul.mubr.msk.f32.gmra.mrb[14].mxu0 %vm175_vm0, %v85_v29  ;;  %6215 = vmatprep.subr.bf16.mxu1 %v6214_v25  ;;  %v2667_v21 = vld [vmem:[#allocation6 + $0xaf0] sm:$0xff]  ;;  %v2672_v25 = vld [vmem:[#allocation6 + $0xb18] sm:$0xff]  ;;  %v8067_v6 = vld [vmem:[#allocation6 + $0xd80] sm:$0xff] }
  0xfc   :  { %5952 = vmatmul.mubr.msk.f32.gmra.mrb[14].mxu1 %vm175_vm0, %v85_v29  ;;  %1125 = vmatprep.mubr.f32.mxu0 %v7442_v1  ;;  %v6232_v22 = vpack.c.bf16 %v2667_v21, %v2663_v20  ;;  %v2673_v29 = vld [vmem:[#allocation6 + $0xb20] sm:$0xff]  ;;  %v6234_v30 = vpack.c.bf16 %v2676_v27, %v2672_v25  ;;  %v7949_v20 = vld [vmem:[#allocation6 + $0xc48] sm:$0xff]  ;;  %8987 = vst [vmem:[#allocation29_spill] sm:$0xff] %v8067_v6 }
  0xfd   :  { %1286 = vmatprep.mubr.f32.mxu1 %v7442_v1  ;;  %6089 = vmatpush1.bf16.msra.mxu0 %v6088_v32  ;;  %v6108_v31 = vpack.c.bf16 %v2673_v29, %v2669_v28  ;;  %v2671_v32 = vld [vmem:[#allocation6 + $0xb10] sm:$0xff]  ;;  %v7951_v21 = vld [vmem:[#allocation6 + $0xc68] sm:$0xff]  ;;  %v7959_v25 = vld [vmem:[#allocation6 + $0xc60] sm:$0xff] }
  0xfe   :  { %6217 = vmatpush1.bf16.msra.mxu1 %v6216_v33  ;;  %6091 = vmatprep.subr.bf16.mxu0 %v6090_v34  ;;  %v2675_v33 = vld [vmem:[#allocation6 + $0xb30] sm:$0xff]  ;;  %v7965_v27 = vld [vmem:[#allocation6 + $0xc88] sm:$0xff]  ;;  %v7969_v29 = vld [vmem:[#allocation6 + $0xc98] sm:$0xff] }
  0xff   :  { %5937 = vmatmul.mubr.msk.f32.gmra.mrb[16].mxu0 %vm175_vm0, %v86_v42  ;;  %6219 = vmatprep.subr.bf16.mxu1 %v6218_v38  ;;  %v6236_v34 = vpack.c.bf16 %v2675_v33, %v2671_v32  ;;  %v6110_v38 = vpack.c.bf16 %v2682_v36, %v2678_v35  ;;  %v7967_v28 = vld [vmem:[#allocation6 + $0xca8] sm:$0xff]  ;;  %v7975_v32 = vld [vmem:[#allocation6 + $0xca0] sm:$0xff]  ;;  %v7977_v33 = vld [vmem:[#allocation6 + $0xc90] sm:$0xff] }
 0x100   :  { %5953 = vmatmul.mubr.msk.f32.gmra.mrb[16].mxu1 %vm175_vm0, %v86_v42  ;;  %1131 = vmatprep.mubr.f32.mxu0 %v7442_v1  ;;  %v6238_v42 = vpack.c.bf16 %v2684_v39, %v2680_v37  ;;  %v7981_v35 = vld [vmem:[#allocation6 + $0xcc8] sm:$0xff]  ;;  %v7985_v37 = vld [vmem:[#allocation6 + $0xcd8] sm:$0xff]  ;;  %v7989_v39 = vld [vmem:[#allocation6 + $0xcc0] sm:$0xff] }
 0x101   :  { %1292 = vmatprep.mubr.f32.mxu1 %v7442_v1  ;;  %6093 = vmatpush1.bf16.msra.mxu0 %v6092_v45  ;;  %v2683_v45 = vld [vmem:[#allocation6 + $0xb70] sm:$0xff]  ;;  %v7983_v36 = vld [vmem:[#allocation6 + $0xce8] sm:$0xff]  ;;  %v8069_v5 = vld [vmem:[#allocation6 + $0xda0] sm:$0xff] }
 0x102   :  { %6221 = vmatpush1.bf16.msra.mxu1 %v6220_v46  ;;  %6095 = vmatprep.subr.bf16.mxu0 %v6094_v47  ;;  %v6240_v46 = vpack.c.bf16 %v2683_v45, %v2679_v44  ;;  %v2686_v47 = vld [vmem:[#allocation6 + $0xb88] sm:$0xff]  ;;  %v8001_v45 = vld [vmem:[#allocation6 + $0xd18] sm:$0xff]  ;;  %8988 = vst [vmem:[#allocation30_spill] sm:$0xff] %v8069_v5 }
 0x103   :  { %5938 = vmatmul.mubr.msk.f32.gmra.mrb[18].mxu0 %vm175_vm0, %v87_v55  ;;  %6223 = vmatprep.subr.bf16.mxu1 %v6222_v51  ;;  %v6114_v50 = vpack.c.bf16 %v2690_v48, %v2686_v47  ;;  %v2692_v51 = vld [vmem:[#allocation6 + $0xbb8] sm:$0xff]  ;;  %v7999_v44 = vld [vmem:[#allocation6 + $0xd28] sm:$0xff]  ;;  %v8005_v47 = vld [vmem:[#allocation6 + $0xd00] sm:$0xff] }
 0x104   :  { %5954 = vmatmul.mubr.msk.f32.gmra.mrb[18].mxu1 %vm175_vm0, %v87_v55  ;;  %1137 = vmatprep.mubr.f32.mxu0 %v7442_v1  ;;  %v6242_v54 = vpack.c.bf16 %v2692_v51, %v2688_v49  ;;  %v6116_v55 = vpack.c.bf16 %v2689_v53, %v2685_v52  ;;  %8972 = vst [vmem:[#allocation14_spill] sm:$0xff] %v8005_v47  ;;  %v8007_v48 = vld [vmem:[#allocation6 + $0xd20] sm:$0xff]  ;;  %v8009_v49 = vld [vmem:[#allocation6 + $0xd10] sm:$0xff]  ;;  %v8087_v51 = vld [vmem:[#allocation6 + $0xde8] sm:$0xff] }
 0x105   :  { %1298 = vmatprep.mubr.f32.mxu1 %v7442_v1  ;;  %6097 = vmatpush1.bf16.msra.mxu0 %v6096_v58  ;;  %v6244_v58 = vpack.c.bf16 %v2691_v57, %v2687_v56  ;;  %8973 = vst [vmem:[#allocation15_spill] sm:$0xff] %v8009_v49  ;;  %v8023_v56 = vld [vmem:[#allocation6 + $0xd58] sm:$0xff]  ;;  %8992 = vst [vmem:[#allocation34_spill] sm:$0xff] %v8087_v51  ;;  %v8099_v52 = vld [vmem:[#allocation6 + $0xde0] sm:$0xff] }
 0x106   :  { %6225 = vmatpush1.bf16.msra.mxu1 %v6224_v59  ;;  %6099 = vmatprep.subr.bf16.mxu0 %v6098_v60  ;;  %v2694_v59 = vld [vmem:[#allocation6 + $0xbc8] sm:$0xff]  ;;  %8977 = vst [vmem:[#allocation19_spill] sm:$0xff] %v8023_v56  ;;  %v8025_v57 = vld [vmem:[#allocation6 + $0xd78] sm:$0xff]  ;;  %8996 = vst [vmem:[#allocation38_spill] sm:$0xff] %v8099_v52 }
 0x107   :  { %5939 = vmatmul.mubr.msk.f32.gmra.mrb[20].mxu0 %vm175_vm0, %v88_v62  ;;  %6227 = vmatprep.subr.bf16.mxu1 %v6226_v61  ;;  %v2698_v60 = vld [vmem:[#allocation6 + $0xbe8] sm:$0xff]  ;;  %v2696_v61 = vld [vmem:[#allocation6 + $0xbd8] sm:$0xff]  ;;  %8978 = vst [vmem:[#allocation20_spill] sm:$0xff] %v8025_v57 }
 0x108   :  { %5955 = vmatmul.mubr.msk.f32.gmra.mrb[20].mxu1 %vm175_vm0, %v88_v62  ;;  %1143 = vmatprep.mubr.f32.mxu0 %v7442_v1  ;;  %v6118_v62 = vpack.c.bf16 %v2698_v60, %v2694_v59  ;;  %v8077_v60 = vld [vmem:[#allocation6 + $0xd90] sm:$0xff]  ;;  %v8081_v59 = vld [vmem:[#allocation6 + $0xdc8] sm:$0xff] }
 0x109   :  { %1304 = vmatprep.mubr.f32.mxu1 %v7442_v1  ;;  %6101 = vmatpush1.bf16.msra.mxu0 %v6100_v8  ;;  %v2702_v8 = vld [vmem:[#allocation6 + $0xc08] sm:$0xff]  ;;  %8989 = vst [vmem:[#allocation31_spill] sm:$0xff] %v8077_v60  ;;  %8991 = vst [vmem:[#allocation33_spill] sm:$0xff] %v8081_v59 }
 0x10a   :  { %6229 = vmatpush1.bf16.msra.mxu1 %v6228_v10  ;;  %6103 = vmatprep.subr.bf16.mxu0 %v6102_v14  ;;  %v2704_v10 = vld [vmem:[#allocation6 + $0xc18] sm:$0xff]  ;;  %v6122_v11 = vpack.c.bf16 %v2706_v9, %v2702_v8  ;;  %v8929_v14 = vlaneseq  ;;  %v8053_v8 = vld [vmem:[#allocation6 + $0xda8] sm:$0xff] }
 0x10b   :  { %5940 = vmatmul.mubr.msk.f32.gmra.mrb[22].mxu0 %vm175_vm0, %v89_v63  ;;  %6231 = vmatprep.subr.bf16.mxu1 %v6230_v18  ;;  %v6250_v13 = vpack.c.bf16 %v2708_v12, %v2704_v10  ;;  %v7945_v18 = vld [vmem:[#allocation6 + $0xc10] sm:$0xff]  ;;  %8984 = vst [vmem:[#allocation26_spill] sm:$0xff] %v8053_v8  ;;  %v8055_v9 = vld [vmem:[#allocation6 + $0xd98] sm:$0xff]  ;;  %v8109_v47 = vld [vmem:[#allocation6 + $0xe08] sm:$0xff] }
 0x10c   :  { %5956 = vmatmul.mubr.msk.f32.gmra.mrb[22].mxu1 %vm175_vm0, %v89_v63  ;;  %1149 = vmatprep.mubr.f32.mxu0 %v7442_v1  ;;  %v2700_v63 = vld [vmem:[#allocation6 + $0xbf8] sm:$0xff]  ;;  %vm7889_vm1 = vcmp.lt.s32.totalorder %v8929_v14, 512  ;;  %8985 = vst [vmem:[#allocation27_spill] sm:$0xff] %v8055_v9  ;;  %8999 = vst [vmem:[#allocation41_spill] sm:$0xff] %v8109_v47  ;;  %v8125_v8 = vld [vmem:[#allocation6 + $0xe00] sm:$0xff] }
 0x10d   :  { %1310 = vmatprep.mubr.f32.mxu1 %v7442_v1  ;;  %6105 = vmatpush1.bf16.msra.mxu0 %v6104_v19  ;;  %1491 = vst.msk [vmem:[#allocation2 + $0x41] ss:$8 sm:$0xf] %vm7889_vm1, %v7442_v1  ;;  %1467 = vst.msk [vmem:[#allocation2] ss:$8 sm:$0xf] %vm7889_vm1, %v7442_v1 }
 0x10e   :  { %6233 = vmatpush1.bf16.msra.mxu1 %v6232_v22  ;;  %6107 = vmatprep.subr.bf16.mxu0 %v6106_v26  ;;  %1470 = vst.msk [vmem:[#allocation2 + $0x60] ss:$8 sm:$0xf] %vm7889_vm1, %v7442_v1  ;;  %1473 = vst.msk [vmem:[#allocation2 + $0xc0] ss:$8 sm:$0xf] %vm7889_vm1, %v7442_v1 }
 0x10f   :  { %5941 = vmatmul.mubr.msk.f32.gmra.mrb[24].mxu0 %vm175_vm0, %v90_v0  ;;  %6235 = vmatprep.subr.bf16.mxu1 %v6234_v30  ;;  %1476 = vst.msk [vmem:[#allocation2 + $0x120] ss:$8 sm:$0xf] %vm7889_vm1, %v7442_v1  ;;  %1479 = vst.msk [vmem:[#allocation2 + $0x180] ss:$8 sm:$0xf] %vm7889_vm1, %v7442_v1 }
 0x110   :  { %5957 = vmatmul.mubr.msk.f32.gmra.mrb[24].mxu1 %vm175_vm0, %v90_v0  ;;  %1155 = vmatprep.mubr.f32.mxu0 %v7442_v1  ;;  %v2693_v0 = vld [vmem:[#allocation6 + $0xbc0] sm:$0xff]  ;;  %1482 = vst.msk [vmem:[#allocation2 + $0x1e0] ss:$8 sm:$0xf] %vm7889_vm1, %v7442_v1  ;;  %v7947_v19 = vld [vmem:[#allocation6 + $0xc30] sm:$0xff]  ;;  %v7953_v22 = vld [vmem:[#allocation6 + $0xc58] sm:$0xff] }
 0x111   :  { %1316 = vmatprep.mubr.f32.mxu1 %v7442_v1  ;;  %6109 = vmatpush1.bf16.msra.mxu0 %v6108_v31  ;;  %1485 = vst.msk [vmem:[#allocation2 + $0x240] ss:$8 sm:$0xf] %vm7889_vm1, %v7442_v1  ;;  %1488 = vst.msk [vmem:[#allocation2 + $0x2a0] ss:$8 sm:$0xf] %vm7889_vm1, %v7442_v1 }
 0x112   :  { %6237 = vmatpush1.bf16.msra.mxu1 %v6236_v34  ;;  %6111 = vmatprep.subr.bf16.mxu0 %v6110_v38  ;;  %1494 = vst.msk [vmem:[#allocation2 + $0xa1] ss:$8 sm:$0xf] %vm7889_vm1, %v7442_v1  ;;  %1497 = vst.msk [vmem:[#allocation2 + $0x101] ss:$8 sm:$0xf] %vm7889_vm1, %v7442_v1 }
 0x113   :  { %5942 = vmatmul.mubr.msk.f32.gmra.mrb[26].mxu0 %vm175_vm0, %v91_v2  ;;  %6239 = vmatprep.subr.bf16.mxu1 %v6238_v42  ;;  %1500 = vst.msk [vmem:[#allocation2 + $0x161] ss:$8 sm:$0xf] %vm7889_vm1, %v7442_v1  ;;  %1503 = vst.msk [vmem:[#allocation2 + $0x1c1] ss:$8 sm:$0xf] %vm7889_vm1, %v7442_v1 }
 0x114   :  { %5958 = vmatmul.mubr.msk.f32.gmra.mrb[26].mxu1 %vm175_vm0, %v91_v2  ;;  %1161 = vmatprep.mubr.f32.mxu0 %v7442_v1  ;;  %v2697_v2 = vld [vmem:[#allocation6 + $0xbe0] sm:$0xff]  ;;  %1506 = vst.msk [vmem:[#allocation2 + $0x221] ss:$8 sm:$0xf] %vm7889_vm1, %v7442_v1  ;;  %v7963_v26 = vld [vmem:[#allocation6 + $0xc70] sm:$0xff]  ;;  %v7971_v30 = vld [vmem:[#allocation6 + $0xcb8] sm:$0xff] }
 0x115   :  { %1322 = vmatprep.mubr.f32.mxu1 %v7442_v1  ;;  %6113 = vmatpush1.bf16.msra.mxu0 %v6112_v43  ;;  %1509 = vst.msk [vmem:[#allocation2 + $0x281] ss:$8 sm:$0xf] %vm7889_vm1, %v7442_v1  ;;  %1512 = vst.msk [vmem:[#allocation2 + $0x2e1] ss:$8 sm:$0xf] %vm7889_vm1, %v7442_v1 }
 0x116   :  { %6241 = vmatpush1.bf16.msra.mxu1 %v6240_v46  ;;  %6115 = vmatprep.subr.bf16.mxu0 %v6114_v50  ;;  %v7973_v31 = vld [vmem:[#allocation6 + $0xc80] sm:$0xff]  ;;  %v7979_v34 = vld [vmem:[#allocation6 + $0xcb0] sm:$0xff]  ;;  %v7987_v38 = vld [vmem:[#allocation6 + $0xcf8] sm:$0xff]  ;;  %9003 = vst [vmem:[#allocation45_spill] sm:$0xff] %v8125_v8 }
 0x117   :  { %5943 = vmatmul.mubr.msk.f32.gmra.mrb[28].mxu0 %vm175_vm0, %v92_v3  ;;  %6243 = vmatprep.subr.bf16.mxu1 %v6242_v54  ;;  %v7995_v42 = vld [vmem:[#allocation6 + $0xcf0] sm:$0xff]  ;;  %v7997_v43 = vld [vmem:[#allocation6 + $0xd08] sm:$0xff]  ;;  %v8003_v46 = vld [vmem:[#allocation6 + $0xd38] sm:$0xff] }
 0x118   :  { %5959 = vmatmul.mubr.msk.f32.gmra.mrb[28].mxu1 %vm175_vm0, %v92_v3  ;;  %1167 = vmatprep.mubr.f32.mxu0 %v7442_v1  ;;  %v6246_v3 = vpack.c.bf16 %v2700_v63, %v2696_v61  ;;  %v8011_v50 = vld [vmem:[#allocation6 + $0xd30] sm:$0xff]  ;;  %v8019_v54 = vld [vmem:[#allocation6 + $0xd48] sm:$0xff]  ;;  %v8037_v63 = vld [vmem:[#allocation6 + $0xd60] sm:$0xff] }
 0x119   :  { %1328 = vmatprep.mubr.f32.mxu1 %v7442_v1  ;;  %6117 = vmatpush1.bf16.msra.mxu0 %v6116_v55  ;;  %v7961_v1 = vld [vmem:[#allocation6 + $0xc50] sm:$0xff]  ;;  %8974 = vst [vmem:[#allocation16_spill] sm:$0xff] %v8011_v50  ;;  %8975 = vst [vmem:[#allocation17_spill] sm:$0xff] %v8019_v54  ;;  %v8021_v55 = vld [vmem:[#allocation6 + $0xd68] sm:$0xff] }
 0x11a   :  { %6245 = vmatpush1.bf16.msra.mxu1 %v6244_v58  ;;  %6119 = vmatprep.subr.bf16.mxu0 %v6118_v62  ;;  %8976 = vst [vmem:[#allocation18_spill] sm:$0xff] %v8021_v55  ;;  %v8035_v62 = vld [vmem:[#allocation6 + $0xd40] sm:$0xff]  ;;  %8980 = vst [vmem:[#allocation22_spill] sm:$0xff] %v8037_v63  ;;  %v8065_v14 = vld [vmem:[#allocation6 + $0xdb8] sm:$0xff] }
 0x11b   :  { %5944 = vmatmul.mubr.msk.f32.gmra.mrb[30].mxu0 %vm175_vm0, %v93_v4  ;;  %6247 = vmatprep.subr.bf16.mxu1 %v6246_v3  ;;  %8979 = vst [vmem:[#allocation21_spill] sm:$0xff] %v8035_v62  ;;  %8986 = vst [vmem:[#allocation28_spill] sm:$0xff] %v8065_v14  ;;  %v8089_v12 = vld [vmem:[#allocation6 + $0xdd8] sm:$0xff]  ;;  %v8101_v54 = vld [vmem:[#allocation6 + $0xdd0] sm:$0xff] }
 0x11c   :  { %5960 = vmatmul.mubr.msk.f32.gmra.mrb[30].mxu1 %vm175_vm0, %v93_v4  ;;  %v6120_v4 = vpack.c.bf16 %v2697_v2, %v2693_v0  ;;  %v8039_v0 = vld [vmem:[#allocation6 + $0xd50] sm:$0xff]  ;;  %8993 = vst [vmem:[#allocation35_spill] sm:$0xff] %v8089_v12  ;;  %8997 = vst [vmem:[#allocation39_spill] sm:$0xff] %v8101_v54  ;;  %v8117_v55 = vld [vmem:[#allocation6 + $0xe18] sm:$0xff] }
 0x11d   :  { %8981 = vst [vmem:[#allocation23_spill] sm:$0xff] %v8039_v0  ;;  %v8041_v2 = vld [vmem:[#allocation6 + $0xd70] sm:$0xff]  ;;  %9001 = vst [vmem:[#allocation43_spill] sm:$0xff] %v8117_v55  ;;  %v8150_v47 = vld [vmem:[#allocation6 + $0xe58] sm:$0xff] }
 0x11e   :  { %6121 = vmatpush1.bf16.msra.mxu0 %v6120_v4  ;;  %6249 = vmatpush1.bf16.msra.mxu1 %v6248_v7  ;;  %8982 = vst [vmem:[#allocation24_spill] sm:$0xff] %v8041_v2  ;;  %v8051_v7 = vld [vmem:[#allocation6 + $0xd88] sm:$0xff]  ;;  %9009 = vst [vmem:[#allocation51_spill] sm:$0xff] %v8150_v47  ;;  %v8152_v12 = vld [vmem:[#allocation6 + $0xe78] sm:$0xff] }
 0x11f   :  { %6123 = vmatprep.subr.bf16.mxu0 %v6122_v11  ;;  %6251 = vmatprep.subr.bf16.mxu1 %v6250_v13  ;;  %8983 = vst [vmem:[#allocation25_spill] sm:$0xff] %v8051_v7  ;;  %v8091_v13 = vld [vmem:[#allocation6 + $0xdf8] sm:$0xff] }
 0x120   :  { %8994 = vst [vmem:[#allocation36_spill] sm:$0xff] %v8091_v13  ;;  %v8139_v13 = vld [vmem:[#allocation6 + $0xe30] sm:$0xff] }
 0x121   :  { %9006 = vst [vmem:[#allocation48_spill] sm:$0xff] %v8139_v13 }
 0x1b2   :  { %v1079_v10 = vpop.f32.mrb[0].mxu0 }
 0x1b3   :  { %v1399_v4 = vmax.f32 %v1079_v10, 0.0  ;;  %v1240_v3 = vpop.f32.mrb[0].mxu1  ;;  %v1081_v61 = vpop.f32.mrb[1].mxu0 }
 0x1b4   :  { %v1401_v58 = vmax.f32 %v1240_v3, 0.0  ;;  %v1400_v53 = vmax.f32 %v1081_v61, 0.0  ;;  %v1242_v10 = vpop.f32.mrb[1].mxu1  ;;  %v8097_v3 = vld [vmem:[#allocation6 + $0xdc0] sm:$0xff]  ;;  %v8111_v61 = vld [vmem:[#allocation6 + $0xe28] sm:$0xff] }
 0x1b5   :  { %v1579_v49 = vrot.slane %v1399_v4, 7  ;;  %v1402_v50 = vmax.f32 %v1242_v10, 0.0  ;;  %8995 = vst [vmem:[#allocation37_spill] sm:$0xff] %v8097_v3  ;;  %v8107_v10 = vld [vmem:[#allocation6 + $0xdf0] sm:$0xff]  ;;  %9000 = vst [vmem:[#allocation42_spill] sm:$0xff] %v8111_v61  ;;  %v8119_v4 = vld [vmem:[#allocation6 + $0xe38] sm:$0xff] }
 0x1b6   :  { %v1581_v11 = vrot.slane %v1401_v58, 7  ;;  %v1580_v56 = vrot.slane %v1400_v53, 7  ;;  %v1085_v57 = vpop.f32.mrb[2].mxu0  ;;  %8998 = vst [vmem:[#allocation40_spill] sm:$0xff] %v8107_v10  ;;  %9002 = vst [vmem:[#allocation44_spill] sm:$0xff] %v8119_v4  ;;  %v8127_v53 = vld [vmem:[#allocation6 + $0xe20] sm:$0xff] }
 0x1b7   :  { %1771 = vst [vmem:[#allocation2] sm:$0xfe] %v1579_v49  ;;  %v1582_v0 = vrot.slane %v1402_v50, 7  ;;  %v1403_v2 = vmax.f32 %v1085_v57, 0.0  ;;  %v1246_v62 = vpop.f32.mrb[2].mxu1  ;;  %v1087_v63 = vpop.f32.mrb[3].mxu0 }
 0x1b8   :  { %1773 = vst [vmem:[#allocation2 + $0x10] sm:$0xfe] %v1581_v11  ;;  %1772 = vst [vmem:[#allocation2 + $0x8] sm:$0xfe] %v1580_v56  ;;  %v1405_v9 = vmax.f32 %v1246_v62, 0.0  ;;  %v1404_v14 = vmax.f32 %v1087_v63, 0.0 }
 0x1b9   :  { %v1248_v7 = vpop.f32.mrb[3].mxu1  ;;  %9004 = vst [vmem:[#allocation46_spill] sm:$0xff] %v8127_v53  ;;  %1774 = vst [vmem:[#allocation2 + $0x18] sm:$0xfe] %v1582_v0  ;;  %v1583_v58 = vrot.slane %v1403_v2, 7  ;;  %v8133_v63 = vld [vmem:[#allocation6 + $0xe10] sm:$0xff] }
 0x1ba   :  { %v1406_v60 = vmax.f32 %v1248_v7, 0.0  ;;  %9005 = vst [vmem:[#allocation47_spill] sm:$0xff] %v8133_v63  ;;  %v1587_v6 = vrot.slane %v1405_v9, 7  ;;  %v1585_v50 = vrot.slane %v1404_v14, 7  ;;  %v1091_v59 = vpop.f32.mrb[4].mxu0  ;;  %v8141_v2 = vld [vmem:[#allocation6 + $0xe48] sm:$0xff] }
 0x1bb   :  { %9007 = vst [vmem:[#allocation49_spill] sm:$0xff] %v8141_v2  ;;  %v8143_v7 = vld [vmem:[#allocation6 + $0xe68] sm:$0xff]  ;;  %v8146_v15 = vsel %vm1578_vm2, %v1579_v49, %v1583_v58  ;;  %1779 = vst [vmem:[#allocation2 + $0x40] sm:$0x1] %v1583_v58  ;;  %v1407_v9 = vmax.f32 %v1091_v59, 0.0  ;;  %v1252_v14 = vpop.f32.mrb[4].mxu1 }
 0x1bc   :  { %9008 = vst [vmem:[#allocation50_spill] sm:$0xff] %v8143_v7  ;;  %v1589_v62 = vrot.slane %v1406_v60, 7  ;;  %v1093_v54 = vpop.f32.mrb[5].mxu0  ;;  %1775 = vst [vmem:[#allocation2 + $0x20] sm:$0xff] %v8146_v15  ;;  %v1588_v55 = vsel %vm1578_vm2, %v1581_v11, %v1587_v6  ;;  %v8157_v49 = vsel %vm1578_vm2, %v1580_v56, %v1585_v50  ;;  %v1409_v60 = vmax.f32 %v1252_v14, 0.0  ;;  %v1254_v58 = vpop.f32.mrb[5].mxu1 }
 0x1bd   :  { %1781 = vst [vmem:[#allocation2 + $0x50] sm:$0x1] %v1587_v6  ;;  %1780 = vst [vmem:[#allocation2 + $0x48] sm:$0x1] %v1585_v50  ;;  %v1408_v59 = vmax.f32 %v1093_v54, 0.0  ;;  %v8159_v4 = vld [vmem:[#allocation6 + $0xe40] sm:$0xff] }
 0x1be   :  { %9010 = vst [vmem:[#allocation52_spill] sm:$0xff] %v8159_v4  ;;  %v8161_v61 = vld [vmem:[#allocation6 + $0xe60] sm:$0xff]  ;;  %v8163_v57 = vld [vmem:[#allocation6 + $0xe50] sm:$0xff]  ;;  %1777 = vst [vmem:[#allocation2 + $0x30] sm:$0xff] %v1588_v55  ;;  %v1590_v8 = vsel %vm1578_vm2, %v1582_v0, %v1589_v62  ;;  %v1591_v6 = vrot.slane %v1407_v9, 7  ;;  %v1410_v11 = vmax.f32 %v1254_v58, 0.0 }
 0x1bf   :  { %1776 = vst [vmem:[#allocation2 + $0x28] sm:$0xff] %v8157_v49  ;;  %1782 = vst [vmem:[#allocation2 + $0x58] sm:$0x1] %v1589_v62  ;;  %v8169_v50 = vld [vmem:[#allocation6 + $0xe70] sm:$0xff]  ;;  %v8171_v54 = vld [vmem:[#allocation6 + $0xe88] sm:$0xff]  ;;  %v1593_v53 = vrot.slane %v1409_v60, 7 }
 0x1c0   :  { %v8173_v14 = vld [vmem:[#allocation6 + $0xea8] sm:$0xff]  ;;  %1778 = vst [vmem:[#allocation2 + $0x38] sm:$0xff] %v1590_v8  ;;  %v1592_v10 = vrot.slane %v1408_v59, 7  ;;  %v1097_v55 = vpop.f32.mrb[6].mxu0  ;;  %v2187_v52 = vld [vmem:[#allocation2] sm:$0xfe] }
 0x1c1   :  { %1783 = vst [vmem:[#allocation2 + $0x60] sm:$0xfe] %v1591_v6  ;;  %v1594_v62 = vrot.slane %v1410_v11, 7  ;;  %v1411_v9 = vmax.f32 %v1097_v55, 0.0  ;;  %v1258_v58 = vpop.f32.mrb[6].mxu1  ;;  %v1099_v56 = vpop.f32.mrb[7].mxu0 }
 0x1c2   :  { %v2188_v63 = vld [vmem:[#allocation2 + $0x8] sm:$0xfe]  ;;  %1785 = vst [vmem:[#allocation2 + $0x70] sm:$0xfe] %v1593_v53  ;;  %1784 = vst [vmem:[#allocation2 + $0x68] sm:$0xfe] %v1592_v10 }
 0x1c3   :  { %v1413_v60 = vmax.f32 %v1258_v58, 0.0  ;;  %v1412_v59 = vmax.f32 %v1099_v56, 0.0  ;;  %v1260_v3 = vpop.f32.mrb[7].mxu1  ;;  %v2351_v51 = vrot.slane %v2188_v63, 1  ;;  %v2348_v5 = vrot.slane %v2187_v52, 1  ;;  %v1103_v47 = vpop.f32.mrb[8].mxu0 }
 0x1c4   :  { %1786 = vst [vmem:[#allocation2 + $0x78] sm:$0xfe] %v1594_v62  ;;  %v1595_v0 = vrot.slane %v1411_v9, 7  ;;  %v1414_v11 = vmax.f32 %v1260_v3, 0.0  ;;  %v9011_v8 = vrot.slane %v8157_v49, 1  ;;  %v1415_v56 = vmax.f32 %v1103_v47, 0.0 }
 0x1c5   :  { %v1599_v7 = vrot.slane %v1413_v60, 7  ;;  %v1597_v13 = vrot.slane %v1412_v59, 7  ;;  %v2191_v58 = vld [vmem:[#allocation2 + $0x40] sm:$0x1]  ;;  %v1264_v9 = vpop.f32.mrb[8].mxu1  ;;  %v1105_v55 = vpop.f32.mrb[9].mxu0 }
 0x1c6   :  { %v2353_v4 = vsel %vm2347_vm3, %v2351_v51, %v9011_v8  ;;  %v8191_v52 = vsel %vm1578_vm2, %v1591_v6, %v1595_v0  ;;  %1791 = vst [vmem:[#allocation2 + $0xa0] sm:$0x1] %v1595_v0  ;;  %v1601_v3 = vrot.slane %v1414_v11, 7  ;;  %v9012_v60 = vrot.slane %v8146_v15, 1  ;;  %v2192_v2 = vld [vmem:[#allocation2 + $0x48] sm:$0x1] }
 0x1c7   :  { %2893 = vmatprep.mubr.f32.mxu0 %v2353_v4  ;;  %3215 = vmatprep.mubr.f32.mxu1 %v2353_v4  ;;  %1787 = vst [vmem:[#allocation2 + $0x80] sm:$0xff] %v8191_v52  ;;  %v1600_v51 = vsel %vm1578_vm2, %v1593_v53, %v1599_v7  ;;  %1793 = vst [vmem:[#allocation2 + $0xb0] sm:$0x1] %v1599_v7  ;;  %v8199_v6 = vsel %vm1578_vm2, %v1592_v10, %v1597_v13  ;;  %v1417_v0 = vmax.f32 %v1264_v9, 0.0  ;;  %v1266_v8 = vpop.f32.mrb[9].mxu1  ;;  %v8201_v4 = vld [vmem:[#allocation6 + $0xe98] sm:$0xff] }
 0x1c8   :  { %v2350_v59 = vsel %vm2347_vm3, %v2348_v5, %v9012_v60  ;;  %1792 = vst [vmem:[#allocation2 + $0xa8] sm:$0x1] %v1597_v13  ;;  %v1416_v47 = vmax.f32 %v1105_v55, 0.0  ;;  %v8203_v11 = vld [vmem:[#allocation6 + $0xeb8] sm:$0xff]  ;;  %1789 = vst [vmem:[#allocation2 + $0x90] sm:$0xff] %v1600_v51  ;;  %v1602_v5 = vsel %vm1578_vm2, %v1594_v62, %v1601_v3  ;;  %v1603_v53 = vrot.slane %v1415_v56, 7 }
 0x1c9   :  { %2894 = vmatmul.mubr.f32.vlgmr.msra.gmra.mrb[32].mxu0 %v2350_v59  ;;  %3216 = vmatmul.mubr.f32.vlgmr.msra.gmra.mrb[32].mxu1 %v2350_v59  ;;  %1788 = vst [vmem:[#allocation2 + $0x88] sm:$0xff] %v8199_v6  ;;  %1794 = vst [vmem:[#allocation2 + $0xb8] sm:$0x1] %v1601_v3  ;;  %v1418_v7 = vmax.f32 %v1266_v8, 0.0  ;;  %v2362_v10 = vrot.slane %v2192_v2, 1  ;;  %v9013_v13 = vpack.c.bf16 %v7943_v17, %v7941_v16  ;;  %v8213_v9 = vld [vmem:[#allocation6 + $0xe80] sm:$0xff] }
 0x1ca   :  { %v9014_v55 = vpack.c.bf16 %v7947_v19, %v7945_v18  ;;  %1790 = vst [vmem:[#allocation2 + $0x98] sm:$0xff] %v1602_v5  ;;  %v1605_v60 = vrot.slane %v1417_v0, 7  ;;  %v1604_v59 = vrot.slane %v1416_v47, 7  ;;  %v1109_v51 = vpop.f32.mrb[10].mxu0  ;;  %v2360_v63 = vrot.slane %v2191_v58, 1  ;;  %v8222_v17 = vld [vmem:[#allocation6 + $0xea0] sm:$0xff] }
 0x1cb   :  { %6125 = vmatpush1.bf16.msra.mxu0 %v9013_v13  ;;  %v9015_v62 = vpack.c.bf16 %v7951_v21, %v7949_v20  ;;  %v9016_v2 = vpack.c.bf16 %v7955_v23, %v7953_v22  ;;  %v2372_v16 = vrot.slane %v8199_v6, 1  ;;  %1795 = vst [vmem:[#allocation2 + $0xc0] sm:$0xfe] %v1603_v53  ;;  %v1606_v18 = vrot.slane %v1418_v7, 7  ;;  %v1270_v3 = vpop.f32.mrb[10].mxu1  ;;  %v1111_v56 = vpop.f32.mrb[11].mxu0 }
 0x1cc   :  { %6253 = vmatpush1.bf16.msra.mxu1 %v9014_v55  ;;  %v1419_v19 = vmax.f32 %v1109_v51, 0.0  ;;  %v9017_v0 = vrot.slane %v8157_v49, 1  ;;  %v2196_v47 = vld [vmem:[#allocation2 + $0x68] sm:$0xfe]  ;;  %v6290_v20 = vpack.c.bf16 %v8203_v11, %v8201_v4  ;;  %1797 = vst [vmem:[#allocation2 + $0xd0] sm:$0xfe] %v1605_v60 }
 0x1cd   :  { %6127 = vmatprep.subr.bf16.mxu0 %v9015_v62  ;;  %6255 = vmatprep.subr.bf16.mxu1 %v9016_v2  ;;  %1796 = vst [vmem:[#allocation2 + $0xc8] sm:$0xfe] %v1604_v59  ;;  %v1421_v21 = vmax.f32 %v1270_v3, 0.0  ;;  %v1420_v22 = vmax.f32 %v1111_v56, 0.0  ;;  %v1272_v23 = vpop.f32.mrb[11].mxu1  ;;  %v9018_v8 = vrot.slane %v8146_v15, 1  ;;  %v9019_v56 = vpack.c.bf16 %v7959_v25, %v7957_v24 }
 0x1ce   :  { %v2363_v58 = vsel %vm2347_vm3, %v9017_v0, %v2362_v10  ;;  %v2371_v7 = vrot.slane %v2196_v47, 1  ;;  %v2195_v13 = vld [vmem:[#allocation2 + $0x60] sm:$0xfe]  ;;  %1798 = vst [vmem:[#allocation2 + $0xd8] sm:$0xfe] %v1606_v18  ;;  %v1607_v49 = vrot.slane %v1419_v19, 7  ;;  %v9020_v15 = vpack.c.bf16 %v7963_v26, %v7961_v1 }
 0x1cf   :  { %2899 = vmatprep.mubr.f32.mxu0 %v2363_v58  ;;  %3221 = vmatprep.mubr.f32.mxu1 %v2363_v58  ;;  %v2361_v5 = vsel %vm2347_vm3, %v9018_v8, %v2360_v63  ;;  %v1422_v10 = vmax.f32 %v1272_v23, 0.0  ;;  %v2368_v55 = vrot.slane %v2195_v13, 1  ;;  %v2369_v51 = vrot.slane %v8191_v52, 1  ;;  %v1115_v3 = vpop.f32.mrb[12].mxu0  ;;  %v2199_v19 = vld [vmem:[#allocation2 + $0xa0] sm:$0x1] }
 0x1d0   :  { %2900 = vmatmul.mubr.f32.gmra.mrb[34].mxu0 %v2361_v5  ;;  %3222 = vmatmul.mubr.f32.gmra.mrb[34].mxu1 %v2361_v5  ;;  %v1611_v62 = vrot.slane %v1421_v21, 7  ;;  %v1609_v2 = vrot.slane %v1420_v22, 7  ;;  %v2373_v63 = vsel %vm2347_vm3, %v2371_v7, %v2372_v16  ;;  %v6164_v0 = vpack.c.bf16 %v8222_v17, %v8213_v9  ;;  %1803 = vst [vmem:[#allocation2 + $0x100] sm:$0x1] %v1607_v49  ;;  %v1276_v24 = vpop.f32.mrb[12].mxu1  ;;  %v1117_v25 = vpop.f32.mrb[13].mxu0 }
 0x1d1   :  { %6129 = vmatpush1.bf16.msra.mxu0 %v9019_v56  ;;  %6257 = vmatpush1.bf16.msra.mxu1 %v9020_v15  ;;  %v8245_v58 = vsel %vm1578_vm2, %v1603_v53, %v1607_v49  ;;  %v1613_v47 = vrot.slane %v1422_v10, 7  ;;  %v1423_v21 = vmax.f32 %v1115_v3, 0.0  ;;  %v2370_v1 = vsel %vm2347_vm3, %v2368_v55, %v2369_v51  ;;  %v2200_v26 = vld [vmem:[#allocation2 + $0xa8] sm:$0x1]  ;;  %v1278_v5 = vpop.f32.mrb[13].mxu1  ;;  %v8261_v49 = vld [vmem:[#allocation6 + $0xe90] sm:$0xff] }
 0x1d2   :  { %2905 = vmatprep.mubr.f32.mxu0 %v2373_v63  ;;  %3227 = vmatprep.mubr.f32.mxu1 %v2373_v63  ;;  %1799 = vst [vmem:[#allocation2 + $0xe0] sm:$0xff] %v8245_v58  ;;  %v1612_v22 = vsel %vm1578_vm2, %v1605_v60, %v1611_v62  ;;  %1805 = vst [vmem:[#allocation2 + $0x110] sm:$0x1] %v1611_v62  ;;  %v8253_v53 = vsel %vm1578_vm2, %v1604_v59, %v1609_v2  ;;  %v1425_v23 = vmax.f32 %v1276_v24, 0.0  ;;  %v8263_v10 = vld [vmem:[#allocation6 + $0xeb0] sm:$0xff]  ;;  %v1121_v62 = vpop.f32.mrb[14].mxu0 }
 0x1d3   :  { %1804 = vst [vmem:[#allocation2 + $0x108] sm:$0x1] %v1609_v2  ;;  %v1424_v8 = vmax.f32 %v1117_v25, 0.0  ;;  %v9021_v7 = vpack.c.bf16 %v7967_v28, %v7965_v27  ;;  %v9022_v13 = vpack.c.bf16 %v7971_v30, %v7969_v29  ;;  %1801 = vst [vmem:[#allocation2 + $0xf0] sm:$0xff] %v1612_v22  ;;  %v1614_v60 = vsel %vm1578_vm2, %v1606_v18, %v1613_v47  ;;  %v8267_v28 = vld [vmem:[#allocation6 + $0xec8] sm:$0xff]  ;;  %v1123_v24 = vpop.f32.mrb[15].mxu0 }
 0x1d4   :  { %1800 = vst [vmem:[#allocation2 + $0xe8] sm:$0xff] %v8253_v53  ;;  %1806 = vst [vmem:[#allocation2 + $0x118] sm:$0x1] %v1613_v47  ;;  %v1615_v59 = vrot.slane %v1423_v21, 7  ;;  %v1426_v55 = vmax.f32 %v1278_v5, 0.0  ;;  %2906 = vmatmul.mubr.f32.gmra.mrb[36].mxu0 %v2370_v1  ;;  %3228 = vmatmul.mubr.f32.gmra.mrb[36].mxu1 %v2370_v1  ;;  %v2382_v27 = vrot.slane %v2200_v26, 1  ;;  %v9023_v2 = vpack.c.bf16 %v7975_v32, %v7973_v31 }
 0x1d5   :  { %6131 = vmatprep.subr.bf16.mxu0 %v9021_v7  ;;  %6259 = vmatprep.subr.bf16.mxu1 %v9022_v13  ;;  %1802 = vst [vmem:[#allocation2 + $0xf8] sm:$0xff] %v1614_v60  ;;  %v1617_v29 = vrot.slane %v1425_v23, 7  ;;  %v1616_v30 = vrot.slane %v1424_v8, 7  ;;  %v9024_v3 = vpack.c.bf16 %v7979_v34, %v7977_v33  ;;  %v2380_v18 = vrot.slane %v2199_v19, 1  ;;  %v8276_v15 = vld [vmem:[#allocation6 + $0xee8] sm:$0xff]  ;;  %v1282_v21 = vpop.f32.mrb[14].mxu1 }
 0x1d6   :  { %6133 = vmatpush1.bf16.msra.mxu0 %v9023_v2  ;;  %v2392_v56 = vrot.slane %v8253_v53, 1  ;;  %1807 = vst [vmem:[#allocation2 + $0x120] sm:$0xfe] %v1615_v59  ;;  %v1618_v63 = vrot.slane %v1426_v55, 7  ;;  %v1427_v47 = vmax.f32 %v1121_v62, 0.0  ;;  %v2383_v25 = vsel %vm2347_vm3, %v2372_v16, %v2382_v27  ;;  %v1284_v26 = vpop.f32.mrb[15].mxu1 }
 0x1d7   :  { %6261 = vmatpush1.bf16.msra.mxu1 %v9024_v3  ;;  %v9025_v31 = vpack.c.bf16 %v7983_v36, %v7981_v35  ;;  %v9026_v32 = vpack.c.bf16 %v7987_v38, %v7985_v37  ;;  %v2204_v33 = vld [vmem:[#allocation2 + $0xc8] sm:$0xfe]  ;;  %v6292_v34 = vpack.c.bf16 %v8263_v10, %v8261_v49  ;;  %1809 = vst [vmem:[#allocation2 + $0x130] sm:$0xfe] %v1617_v29  ;;  %1808 = vst [vmem:[#allocation2 + $0x128] sm:$0xfe] %v1616_v30 }
 0x1d8   :  { %v1429_v19 = vmax.f32 %v1282_v21, 0.0  ;;  %v1428_v1 = vmax.f32 %v1123_v24, 0.0  ;;  %2911 = vmatprep.mubr.f32.mxu0 %v2383_v25  ;;  %3233 = vmatprep.mubr.f32.mxu1 %v2383_v25  ;;  %v2381_v35 = vsel %vm2347_vm3, %v2369_v51, %v2380_v18  ;;  %v2391_v36 = vrot.slane %v2204_v33, 1  ;;  %v2203_v6 = vld [vmem:[#allocation2 + $0xc0] sm:$0xfe]  ;;  %v1127_v5 = vpop.f32.mrb[16].mxu0 }
 0x1d9   :  { %6135 = vmatprep.subr.bf16.mxu0 %v9025_v31  ;;  %6263 = vmatprep.subr.bf16.mxu1 %v9026_v32  ;;  %1810 = vst [vmem:[#allocation2 + $0x138] sm:$0xfe] %v1618_v63  ;;  %v1619_v37 = vrot.slane %v1427_v47, 7  ;;  %v1430_v38 = vmax.f32 %v1284_v26, 0.0  ;;  %v2388_v16 = vrot.slane %v2203_v6, 1  ;;  %v2389_v22 = vrot.slane %v8245_v58, 1 }
 0x1da   :  { %2912 = vmatmul.mubr.f32.gmra.mrb[38].mxu0 %v2381_v35  ;;  %3234 = vmatmul.mubr.f32.gmra.mrb[38].mxu1 %v2381_v35  ;;  %v1623_v23 = vrot.slane %v1429_v19, 7  ;;  %v1621_v8 = vrot.slane %v1428_v1, 7  ;;  %v9027_v7 = vpack.c.bf16 %v7991_v40, %v7989_v39  ;;  %v9028_v52 = vpack.c.bf16 %v7995_v42, %v7993_v41  ;;  %v2207_v13 = vld [vmem:[#allocation2 + $0x100] sm:$0x1]  ;;  %v1288_v39 = vpop.f32.mrb[16].mxu1  ;;  %v1129_v40 = vpop.f32.mrb[17].mxu0 }
 0x1db   :  { %v2393_v51 = vsel %vm2347_vm3, %v2391_v36, %v2392_v56  ;;  %v6166_v60 = vpack.c.bf16 %v8276_v15, %v8267_v28  ;;  %v8305_v55 = vsel %vm1578_vm2, %v1615_v59, %v1619_v37  ;;  %1815 = vst [vmem:[#allocation2 + $0x160] sm:$0x1] %v1619_v37  ;;  %v1625_v27 = vrot.slane %v1430_v38, 7  ;;  %v2208_v42 = vld [vmem:[#allocation2 + $0x108] sm:$0x1]  ;;  %v1290_v47 = vpop.f32.mrb[17].mxu1 }
 0x1dc   :  { %6137 = vmatpush1.bf16.msra.mxu0 %v9027_v7  ;;  %6265 = vmatpush1.bf16.msra.mxu1 %v9028_v52  ;;  %v1431_v62 = vmax.f32 %v1127_v5, 0.0  ;;  %v2390_v41 = vsel %vm2347_vm3, %v2388_v16, %v2389_v22  ;;  %1811 = vst [vmem:[#allocation2 + $0x140] sm:$0xff] %v8305_v55  ;;  %v1624_v2 = vsel %vm1578_vm2, %v1617_v29, %v1623_v23  ;;  %1817 = vst [vmem:[#allocation2 + $0x170] sm:$0x1] %v1623_v23  ;;  %v8321_v25 = vld [vmem:[#allocation6 + $0xed8] sm:$0xff]  ;;  %v1133_v33 = vpop.f32.mrb[18].mxu0 }
 0x1dd   :  { %2917 = vmatprep.mubr.f32.mxu0 %v2393_v51  ;;  %3239 = vmatprep.mubr.f32.mxu1 %v2393_v51  ;;  %v8313_v59 = vsel %vm1578_vm2, %v1616_v30, %v1621_v8  ;;  %1816 = vst [vmem:[#allocation2 + $0x168] sm:$0x1] %v1621_v8  ;;  %v1433_v3 = vmax.f32 %v1288_v39, 0.0  ;;  %v1432_v18 = vmax.f32 %v1129_v40, 0.0  ;;  %v9029_v21 = vpack.c.bf16 %v7999_v44, %v7997_v43  ;;  %v8323_v31 = vld [vmem:[#allocation6 + $0xef8] sm:$0xff]  ;;  %v8327_v44 = vld [vmem:[#allocation6 + $0xec0] sm:$0xff] }
 0x1de   :  { %v9030_v24 = vpack.c.bf16 %v8003_v46, %v8001_v45  ;;  %1813 = vst [vmem:[#allocation2 + $0x150] sm:$0xff] %v1624_v2  ;;  %1812 = vst [vmem:[#allocation2 + $0x148] sm:$0xff] %v8313_v59  ;;  %v1626_v29 = vsel %vm1578_vm2, %v1618_v63, %v1625_v27  ;;  %v1627_v30 = vrot.slane %v1431_v62, 7  ;;  %v1434_v32 = vmax.f32 %v1290_v47, 0.0  ;;  %2918 = vmatmul.mubr.f32.gmra.mrb[40].mxu0 %v2390_v41  ;;  %v9031_v19 = vld [vmem:[#allocation14_spill] sm:$0xff]  ;;  %v9033_v26 = vld [vmem:[#allocation16_spill] sm:$0xff] }
 0x1df   :  { %6139 = vmatprep.subr.bf16.mxu0 %v9029_v21  ;;  %1818 = vst [vmem:[#allocation2 + $0x178] sm:$0x1] %v1625_v27  ;;  %3240 = vmatmul.mubr.f32.gmra.mrb[40].mxu1 %v2390_v41  ;;  %v2402_v43 = vrot.slane %v2208_v42, 1  ;;  %1814 = vst [vmem:[#allocation2 + $0x158] sm:$0xff] %v1626_v29  ;;  %v1629_v45 = vrot.slane %v1433_v3, 7  ;;  %v1628_v46 = vrot.slane %v1432_v18, 7  ;;  %v9032_v1 = vpack.c.bf16 %v8007_v48, %v9031_v19 }
 0x1e0   :  { %6267 = vmatprep.subr.bf16.mxu1 %v9030_v24  ;;  %v9034_v35 = vld [vmem:[#allocation15_spill] sm:$0xff]  ;;  %v2400_v63 = vrot.slane %v2207_v13, 1  ;;  %v2412_v6 = vrot.slane %v8313_v59, 1  ;;  %v8336_v37 = vld [vmem:[#allocation6 + $0xee0] sm:$0xff]  ;;  %1819 = vst [vmem:[#allocation2 + $0x180] sm:$0xfe] %v1627_v30  ;;  %v6294_v39 = vpack.c.bf16 %v8323_v31, %v8321_v25 }
 0x1e1   :  { %6141 = vmatpush1.bf16.msra.mxu0 %v9032_v1  ;;  %v9035_v36 = vpack.c.bf16 %v9033_v26, %v9034_v35  ;;  %v1630_v38 = vrot.slane %v1434_v32, 7  ;;  %v1435_v16 = vmax.f32 %v1133_v33, 0.0  ;;  %v1294_v23 = vpop.f32.mrb[18].mxu1  ;;  %v1135_v8 = vpop.f32.mrb[19].mxu0  ;;  %v2403_v5 = vsel %vm2347_vm3, %v2392_v56, %v2402_v43  ;;  %v9036_v48 = vld [vmem:[#allocation18_spill] sm:$0xff]  ;;  %v9037_v7 = vld [vmem:[#allocation17_spill] sm:$0xff] }
 0x1e2   :  { %v9038_v52 = vpack.c.bf16 %v9036_v48, %v9037_v7  ;;  %v9039_v51 = vld [vmem:[#allocation20_spill] sm:$0xff]  ;;  %v9040_v27 = vld [vmem:[#allocation19_spill] sm:$0xff]  ;;  %1821 = vst [vmem:[#allocation2 + $0x190] sm:$0xfe] %v1629_v45  ;;  %1820 = vst [vmem:[#allocation2 + $0x188] sm:$0xfe] %v1628_v46  ;;  %2923 = vmatprep.mubr.f32.mxu0 %v2403_v5  ;;  %3245 = vmatprep.mubr.f32.mxu1 %v2403_v5  ;;  %v2401_v53 = vsel %vm2347_vm3, %v2389_v22, %v2400_v63 }
 0x1e3   :  { %6269 = vmatpush1.bf16.msra.mxu1 %v9035_v36  ;;  %v9041_v13 = vpack.c.bf16 %v9039_v51, %v9040_v27  ;;  %v2212_v62 = vld [vmem:[#allocation2 + $0x128] sm:$0xfe]  ;;  %v1437_v40 = vmax.f32 %v1294_v23, 0.0  ;;  %v1436_v41 = vmax.f32 %v1135_v8, 0.0  ;;  %v1296_v42 = vpop.f32.mrb[19].mxu1  ;;  %v1631_v3 = vrot.slane %v1435_v16, 7  ;;  %2924 = vmatmul.mubr.f32.gmra.mrb[42].mxu0 %v2401_v53 }
 0x1e4   :  { %6143 = vmatprep.subr.bf16.mxu0 %v9038_v52  ;;  %v2411_v56 = vrot.slane %v2212_v62, 1  ;;  %v2211_v2 = vld [vmem:[#allocation2 + $0x120] sm:$0xfe]  ;;  %1822 = vst [vmem:[#allocation2 + $0x198] sm:$0xfe] %v1630_v38  ;;  %v1438_v18 = vmax.f32 %v1296_v42, 0.0  ;;  %3246 = vmatmul.mubr.f32.gmra.mrb[42].mxu1 %v2401_v53  ;;  %v6168_v36 = vpack.c.bf16 %v8336_v37, %v8327_v44 }
 0x1e5   :  { %6271 = vmatprep.subr.bf16.mxu1 %v9041_v13  ;;  %v2408_v47 = vrot.slane %v2211_v2, 1  ;;  %v2409_v21 = vrot.slane %v8305_v55, 1  ;;  %v1635_v24 = vrot.slane %v1437_v40, 7  ;;  %v1633_v29 = vrot.slane %v1436_v41, 7  ;;  %v1139_v32 = vpop.f32.mrb[20].mxu0  ;;  %v9042_v43 = vld [vmem:[#allocation22_spill] sm:$0xff] }
 0x1e6   :  { %v9043_v33 = vld [vmem:[#allocation21_spill] sm:$0xff]  ;;  %v9045_v58 = vld [vmem:[#allocation24_spill] sm:$0xff]  ;;  %v9046_v1 = vld [vmem:[#allocation23_spill] sm:$0xff]  ;;  %v2413_v26 = vsel %vm2347_vm3, %v2411_v56, %v2412_v6  ;;  %v8365_v63 = vsel %vm1578_vm2, %v1627_v30, %v1631_v3  ;;  %1827 = vst [vmem:[#allocation2 + $0x1c0] sm:$0x1] %v1631_v3  ;;  %v1637_v16 = vrot.slane %v1438_v18, 7 }
 0x1e7   :  { %v9044_v19 = vpack.c.bf16 %v9042_v43, %v9043_v33  ;;  %v9047_v22 = vpack.c.bf16 %v9045_v58, %v9046_v1  ;;  %v2215_v35 = vld [vmem:[#allocation2 + $0x160] sm:$0x1]  ;;  %v1439_v23 = vmax.f32 %v1139_v32, 0.0  ;;  %v1300_v8 = vpop.f32.mrb[20].mxu1  ;;  %v1141_v5 = vpop.f32.mrb[21].mxu0  ;;  %2929 = vmatprep.mubr.f32.mxu0 %v2413_v26  ;;  %3251 = vmatprep.mubr.f32.mxu1 %v2413_v26  ;;  %v2410_v48 = vsel %vm2347_vm3, %v2408_v47, %v2409_v21  ;;  %v9048_v62 = vld [vmem:[#allocation26_spill] sm:$0xff] }
 0x1e8   :  { %v2216_v7 = vld [vmem:[#allocation2 + $0x168] sm:$0x1]  ;;  %1823 = vst [vmem:[#allocation2 + $0x1a0] sm:$0xff] %v8365_v63  ;;  %v1636_v52 = vsel %vm1578_vm2, %v1629_v45, %v1635_v24  ;;  %1829 = vst [vmem:[#allocation2 + $0x1d0] sm:$0x1] %v1635_v24  ;;  %v8373_v30 = vsel %vm1578_vm2, %v1628_v46, %v1633_v29  ;;  %v1441_v51 = vmax.f32 %v1300_v8, 0.0  ;;  %v1638_v45 = vsel %vm1578_vm2, %v1630_v38, %v1637_v16 }
 0x1e9   :  { %6145 = vmatpush1.bf16.msra.mxu0 %v9044_v19  ;;  %6273 = vmatpush1.bf16.msra.mxu1 %v9047_v22  ;;  %1828 = vst [vmem:[#allocation2 + $0x1c8] sm:$0x1] %v1633_v29  ;;  %v1440_v27 = vmax.f32 %v1141_v5, 0.0  ;;  %v1302_v13 = vpop.f32.mrb[21].mxu1  ;;  %v9049_v40 = vld [vmem:[#allocation25_spill] sm:$0xff]  ;;  %v9051_v42 = vld [vmem:[#allocation28_spill] sm:$0xff] }
 0x1ea   :  { %v9050_v41 = vpack.c.bf16 %v9048_v62, %v9049_v40  ;;  %v9052_v53 = vld [vmem:[#allocation27_spill] sm:$0xff]  ;;  %1825 = vst [vmem:[#allocation2 + $0x1b0] sm:$0xff] %v1636_v52  ;;  %1824 = vst [vmem:[#allocation2 + $0x1a8] sm:$0xff] %v8373_v30  ;;  %v1639_v46 = vrot.slane %v1439_v23, 7  ;;  %v1442_v18 = vmax.f32 %v1302_v13, 0.0  ;;  %2930 = vmatmul.mubr.f32.gmra.mrb[44].mxu0 %v2410_v48  ;;  %3252 = vmatmul.mubr.f32.gmra.mrb[44].mxu1 %v2410_v48  ;;  %v2422_v47 = vrot.slane %v2216_v7, 1 }
 0x1eb   :  { %v9053_v56 = vpack.c.bf16 %v9051_v42, %v9052_v53  ;;  %v8381_v2 = vld [vmem:[#allocation6 + $0xed0] sm:$0xff]  ;;  %1830 = vst [vmem:[#allocation2 + $0x1d8] sm:$0x1] %v1637_v16  ;;  %v8387_v24 = vld [vmem:[#allocation6 + $0xf08] sm:$0xff]  ;;  %1826 = vst [vmem:[#allocation2 + $0x1b8] sm:$0xff] %v1638_v45  ;;  %v1641_v29 = vrot.slane %v1441_v51, 7 }
 0x1ec   :  { %6147 = vmatprep.subr.bf16.mxu0 %v9050_v41  ;;  %v8383_v3 = vld [vmem:[#allocation6 + $0xef0] sm:$0xff]  ;;  %v1640_v32 = vrot.slane %v1440_v27, 7  ;;  %v1145_v43 = vpop.f32.mrb[22].mxu0  ;;  %v9054_v33 = vld [vmem:[#allocation30_spill] sm:$0xff]  ;;  %v9055_v19 = vld [vmem:[#allocation29_spill] sm:$0xff]  ;;  %v2420_v38 = vrot.slane %v2215_v35, 1  ;;  %v2423_v52 = vsel %vm2347_vm3, %v2412_v6, %v2422_v47 }
 0x1ed   :  { %6275 = vmatprep.subr.bf16.mxu1 %v9053_v56  ;;  %v9056_v58 = vpack.c.bf16 %v9054_v33, %v9055_v19  ;;  %v9057_v1 = vld [vmem:[#allocation32_spill] sm:$0xff]  ;;  %v9058_v22 = vld [vmem:[#allocation31_spill] sm:$0xff]  ;;  %v2432_v16 = vrot.slane %v8373_v30, 1  ;;  %1831 = vst [vmem:[#allocation2 + $0x1e0] sm:$0xfe] %v1639_v46  ;;  %v1642_v8 = vrot.slane %v1442_v18, 7  ;;  %v6296_v42 = vpack.c.bf16 %v8383_v3, %v8381_v2  ;;  %2935 = vmatprep.mubr.f32.mxu0 %v2423_v52 }
 0x1ee   :  { %v9059_v26 = vpack.c.bf16 %v9057_v1, %v9058_v22  ;;  %v8396_v23 = vld [vmem:[#allocation6 + $0xf28] sm:$0xff]  ;;  %v1443_v5 = vmax.f32 %v1145_v43, 0.0  ;;  %v1306_v48 = vpop.f32.mrb[22].mxu1  ;;  %v1147_v7 = vpop.f32.mrb[23].mxu0  ;;  %v9061_v27 = vld [vmem:[#allocation33_spill] sm:$0xff]  ;;  %v9063_v62 = vld [vmem:[#allocation36_spill] sm:$0xff]  ;;  %3257 = vmatprep.mubr.f32.mxu1 %v2423_v52  ;;  %v2421_v59 = vsel %vm2347_vm3, %v2409_v21, %v2420_v38 }
 0x1ef   :  { %6149 = vmatpush1.bf16.msra.mxu0 %v9056_v58  ;;  %v9060_v51 = vld [vmem:[#allocation34_spill] sm:$0xff]  ;;  %v9064_v40 = vld [vmem:[#allocation35_spill] sm:$0xff]  ;;  %1833 = vst [vmem:[#allocation2 + $0x1f0] sm:$0xfe] %v1641_v29  ;;  %1832 = vst [vmem:[#allocation2 + $0x1e8] sm:$0xfe] %v1640_v32  ;;  %3258 = vmatmul.mubr.f32.gmra.mrb[46].mxu1 %v2421_v59 }
 0x1f0   :  { %6277 = vmatpush1.bf16.msra.mxu1 %v9059_v26  ;;  %v9062_v13 = vpack.c.bf16 %v9060_v51, %v9061_v27  ;;  %v9065_v35 = vpack.c.bf16 %v9063_v62, %v9064_v40  ;;  %v2220_v41 = vld [vmem:[#allocation2 + $0x188] sm:$0xfe]  ;;  %v1445_v53 = vmax.f32 %v1306_v48, 0.0  ;;  %v1444_v56 = vmax.f32 %v1147_v7, 0.0  ;;  %v1308_v45 = vpop.f32.mrb[23].mxu1  ;;  %2936 = vmatmul.mubr.f32.gmra.mrb[46].mxu0 %v2421_v59  ;;  %v1151_v22 = vpop.f32.mrb[24].mxu0 }
 0x1f1   :  { %v2431_v6 = vrot.slane %v2220_v41, 1  ;;  %v2219_v18 = vld [vmem:[#allocation2 + $0x180] sm:$0xfe]  ;;  %1834 = vst [vmem:[#allocation2 + $0x1f8] sm:$0xfe] %v1642_v8  ;;  %v1643_v47 = vrot.slane %v1443_v5, 7  ;;  %v6170_v51 = vpack.c.bf16 %v8396_v23, %v8387_v24 }
 0x1f2   :  { %6151 = vmatprep.subr.bf16.mxu0 %v9062_v13  ;;  %6279 = vmatprep.subr.bf16.mxu1 %v9065_v35  ;;  %v1446_v43 = vmax.f32 %v1308_v45, 0.0  ;;  %v2428_v33 = vrot.slane %v2219_v18, 1  ;;  %v2429_v19 = vrot.slane %v8365_v63, 1  ;;  %v1647_v58 = vrot.slane %v1445_v53, 7  ;;  %v9066_v26 = vld [vmem:[#allocation38_spill] sm:$0xff]  ;;  %v9067_v48 = vld [vmem:[#allocation37_spill] sm:$0xff] }
 0x1f3   :  { %v1645_v1 = vrot.slane %v1444_v56, 7  ;;  %v9068_v7 = vpack.c.bf16 %v9066_v26, %v9067_v48  ;;  %v9069_v55 = vld [vmem:[#allocation40_spill] sm:$0xff]  ;;  %v9070_v52 = vld [vmem:[#allocation39_spill] sm:$0xff]  ;;  %v2433_v38 = vsel %vm2347_vm3, %v2431_v6, %v2432_v16  ;;  %v2223_v5 = vld [vmem:[#allocation2 + $0x1c0] sm:$0x1]  ;;  %v8425_v27 = vsel %vm1578_vm2, %v1639_v46, %v1643_v47  ;;  %v1312_v40 = vpop.f32.mrb[24].mxu1 }
 0x1f4   :  { %v9071_v21 = vpack.c.bf16 %v9069_v55, %v9070_v52  ;;  %1839 = vst [vmem:[#allocation2 + $0x220] sm:$0x1] %v1643_v47  ;;  %v1649_v13 = vrot.slane %v1446_v43, 7  ;;  %v1447_v62 = vmax.f32 %v1151_v22, 0.0  ;;  %v1153_v35 = vpop.f32.mrb[25].mxu0  ;;  %2941 = vmatprep.mubr.f32.mxu0 %v2433_v38  ;;  %3263 = vmatprep.mubr.f32.mxu1 %v2433_v38  ;;  %v2430_v41 = vsel %vm2347_vm3, %v2428_v33, %v2429_v19  ;;  %v1314_v6 = vpop.f32.mrb[25].mxu1 }
 0x1f5   :  { %6153 = vmatpush1.bf16.msra.mxu0 %v9068_v7  ;;  %v2224_v53 = vld [vmem:[#allocation2 + $0x1c8] sm:$0x1]  ;;  %1835 = vst [vmem:[#allocation2 + $0x200] sm:$0xff] %v8425_v27  ;;  %v1648_v56 = vsel %vm1578_vm2, %v1641_v29, %v1647_v58  ;;  %1841 = vst [vmem:[#allocation2 + $0x230] sm:$0x1] %v1647_v58  ;;  %v8433_v46 = vsel %vm1578_vm2, %v1640_v32, %v1645_v1  ;;  %v1449_v45 = vmax.f32 %v1312_v40, 0.0  ;;  %3264 = vmatmul.mubr.f32.gmra.mrb[48].mxu1 %v2430_v41 }
 0x1f6   :  { %6281 = vmatpush1.bf16.msra.mxu1 %v9071_v21  ;;  %1840 = vst [vmem:[#allocation2 + $0x228] sm:$0x1] %v1645_v1  ;;  %v1448_v59 = vmax.f32 %v1153_v35, 0.0  ;;  %v9072_v18 = vld [vmem:[#allocation42_spill] sm:$0xff]  ;;  %v9073_v47 = vld [vmem:[#allocation41_spill] sm:$0xff]  ;;  %v9075_v22 = vld [vmem:[#allocation44_spill] sm:$0xff]  ;;  %v1650_v29 = vsel %vm1578_vm2, %v1642_v8, %v1649_v13  ;;  %2942 = vmatmul.mubr.f32.gmra.mrb[48].mxu0 %v2430_v41  ;;  %v9091_v63 = vpack.c.bf16 %v8169_v50, %v8163_v57 }
 0x1f7   :  { %v9074_v43 = vpack.c.bf16 %v9072_v18, %v9073_v47  ;;  %v9076_v26 = vld [vmem:[#allocation43_spill] sm:$0xff]  ;;  %v8441_v48 = vld [vmem:[#allocation6 + $0xf18] sm:$0xff]  ;;  %1837 = vst [vmem:[#allocation2 + $0x210] sm:$0xff] %v1648_v56  ;;  %1836 = vst [vmem:[#allocation2 + $0x208] sm:$0xff] %v8433_v46  ;;  %v1651_v32 = vrot.slane %v1447_v62, 7  ;;  %v1450_v58 = vmax.f32 %v1314_v6, 0.0 }
 0x1f8   :  { %v9077_v33 = vpack.c.bf16 %v9075_v22, %v9076_v26  ;;  %v8443_v7 = vld [vmem:[#allocation6 + $0xf38] sm:$0xff]  ;;  %1842 = vst [vmem:[#allocation2 + $0x238] sm:$0x1] %v1649_v13  ;;  %v2442_v1 = vrot.slane %v2224_v53, 1  ;;  %v8447_v55 = vld [vmem:[#allocation6 + $0xf00] sm:$0xff]  ;;  %1838 = vst [vmem:[#allocation2 + $0x218] sm:$0xff] %v1650_v29 }
 0x1f9   :  { %6155 = vmatprep.subr.bf16.mxu0 %v9074_v43  ;;  %v1653_v52 = vrot.slane %v1449_v45, 7  ;;  %v1652_v21 = vrot.slane %v1448_v59, 7  ;;  %v1157_v38 = vpop.f32.mrb[26].mxu0  ;;  %v9078_v40 = vld [vmem:[#allocation46_spill] sm:$0xff]  ;;  %v9079_v35 = vld [vmem:[#allocation45_spill] sm:$0xff]  ;;  %v9081_v56 = vld [vmem:[#allocation48_spill] sm:$0xff] }
 0x1fa   :  { %6283 = vmatprep.subr.bf16.mxu1 %v9077_v33  ;;  %v9080_v18 = vpack.c.bf16 %v9078_v40, %v9079_v35  ;;  %v9082_v47 = vld [vmem:[#allocation47_spill] sm:$0xff]  ;;  %v2440_v8 = vrot.slane %v2223_v5, 1  ;;  %v2452_v13 = vrot.slane %v8433_v46, 1  ;;  %v8456_v62 = vld [vmem:[#allocation6 + $0xf20] sm:$0xff]  ;;  %1843 = vst [vmem:[#allocation2 + $0x240] sm:$0xfe] %v1651_v32  ;;  %v2443_v59 = vsel %vm2347_vm3, %v2432_v16, %v2442_v1 }
 0x1fb   :  { %v9083_v43 = vpack.c.bf16 %v9081_v56, %v9082_v47  ;;  %v1654_v41 = vrot.slane %v1450_v58, 7  ;;  %v1451_v53 = vmax.f32 %v1157_v38, 0.0  ;;  %v1318_v6 = vpop.f32.mrb[26].mxu1  ;;  %v1159_v45 = vpop.f32.mrb[27].mxu0  ;;  %v9084_v22 = vld [vmem:[#allocation50_spill] sm:$0xff]  ;;  %v9085_v26 = vld [vmem:[#allocation49_spill] sm:$0xff]  ;;  %v6298_v35 = vpack.c.bf16 %v8443_v7, %v8441_v48  ;;  %2947 = vmatprep.mubr.f32.mxu0 %v2443_v59  ;;  %3269 = vmatprep.mubr.f32.mxu1 %v2443_v59 }
 0x1fc   :  { %6157 = vmatpush1.bf16.msra.mxu0 %v9080_v18  ;;  %v9086_v33 = vpack.c.bf16 %v9084_v22, %v9085_v26  ;;  %v9087_v29 = vld [vmem:[#allocation51_spill] sm:$0xff]  ;;  %1845 = vst [vmem:[#allocation2 + $0x250] sm:$0xfe] %v1653_v52  ;;  %1844 = vst [vmem:[#allocation2 + $0x248] sm:$0xfe] %v1652_v21  ;;  %v1453_v58 = vmax.f32 %v1318_v6, 0.0  ;;  %v2441_v30 = vsel %vm2347_vm3, %v2429_v19, %v2440_v8 }
 0x1fd   :  { %6285 = vmatpush1.bf16.msra.mxu1 %v9083_v43  ;;  %v9088_v5 = vpack.c.bf16 %v8152_v12, %v9087_v29  ;;  %v2228_v40 = vld [vmem:[#allocation2 + $0x1e8] sm:$0xfe]  ;;  %v1452_v38 = vmax.f32 %v1159_v45, 0.0  ;;  %v1320_v18 = vpop.f32.mrb[27].mxu1  ;;  %v2227_v1 = vld [vmem:[#allocation2 + $0x1e0] sm:$0xfe]  ;;  %2948 = vmatmul.mubr.f32.gmra.mrb[50].mxu0 %v2441_v30 }
 0x1fe   :  { %6159 = vmatprep.subr.bf16.mxu0 %v9086_v33  ;;  %v2451_v16 = vrot.slane %v2228_v40, 1  ;;  %1846 = vst [vmem:[#allocation2 + $0x258] sm:$0xfe] %v1654_v41  ;;  %v1655_v12 = vrot.slane %v1451_v53, 7  ;;  %v1454_v56 = vmax.f32 %v1320_v18, 0.0  ;;  %3270 = vmatmul.mubr.f32.gmra.mrb[50].mxu1 %v2441_v30  ;;  %v2448_v47 = vrot.slane %v2227_v1, 1 }
 0x1ff   :  { %6287 = vmatprep.subr.bf16.mxu1 %v9088_v5  ;;  %v2449_v43 = vrot.slane %v8425_v27, 1  ;;  %v1659_v22 = vrot.slane %v1453_v58, 7  ;;  %v1657_v6 = vrot.slane %v1452_v38, 7  ;;  %v1163_v45 = vpop.f32.mrb[28].mxu0  ;;  %v9089_v26 = vld [vmem:[#allocation52_spill] sm:$0xff]  ;;  %v6172_v53 = vpack.c.bf16 %v8456_v62, %v8447_v55  ;;  %v1324_v5 = vpop.f32.mrb[28].mxu1 }
 0x200   :  { %v9090_v59 = vpack.c.bf16 %v8161_v61, %v9089_v26  ;;  %v2453_v19 = vsel %vm2347_vm3, %v2451_v16, %v2452_v13  ;;  %v8482_v8 = vld [vmem:[#allocation2 + $0x220] sm:$0x1]  ;;  %v8487_v33 = vsel %vm1578_vm2, %v1651_v32, %v1655_v12  ;;  %1851 = vst [vmem:[#allocation2 + $0x280] sm:$0x1] %v1655_v12  ;;  %v1661_v29 = vrot.slane %v1454_v56, 7  ;;  %v1165_v40 = vpop.f32.mrb[29].mxu0 }
 0x201   :  { %6289 = vmatpush1.bf16.msra.mxu1 %v9091_v63  ;;  %v1455_v61 = vmax.f32 %v1163_v45, 0.0  ;;  %2953 = vmatprep.mubr.f32.mxu0 %v2453_v19  ;;  %v2450_v57 = vsel %vm2347_vm3, %v2448_v47, %v2449_v43  ;;  %v2232_v50 = vld [vmem:[#allocation2 + $0x228] sm:$0x1]  ;;  %1847 = vst [vmem:[#allocation2 + $0x260] sm:$0xff] %v8487_v33  ;;  %v1660_v58 = vsel %vm1578_vm2, %v1653_v52, %v1659_v22  ;;  %1853 = vst [vmem:[#allocation2 + $0x290] sm:$0x1] %v1659_v22 }
 0x202   :  { %6161 = vmatpush1.bf16.msra.mxu0 %v9090_v59  ;;  %3275 = vmatprep.mubr.f32.mxu1 %v2453_v19  ;;  %v8495_v32 = vsel %vm1578_vm2, %v1652_v21, %v1657_v6  ;;  %1852 = vst [vmem:[#allocation2 + $0x288] sm:$0x1] %v1657_v6  ;;  %v1457_v38 = vmax.f32 %v1324_v5, 0.0  ;;  %v1456_v18 = vmax.f32 %v1165_v40, 0.0  ;;  %v1326_v30 = vpop.f32.mrb[29].mxu1  ;;  %v9092_v16 = vpack.c.bf16 %v8173_v14, %v8171_v54  ;;  %v8503_v1 = vld [vmem:[#allocation6 + $0xf10] sm:$0xff] }
 0x203   :  { %6291 = vmatprep.subr.bf16.mxu1 %v6290_v20  ;;  %v8505_v12 = vld [vmem:[#allocation6 + $0xf30] sm:$0xff]  ;;  %1849 = vst [vmem:[#allocation2 + $0x270] sm:$0xff] %v1660_v58  ;;  %1848 = vst [vmem:[#allocation2 + $0x268] sm:$0xff] %v8495_v32  ;;  %v1662_v52 = vsel %vm1578_vm2, %v1654_v41, %v1661_v29  ;;  %v1663_v21 = vrot.slane %v1455_v61, 7  ;;  %v1458_v56 = vmax.f32 %v1326_v30, 0.0  ;;  %2954 = vmatmul.mubr.f32.gmra.mrb[52].mxu0 %v2450_v57  ;;  %v2462_v54 = vrot.slane %v2232_v50, 1 }
 0x204   :  { %6163 = vmatprep.subr.bf16.mxu0 %v9092_v16  ;;  %1854 = vst [vmem:[#allocation2 + $0x298] sm:$0x1] %v1661_v29  ;;  %3276 = vmatmul.mubr.f32.gmra.mrb[52].mxu1 %v2450_v57  ;;  %v8509_v14 = vld [vmem:[#allocation6 + $0xf48] sm:$0xff]  ;;  %1850 = vst [vmem:[#allocation2 + $0x278] sm:$0xff] %v1662_v52  ;;  %v1665_v4 = vrot.slane %v1457_v38, 7  ;;  %v1664_v11 = vrot.slane %v1456_v18, 7 }
 0x205   :  { %v8511_v47 = vld [vmem:[#allocation6 + $0xf68] sm:$0xff]  ;;  %v1169_v20 = vpop.f32.mrb[30].mxu0  ;;  %6293 = vmatpush1.bf16.msra.mxu1 %v6292_v34  ;;  %v2460_v41 = vrot.slane %v8482_v8, 1  ;;  %v2472_v22 = vrot.slane %v8495_v32, 1  ;;  %v8521_v6 = vld [vmem:[#allocation6 + $0xf58] sm:$0xff]  ;;  %v1666_v26 = vrot.slane %v1458_v56, 7  ;;  %v2463_v9 = vsel %vm2347_vm3, %v2452_v13, %v2462_v54 }
 0x206   :  { %6165 = vmatpush1.bf16.msra.mxu0 %v6164_v0  ;;  %v8523_v45 = vld [vmem:[#allocation6 + $0xf78] sm:$0xff]  ;;  %1855 = vst [vmem:[#allocation2 + $0x2a0] sm:$0xfe] %v1663_v21  ;;  %v1459_v59 = vmax.f32 %v1169_v20, 0.0  ;;  %v1330_v63 = vpop.f32.mrb[30].mxu1  ;;  %v1171_v19 = vpop.f32.mrb[31].mxu0  ;;  %6295 = vmatprep.subr.bf16.mxu1 %v6294_v39  ;;  %v6300_v0 = vpack.c.bf16 %v8505_v12, %v8503_v1 }
 0x207   :  { %6167 = vmatprep.subr.bf16.mxu0 %v6166_v60  ;;  %v2236_v17 = vld [vmem:[#allocation2 + $0x248] sm:$0xfe]  ;;  %1857 = vst [vmem:[#allocation2 + $0x2b0] sm:$0xfe] %v1665_v4  ;;  %1856 = vst [vmem:[#allocation2 + $0x2a8] sm:$0xfe] %v1664_v11  ;;  %2959 = vmatprep.mubr.f32.mxu0 %v2463_v9  ;;  %v2461_v28 = vsel %vm2347_vm3, %v2449_v43, %v2460_v41  ;;  %v6302_v2 = vpack.c.bf16 %v8523_v45, %v8521_v6 }
 0x208   :  { %v1461_v49 = vmax.f32 %v1330_v63, 0.0  ;;  %v1460_v10 = vmax.f32 %v1171_v19, 0.0  ;;  %v1332_v34 = vpop.f32.mrb[31].mxu1  ;;  %3281 = vmatprep.mubr.f32.mxu1 %v2463_v9  ;;  %v2471_v15 = vrot.slane %v2236_v17, 1  ;;  %v2235_v60 = vld [vmem:[#allocation2 + $0x240] sm:$0xfe]  ;;  %2960 = vmatmul.mubr.f32.gmra.mrb[54].mxu0 %v2461_v28 }
 0x209   :  { %1858 = vst [vmem:[#allocation2 + $0x2b8] sm:$0xfe] %v1666_v26  ;;  %v1667_v25 = vrot.slane %v1459_v59, 7  ;;  %v1462_v31 = vmax.f32 %v1332_v34, 0.0  ;;  %3282 = vmatmul.mubr.f32.gmra.mrb[54].mxu1 %v2461_v28  ;;  %v2468_v39 = vrot.slane %v2235_v60, 1  ;;  %v2469_v46 = vrot.slane %v8487_v33, 1 }
 0x20a   :  { %v8540_v13 = vld [vmem:[#allocation6 + $0xf40] sm:$0xff]  ;;  %v1671_v8 = vrot.slane %v1461_v49, 7  ;;  %v1669_v29 = vrot.slane %v1460_v10, 7  ;;  %6169 = vmatpush1.bf16.msra.mxu0 %v6168_v36  ;;  %6297 = vmatpush1.bf16.msra.mxu1 %v6296_v42  ;;  %v2473_v27 = vsel %vm2347_vm3, %v2471_v15, %v2472_v22  ;;  %v2239_v43 = vld [vmem:[#allocation2 + $0x280] sm:$0x1]  ;;  %v6174_v33 = vpack.c.bf16 %v8511_v47, %v8509_v14  ;;  %v2807_v5 = vld [vmem:[#allocation6 + $0xf50] sm:$0xff] }
 0x20b   :  { %v2809_v61 = vld [vmem:[#allocation6 + $0xf60] sm:$0xff]  ;;  %v8554_v40 = vsel %vm1578_vm2, %v1663_v21, %v1667_v25  ;;  %1863 = vst [vmem:[#allocation2 + $0x2e0] sm:$0x1] %v1667_v25  ;;  %v1673_v44 = vrot.slane %v1462_v31, 7  ;;  %2965 = vmatprep.mubr.f32.mxu0 %v2473_v27  ;;  %3287 = vmatprep.mubr.f32.mxu1 %v2473_v27  ;;  %v2470_v37 = vsel %vm2347_vm3, %v2468_v39, %v2469_v46  ;;  %v2811_v3 = vld [vmem:[#allocation6 + $0xf70] sm:$0xff]  ;;  %v8559_v42 = vld [vmem:[#allocation6 + $0xf88] sm:$0xff] }
 0x20c   :  { %v2240_v36 = vld [vmem:[#allocation2 + $0x288] sm:$0x1]  ;;  %1859 = vst [vmem:[#allocation2 + $0x2c0] sm:$0xff] %v8554_v40  ;;  %v1672_v57 = vsel %vm1578_vm2, %v1665_v4, %v1671_v8  ;;  %1865 = vst [vmem:[#allocation2 + $0x2f0] sm:$0x1] %v1671_v8  ;;  %v8564_v50 = vsel %vm1578_vm2, %v1664_v11, %v1669_v29  ;;  %6171 = vmatprep.subr.bf16.mxu0 %v6170_v51  ;;  %6299 = vmatprep.subr.bf16.mxu1 %v6298_v35  ;;  %v2480_v38 = vrot.slane %v2239_v43, 1 }
 0x20d   :  { %1864 = vst [vmem:[#allocation2 + $0x2e8] sm:$0x1] %v1669_v29  ;;  %v2482_v58 = vrot.slane %v2240_v36, 1  ;;  %v2818_v18 = vld [vmem:[#allocation6 + $0xfa8] sm:$0xff]  ;;  %v2816_v30 = vld [vmem:[#allocation6 + $0xf98] sm:$0xff]  ;;  %1861 = vst [vmem:[#allocation2 + $0x2d0] sm:$0xff] %v1672_v57  ;;  %v1674_v1 = vsel %vm1578_vm2, %v1666_v26, %v1673_v44  ;;  %2966 = vmatmul.mubr.f32.gmra.mrb[56].mxu0 %v2470_v37  ;;  %3288 = vmatmul.mubr.f32.gmra.mrb[56].mxu1 %v2470_v37  ;;  %v6176_v23 = vpack.c.bf16 %v2809_v61, %v8540_v13 }
 0x20e   :  { %v2820_v16 = vld [vmem:[#allocation6 + $0xfb8] sm:$0xff]  ;;  %1860 = vst [vmem:[#allocation2 + $0x2c8] sm:$0xff] %v8564_v50  ;;  %1866 = vst [vmem:[#allocation2 + $0x2f8] sm:$0x1] %v1673_v44  ;;  %6173 = vmatpush1.bf16.msra.mxu0 %v6172_v53  ;;  %6301 = vmatpush1.bf16.msra.mxu1 %v6300_v0  ;;  %v6304_v51 = vpack.c.bf16 %v2811_v3, %v2807_v5  ;;  %v2243_v48 = vld [vmem:[#allocation2 + $0x2a0] sm:$0xfe]  ;;  %v6178_v52 = vpack.c.bf16 %v2818_v18, %v8559_v42 }
 0x20f   :  { %1862 = vst [vmem:[#allocation2 + $0x2d8] sm:$0xff] %v1674_v1  ;;  %v2483_v24 = vsel %vm2347_vm3, %v2472_v22, %v2482_v58  ;;  %v2813_v7 = vld [vmem:[#allocation6 + $0xf80] sm:$0xff]  ;;  %v2244_v12 = vld [vmem:[#allocation2 + $0x2a8] sm:$0xfe]  ;;  %v6306_v21 = vpack.c.bf16 %v2820_v16, %v2816_v30  ;;  %v2815_v32 = vld [vmem:[#allocation6 + $0xf90] sm:$0xff]  ;;  %v2481_v54 = vsel %vm2347_vm3, %v2469_v46, %v2480_v38  ;;  %6175 = vmatprep.subr.bf16.mxu0 %v6174_v33  ;;  %v2492_v62 = vrot.slane %v8564_v50, 1 }
 0x210   :  { %v2817_v35 = vld [vmem:[#allocation6 + $0xfa0] sm:$0xff]  ;;  %2971 = vmatprep.mubr.f32.mxu0 %v2483_v24  ;;  %3293 = vmatprep.mubr.f32.mxu1 %v2483_v24  ;;  %v2819_v56 = vld [vmem:[#allocation6 + $0xfb0] sm:$0xff]  ;;  %v2491_v55 = vrot.slane %v2244_v12, 1  ;;  %v2488_v53 = vrot.slane %v2243_v48, 1  ;;  %v2822_v14 = vld [vmem:[#allocation6 + $0xfc8] sm:$0xff]  ;;  %v2489_v22 = vrot.slane %v8554_v40, 1 }
 0x211   :  { %6303 = vmatprep.subr.bf16.mxu1 %v6302_v2  ;;  %v2826_v47 = vld [vmem:[#allocation6 + $0xfe8] sm:$0xff]  ;;  %2972 = vmatmul.mubr.f32.gmra.mrb[58].mxu0 %v2481_v54  ;;  %v2824_v4 = vld [vmem:[#allocation6 + $0xfd8] sm:$0xff]  ;;  %v2821_v20 = vld [vmem:[#allocation6 + $0xfc0] sm:$0xff]  ;;  %v6180_v6 = vpack.c.bf16 %v2817_v35, %v2813_v7  ;;  %v6308_v45 = vpack.c.bf16 %v2819_v56, %v2815_v32 }
 0x212   :  { %3294 = vmatmul.mubr.f32.gmra.mrb[58].mxu1 %v2481_v54  ;;  %v2828_v11 = vld [vmem:[#allocation6 + $0xff8] sm:$0xff]  ;;  %6177 = vmatpush1.bf16.msra.mxu0 %v6176_v23  ;;  %v2493_v41 = vsel %vm2347_vm3, %v2491_v55, %v2492_v62  ;;  %v2825_v59 = vld [vmem:[#allocation6 + $0xfe0] sm:$0xff]  ;;  %v6182_v9 = vpack.c.bf16 %v2826_v47, %v2822_v14  ;;  %v2823_v17 = vld [vmem:[#allocation6 + $0xfd0] sm:$0xff]  ;;  %v2490_v49 = vsel %vm2347_vm3, %v2488_v53, %v2489_v22 }
 0x213   :  { %6305 = vmatpush1.bf16.msra.mxu1 %v6304_v51  ;;  %v2247_v26 = vld [vmem:[#allocation2 + $0x2e0] sm:$0x1]  ;;  %v8586_v63 = vld [vmem:[#allocation2 + $0x38] sm:$0xff]  ;;  %2977 = vmatprep.mubr.f32.mxu0 %v2493_v41  ;;  %v6310_v28 = vpack.c.bf16 %v2828_v11, %v2824_v4  ;;  %v3828_v60 = vld [vmem:[#allocation6 + $0x1008] sm:$0xff]  ;;  %v6184_v29 = vpack.c.bf16 %v2825_v59, %v2821_v20 }
 0x214   :  { %3299 = vmatprep.mubr.f32.mxu1 %v2493_v41  ;;  %v2248_v19 = vld [vmem:[#allocation2 + $0x2e8] sm:$0x1]  ;;  %v2827_v0 = vld [vmem:[#allocation6 + $0xff0] sm:$0xff]  ;;  %6179 = vmatprep.subr.bf16.mxu0 %v6178_v52  ;;  %v2500_v34 = vrot.slane %v2247_v26, 1  ;;  %v2190_v15 = vld [vmem:[#allocation2 + $0x18] sm:$0xfe] }
 0x215   :  { %6307 = vmatprep.subr.bf16.mxu1 %v6306_v21  ;;  %v2502_v10 = vrot.slane %v2248_v19, 1  ;;  %v3832_v25 = vld [vmem:[#allocation6 + $0x1028] sm:$0xff]  ;;  %2978 = vmatmul.mubr.f32.gmra.mrb[60].mxu0 %v2490_v49  ;;  %v2358_v31 = vrot.slane %v8586_v63, 1  ;;  %v3830_v46 = vld [vmem:[#allocation6 + $0x1018] sm:$0xff]  ;;  %v2194_v27 = vld [vmem:[#allocation2 + $0x58] sm:$0x1]  ;;  %v6312_v33 = vpack.c.bf16 %v2827_v0, %v2823_v17 }
 0x216   :  { %3300 = vmatmul.mubr.f32.gmra.mrb[60].mxu1 %v2490_v49  ;;  %v8590_v39 = vld [vmem:[#allocation2 + $0x30] sm:$0xff]  ;;  %v3834_v13 = vld [vmem:[#allocation6 + $0x1038] sm:$0xff]  ;;  %6181 = vmatpush1.bf16.msra.mxu0 %v6180_v6  ;;  %v2357_v43 = vrot.slane %v2190_v15, 1  ;;  %v3827_v5 = vld [vmem:[#allocation6 + $0x1000] sm:$0xff]  ;;  %v2501_v40 = vsel %vm2347_vm3, %v2489_v22, %v2500_v34  ;;  %v6314_v37 = vpack.c.bf16 %v3832_v25, %v3828_v60  ;;  %v2366_v50 = vrot.slane %v2194_v27, 1 }
 0x217   :  { %v2503_v8 = vsel %vm2347_vm3, %v2492_v62, %v2502_v10  ;;  %6309 = vmatpush1.bf16.msra.mxu1 %v6308_v45  ;;  %v2189_v61 = vld [vmem:[#allocation2 + $0x10] sm:$0xfe]  ;;  %6183 = vmatprep.subr.bf16.mxu0 %v6182_v9  ;;  %v2355_v44 = vrot.slane %v8590_v39, 1  ;;  %v6442_v36 = vpack.c.bf16 %v3834_v13, %v3830_v46  ;;  %v3831_v2 = vld [vmem:[#allocation6 + $0x1020] sm:$0xff]  ;;  %v2193_v58 = vld [vmem:[#allocation2 + $0x50] sm:$0x1] }
 0x218   :  { %2983 = vmatprep.mubr.f32.mxu0 %v2503_v8  ;;  %3305 = vmatprep.mubr.f32.mxu1 %v2503_v8  ;;  %v3829_v3 = vld [vmem:[#allocation6 + $0x1010] sm:$0xff]  ;;  %v2359_v57 = vsel %vm2347_vm3, %v2357_v43, %v2358_v31  ;;  %v3836_v38 = vld [vmem:[#allocation6 + $0x1048] sm:$0xff]  ;;  %v2354_v30 = vrot.slane %v2189_v61, 1  ;;  %v3838_v16 = vld [vmem:[#allocation6 + $0x1058] sm:$0xff]  ;;  %v6316_v23 = vpack.c.bf16 %v3831_v2, %v3827_v5  ;;  %v2364_v12 = vrot.slane %v2193_v58, 1 }
 0x219   :  { %6311 = vmatprep.subr.bf16.mxu1 %v6310_v28  ;;  %v3833_v42 = vld [vmem:[#allocation6 + $0x1030] sm:$0xff]  ;;  %2984 = vmatmul.mubr.f32.gmra.mrb[62].mxu0 %v2501_v40  ;;  %v3840_v18 = vld [vmem:[#allocation6 + $0x1068] sm:$0xff]  ;;  %v3842_v1 = vld [vmem:[#allocation6 + $0x1078] sm:$0xff]  ;;  %v2367_v54 = vsel %vm2347_vm3, %v2358_v31, %v2366_v50 }
 0x21a   :  { %3306 = vmatmul.mubr.f32.gmra.mrb[62].mxu1 %v2501_v40  ;;  %6185 = vmatpush1.bf16.msra.mxu0 %v6184_v29  ;;  %v8596_v24 = vld [vmem:[#allocation2 + $0x98] sm:$0xff]  ;;  %v3835_v51 = vld [vmem:[#allocation6 + $0x1040] sm:$0xff]  ;;  %v2356_v7 = vsel %vm2347_vm3, %v2354_v30, %v2355_v44  ;;  %v6444_v35 = vpack.c.bf16 %v3833_v42, %v3829_v3  ;;  %v6318_v52 = vpack.c.bf16 %v3840_v18, %v3836_v38  ;;  %v8601_v53 = vld [vmem:[#allocation2 + $0x90] sm:$0xff] }
 0x21b   :  { %3054 = vmatprep.mubr.f32.mxu0 %v2359_v57  ;;  %6313 = vmatpush1.bf16.msra.mxu1 %v6312_v33  ;;  %v3839_v48 = vld [vmem:[#allocation6 + $0x1060] sm:$0xff]  ;;  %v2198_v21 = vld [vmem:[#allocation2 + $0x78] sm:$0xfe]  ;;  %v3837_v32 = vld [vmem:[#allocation6 + $0x1050] sm:$0xff]  ;;  %v6446_v55 = vpack.c.bf16 %v3842_v1, %v3838_v16  ;;  %v2378_v62 = vrot.slane %v8596_v24, 1  ;;  %v2365_v26 = vsel %vm2347_vm3, %v2355_v44, %v2364_v12  ;;  %v2375_v63 = vrot.slane %v8601_v53, 1 }
 0x21c   :  { %3376 = vmatprep.mubr.f32.mxu1 %v2359_v57  ;;  %6315 = vmatprep.subr.bf16.mxu0 %v6314_v37  ;;  %v3841_v56 = vld [vmem:[#allocation6 + $0x1070] sm:$0xff]  ;;  %v3844_v14 = vld [vmem:[#allocation6 + $0x1088] sm:$0xff]  ;;  %v3846_v4 = vld [vmem:[#allocation6 + $0x1098] sm:$0xff]  ;;  %v2377_v41 = vrot.slane %v2198_v21, 1  ;;  %v6320_v22 = vpack.c.bf16 %v3839_v48, %v3835_v51 }
 0x21d   :  { %6443 = vmatprep.subr.bf16.mxu1 %v6442_v36  ;;  %3055 = vmatmul.mubr.f32.vlgmr.msra.gmra.mrb[32].mxu0 %v2356_v7  ;;  %v3848_v47 = vld [vmem:[#allocation6 + $0x10a8] sm:$0xff]  ;;  %v3850_v11 = vld [vmem:[#allocation6 + $0x10b8] sm:$0xff]  ;;  %v2202_v20 = vld [vmem:[#allocation2 + $0xb8] sm:$0x1]  ;;  %v6448_v59 = vpack.c.bf16 %v3841_v56, %v3837_v32 }
 0x21e   :  { %3377 = vmatmul.mubr.f32.vlgmr.msra.gmra.mrb[32].mxu1 %v2356_v7  ;;  %3060 = vmatprep.mubr.f32.mxu0 %v2367_v54  ;;  %v2197_v6 = vld [vmem:[#allocation2 + $0x70] sm:$0xfe]  ;;  %v3843_v45 = vld [vmem:[#allocation6 + $0x1080] sm:$0xff]  ;;  %v6322_v19 = vpack.c.bf16 %v3848_v47, %v3844_v14  ;;  %v2379_v49 = vsel %vm2347_vm3, %v2377_v41, %v2378_v62  ;;  %v6450_v10 = vpack.c.bf16 %v3850_v11, %v3846_v4  ;;  %v2386_v34 = vrot.slane %v2202_v20, 1  ;;  %v2201_v28 = vld [vmem:[#allocation2 + $0xb0] sm:$0x1] }
 0x21f   :  { %3382 = vmatprep.mubr.f32.mxu1 %v2367_v54  ;;  %6317 = vmatpush1.bf16.msra.mxu0 %v6316_v23  ;;  %v3847_v9 = vld [vmem:[#allocation6 + $0x10a0] sm:$0xff]  ;;  %v3845_v17 = vld [vmem:[#allocation6 + $0x1090] sm:$0xff]  ;;  %v3852_v15 = vld [vmem:[#allocation6 + $0x10c8] sm:$0xff]  ;;  %v2374_v25 = vrot.slane %v2197_v6, 1  ;;  %v2384_v33 = vrot.slane %v2201_v28, 1 }
 0x220   :  { %6445 = vmatpush1.bf16.msra.mxu1 %v6444_v35  ;;  %6319 = vmatprep.subr.bf16.mxu0 %v6318_v52  ;;  %v3849_v0 = vld [vmem:[#allocation6 + $0x10b0] sm:$0xff]  ;;  %v3856_v60 = vld [vmem:[#allocation6 + $0x10e8] sm:$0xff]  ;;  %v3854_v31 = vld [vmem:[#allocation6 + $0x10d8] sm:$0xff]  ;;  %v6324_v13 = vpack.c.bf16 %v3847_v9, %v3843_v45  ;;  %v2387_v37 = vsel %vm2347_vm3, %v2378_v62, %v2386_v34 }
 0x221   :  { %3061 = vmatmul.mubr.f32.gmra.mrb[34].mxu0 %v2365_v26  ;;  %6447 = vmatprep.subr.bf16.mxu1 %v6446_v55  ;;  %v3858_v39 = vld [vmem:[#allocation6 + $0x10f8] sm:$0xff]  ;;  %v3851_v8 = vld [vmem:[#allocation6 + $0x10c0] sm:$0xff]  ;;  %v2376_v27 = vsel %vm2347_vm3, %v2374_v25, %v2375_v63  ;;  %v6452_v43 = vpack.c.bf16 %v3849_v0, %v3845_v17  ;;  %v6326_v61 = vpack.c.bf16 %v3856_v60, %v3852_v15  ;;  %v3853_v40 = vld [vmem:[#allocation6 + $0x10d0] sm:$0xff] }
 0x222   :  { %3383 = vmatmul.mubr.f32.gmra.mrb[34].mxu1 %v2365_v26  ;;  %3066 = vmatprep.mubr.f32.mxu0 %v2379_v49  ;;  %v8606_v46 = vld [vmem:[#allocation2 + $0xf8] sm:$0xff]  ;;  %v3855_v29 = vld [vmem:[#allocation6 + $0x10e0] sm:$0xff]  ;;  %v6454_v36 = vpack.c.bf16 %v3858_v39, %v3854_v31  ;;  %v8611_v3 = vld [vmem:[#allocation2 + $0xf0] sm:$0xff]  ;;  %v2385_v24 = vsel %vm2347_vm3, %v2375_v63, %v2384_v33 }
 0x223   :  { %3388 = vmatprep.mubr.f32.mxu1 %v2379_v49  ;;  %6321 = vmatpush1.bf16.msra.mxu0 %v6320_v22  ;;  %v2206_v5 = vld [vmem:[#allocation2 + $0xd8] sm:$0xfe]  ;;  %v3857_v44 = vld [vmem:[#allocation6 + $0x10f0] sm:$0xff]  ;;  %v2398_v2 = vrot.slane %v8606_v46, 1  ;;  %v3860_v42 = vld [vmem:[#allocation6 + $0x1108] sm:$0xff]  ;;  %v6328_v30 = vpack.c.bf16 %v3855_v29, %v3851_v8  ;;  %v2395_v51 = vrot.slane %v8611_v3, 1 }
 0x224   :  { %6449 = vmatpush1.bf16.msra.mxu1 %v6448_v59  ;;  %6323 = vmatprep.subr.bf16.mxu0 %v6322_v19  ;;  %v3864_v57 = vld [vmem:[#allocation6 + $0x1128] sm:$0xff]  ;;  %v3862_v50 = vld [vmem:[#allocation6 + $0x1118] sm:$0xff]  ;;  %v2210_v38 = vld [vmem:[#allocation2 + $0x118] sm:$0x1]  ;;  %v2397_v18 = vrot.slane %v2206_v5, 1  ;;  %v6456_v23 = vpack.c.bf16 %v3857_v44, %v3853_v40 }
 0x225   :  { %3067 = vmatmul.mubr.f32.gmra.mrb[36].mxu0 %v2376_v27  ;;  %6451 = vmatprep.subr.bf16.mxu1 %v6450_v10  ;;  %v3866_v58 = vld [vmem:[#allocation6 + $0x1138] sm:$0xff]  ;;  %v2205_v16 = vld [vmem:[#allocation2 + $0xd0] sm:$0xfe]  ;;  %v3859_v1 = vld [vmem:[#allocation6 + $0x1100] sm:$0xff]  ;;  %v6330_v48 = vpack.c.bf16 %v3864_v57, %v3860_v42  ;;  %v2406_v32 = vrot.slane %v2210_v38, 1 }
 0x226   :  { %3389 = vmatmul.mubr.f32.gmra.mrb[36].mxu1 %v2376_v27  ;;  %3072 = vmatprep.mubr.f32.mxu0 %v2387_v37  ;;  %v3863_v7 = vld [vmem:[#allocation6 + $0x1120] sm:$0xff]  ;;  %v3861_v35 = vld [vmem:[#allocation6 + $0x1110] sm:$0xff]  ;;  %v2399_v52 = vsel %vm2347_vm3, %v2397_v18, %v2398_v2  ;;  %v6458_v21 = vpack.c.bf16 %v3866_v58, %v3862_v50  ;;  %v2209_v56 = vld [vmem:[#allocation2 + $0x110] sm:$0x1]  ;;  %v2394_v62 = vrot.slane %v2205_v16, 1 }
 0x227   :  { %3394 = vmatprep.mubr.f32.mxu1 %v2387_v37  ;;  %6325 = vmatpush1.bf16.msra.mxu0 %v6324_v13  ;;  %v3865_v12 = vld [vmem:[#allocation6 + $0x1130] sm:$0xff]  ;;  %v3868_v54 = vld [vmem:[#allocation6 + $0x1148] sm:$0xff]  ;;  %v3870_v53 = vld [vmem:[#allocation6 + $0x1158] sm:$0xff]  ;;  %v6332_v4 = vpack.c.bf16 %v3863_v7, %v3859_v1  ;;  %v2404_v6 = vrot.slane %v2209_v56, 1  ;;  %v2407_v19 = vsel %vm2347_vm3, %v2398_v2, %v2406_v32 }
 0x228   :  { %6453 = vmatpush1.bf16.msra.mxu1 %v6452_v43  ;;  %6327 = vmatprep.subr.bf16.mxu0 %v6326_v61  ;;  %v3872_v55 = vld [vmem:[#allocation6 + $0x1168] sm:$0xff]  ;;  %v3874_v14 = vld [vmem:[#allocation6 + $0x1178] sm:$0xff]  ;;  %v3867_v11 = vld [vmem:[#allocation6 + $0x1140] sm:$0xff]  ;;  %v2396_v41 = vsel %vm2347_vm3, %v2394_v62, %v2395_v51  ;;  %v6460_v22 = vpack.c.bf16 %v3865_v12, %v3861_v35 }
 0x229   :  { %3073 = vmatmul.mubr.f32.gmra.mrb[38].mxu0 %v2385_v24  ;;  %6455 = vmatprep.subr.bf16.mxu1 %v6454_v36  ;;  %v8616_v47 = vld [vmem:[#allocation2 + $0x158] sm:$0xff]  ;;  %v3871_v20 = vld [vmem:[#allocation6 + $0x1160] sm:$0xff]  ;;  %v6334_v45 = vpack.c.bf16 %v3872_v55, %v3868_v54  ;;  %v6462_v9 = vpack.c.bf16 %v3874_v14, %v3870_v53  ;;  %v8621_v0 = vld [vmem:[#allocation2 + $0x150] sm:$0xff]  ;;  %v2405_v46 = vsel %vm2347_vm3, %v2395_v51, %v2404_v6 }
 0x22a   :  { %3395 = vmatmul.mubr.f32.gmra.mrb[38].mxu1 %v2385_v24  ;;  %3078 = vmatprep.mubr.f32.mxu0 %v2399_v52  ;;  %v2214_v26 = vld [vmem:[#allocation2 + $0x138] sm:$0xfe]  ;;  %v3869_v59 = vld [vmem:[#allocation6 + $0x1150] sm:$0xff]  ;;  %v2418_v17 = vrot.slane %v8616_v47, 1  ;;  %v3876_v49 = vld [vmem:[#allocation6 + $0x1188] sm:$0xff]  ;;  %v6336_v25 = vpack.c.bf16 %v3871_v20, %v3867_v11  ;;  %v2415_v8 = vrot.slane %v8621_v0, 1 }
 0x22b   :  { %3400 = vmatprep.mubr.f32.mxu1 %v2399_v52  ;;  %6329 = vmatpush1.bf16.msra.mxu0 %v6328_v30  ;;  %v3873_v63 = vld [vmem:[#allocation6 + $0x1170] sm:$0xff]  ;;  %v3880_v10 = vld [vmem:[#allocation6 + $0x11a8] sm:$0xff]  ;;  %v3878_v34 = vld [vmem:[#allocation6 + $0x1198] sm:$0xff]  ;;  %v2417_v60 = vrot.slane %v2214_v26, 1 }
 0x22c   :  { %6457 = vmatpush1.bf16.msra.mxu1 %v6456_v23  ;;  %6331 = vmatprep.subr.bf16.mxu0 %v6330_v48  ;;  %v3882_v28 = vld [vmem:[#allocation6 + $0x11b8] sm:$0xff]  ;;  %v2218_v15 = vld [vmem:[#allocation2 + $0x178] sm:$0x1]  ;;  %v2213_v31 = vld [vmem:[#allocation2 + $0x130] sm:$0xfe]  ;;  %v6464_v13 = vpack.c.bf16 %v3873_v63, %v3869_v59  ;;  %v6338_v29 = vpack.c.bf16 %v3880_v10, %v3876_v49 }
 0x22d   :  { %3079 = vmatmul.mubr.f32.gmra.mrb[40].mxu0 %v2396_v41  ;;  %6459 = vmatprep.subr.bf16.mxu1 %v6458_v21  ;;  %v3875_v39 = vld [vmem:[#allocation6 + $0x1180] sm:$0xff]  ;;  %v3877_v43 = vld [vmem:[#allocation6 + $0x1190] sm:$0xff]  ;;  %v2419_v61 = vsel %vm2347_vm3, %v2417_v60, %v2418_v17  ;;  %v6466_v5 = vpack.c.bf16 %v3882_v28, %v3878_v34  ;;  %v2426_v40 = vrot.slane %v2218_v15, 1  ;;  %v2217_v44 = vld [vmem:[#allocation2 + $0x170] sm:$0x1]  ;;  %v2414_v2 = vrot.slane %v2213_v31, 1 }
 0x22e   :  { %3401 = vmatmul.mubr.f32.gmra.mrb[40].mxu1 %v2396_v41  ;;  %3084 = vmatprep.mubr.f32.mxu0 %v2407_v19  ;;  %v3879_v27 = vld [vmem:[#allocation6 + $0x11a0] sm:$0xff]  ;;  %v3881_v33 = vld [vmem:[#allocation6 + $0x11b0] sm:$0xff]  ;;  %v3884_v37 = vld [vmem:[#allocation6 + $0x11c8] sm:$0xff]  ;;  %v2424_v16 = vrot.slane %v2217_v44, 1 }
 0x22f   :  { %3406 = vmatprep.mubr.f32.mxu1 %v2407_v19  ;;  %6333 = vmatpush1.bf16.msra.mxu0 %v6332_v4  ;;  %v3888_v36 = vld [vmem:[#allocation6 + $0x11e8] sm:$0xff]  ;;  %v3886_v3 = vld [vmem:[#allocation6 + $0x11d8] sm:$0xff]  ;;  %v6340_v50 = vpack.c.bf16 %v3879_v27, %v3875_v39  ;;  %v3883_v58 = vld [vmem:[#allocation6 + $0x11c0] sm:$0xff]  ;;  %v2416_v18 = vsel %vm2347_vm3, %v2414_v2, %v2415_v8  ;;  %v6468_v30 = vpack.c.bf16 %v3881_v33, %v3877_v43 }
 0x230   :  { %6461 = vmatpush1.bf16.msra.mxu1 %v6460_v22  ;;  %6335 = vmatprep.subr.bf16.mxu0 %v6334_v45  ;;  %v3890_v42 = vld [vmem:[#allocation6 + $0x11f8] sm:$0xff]  ;;  %v3887_v38 = vld [vmem:[#allocation6 + $0x11e0] sm:$0xff]  ;;  %v6342_v1 = vpack.c.bf16 %v3888_v36, %v3884_v37  ;;  %v3885_v23 = vld [vmem:[#allocation6 + $0x11d0] sm:$0xff]  ;;  %v2427_v48 = vsel %vm2347_vm3, %v2418_v17, %v2426_v40  ;;  %v2425_v47 = vsel %vm2347_vm3, %v2415_v8, %v2424_v16 }
 0x231   :  { %3085 = vmatmul.mubr.f32.gmra.mrb[42].mxu0 %v2405_v46  ;;  %6463 = vmatprep.subr.bf16.mxu1 %v6462_v9  ;;  %v8626_v57 = vld [vmem:[#allocation2 + $0x1b8] sm:$0xff]  ;;  %v6470_v7 = vpack.c.bf16 %v3890_v42, %v3886_v3  ;;  %v8631_v12 = vld [vmem:[#allocation2 + $0x1b0] sm:$0xff]  ;;  %v6344_v62 = vpack.c.bf16 %v3887_v38, %v3883_v58  ;;  %v3891_v14 = vld [vmem:[#allocation6 + $0x1200] sm:$0xff] }
 0x232   :  { %3407 = vmatmul.mubr.f32.gmra.mrb[42].mxu1 %v2405_v46  ;;  %3090 = vmatprep.mubr.f32.mxu0 %v2419_v61  ;;  %v2222_v24 = vld [vmem:[#allocation2 + $0x198] sm:$0xfe]  ;;  %v3889_v51 = vld [vmem:[#allocation6 + $0x11f0] sm:$0xff]  ;;  %v2438_v35 = vrot.slane %v8626_v57, 1  ;;  %v3892_v52 = vld [vmem:[#allocation6 + $0x1208] sm:$0xff]  ;;  %v2435_v11 = vrot.slane %v8631_v12, 1 }
 0x233   :  { %3412 = vmatprep.mubr.f32.mxu1 %v2419_v61  ;;  %6337 = vmatpush1.bf16.msra.mxu0 %v6336_v25  ;;  %v3896_v21 = vld [vmem:[#allocation6 + $0x1228] sm:$0xff]  ;;  %v3894_v32 = vld [vmem:[#allocation6 + $0x1218] sm:$0xff]  ;;  %v2226_v54 = vld [vmem:[#allocation2 + $0x1d8] sm:$0x1]  ;;  %v2437_v55 = vrot.slane %v2222_v24, 1  ;;  %v6472_v4 = vpack.c.bf16 %v3889_v51, %v3885_v23 }
 0x234   :  { %6465 = vmatpush1.bf16.msra.mxu1 %v6464_v13  ;;  %6339 = vmatprep.subr.bf16.mxu0 %v6338_v29  ;;  %v3898_v56 = vld [vmem:[#allocation6 + $0x1238] sm:$0xff]  ;;  %v2221_v53 = vld [vmem:[#allocation2 + $0x190] sm:$0xfe]  ;;  %v6346_v20 = vpack.c.bf16 %v3896_v21, %v3892_v52  ;;  %v3895_v41 = vld [vmem:[#allocation6 + $0x1220] sm:$0xff]  ;;  %v2446_v59 = vrot.slane %v2226_v54, 1 }
 0x235   :  { %3091 = vmatmul.mubr.f32.gmra.mrb[44].mxu0 %v2416_v18  ;;  %6467 = vmatprep.subr.bf16.mxu1 %v6466_v5  ;;  %v3893_v22 = vld [vmem:[#allocation6 + $0x1210] sm:$0xff]  ;;  %v2439_v45 = vsel %vm2347_vm3, %v2437_v55, %v2438_v35  ;;  %v6474_v26 = vpack.c.bf16 %v3898_v56, %v3894_v32  ;;  %v2225_v63 = vld [vmem:[#allocation2 + $0x1d0] sm:$0x1]  ;;  %v2434_v17 = vrot.slane %v2221_v53, 1  ;;  %v3902_v0 = vld [vmem:[#allocation6 + $0x1258] sm:$0xff]  ;;  %v6348_v34 = vpack.c.bf16 %v3895_v41, %v3891_v14 }
 0x236   :  { %3413 = vmatmul.mubr.f32.gmra.mrb[44].mxu1 %v2416_v18  ;;  %3096 = vmatprep.mubr.f32.mxu0 %v2427_v48  ;;  %v3897_v6 = vld [vmem:[#allocation6 + $0x1230] sm:$0xff]  ;;  %v3900_v19 = vld [vmem:[#allocation6 + $0x1248] sm:$0xff]  ;;  %v3906_v49 = vld [vmem:[#allocation6 + $0x1278] sm:$0xff]  ;;  %v2444_v31 = vrot.slane %v2225_v63, 1  ;;  %v2447_v29 = vsel %vm2347_vm3, %v2438_v35, %v2446_v59 }
 0x237   :  { %3418 = vmatprep.mubr.f32.mxu1 %v2427_v48  ;;  %6341 = vmatpush1.bf16.msra.mxu0 %v6340_v50  ;;  %v3904_v9 = vld [vmem:[#allocation6 + $0x1268] sm:$0xff]  ;;  %v8636_v10 = vld [vmem:[#allocation2 + $0x218] sm:$0xff]  ;;  %v3899_v28 = vld [vmem:[#allocation6 + $0x1240] sm:$0xff]  ;;  %v2436_v60 = vsel %vm2347_vm3, %v2434_v17, %v2435_v11  ;;  %v6476_v25 = vpack.c.bf16 %v3897_v6, %v3893_v22  ;;  %v6478_v27 = vpack.c.bf16 %v3906_v49, %v3902_v0 }
 0x238   :  { %6469 = vmatpush1.bf16.msra.mxu1 %v6468_v30  ;;  %6343 = vmatprep.subr.bf16.mxu0 %v6342_v1  ;;  %v3903_v15 = vld [vmem:[#allocation6 + $0x1260] sm:$0xff]  ;;  %v6350_v39 = vpack.c.bf16 %v3904_v9, %v3900_v19  ;;  %v2230_v46 = vld [vmem:[#allocation2 + $0x1f8] sm:$0xfe]  ;;  %v3901_v13 = vld [vmem:[#allocation6 + $0x1250] sm:$0xff]  ;;  %v2458_v43 = vrot.slane %v8636_v10, 1  ;;  %v2445_v57 = vsel %vm2347_vm3, %v2435_v11, %v2444_v31 }
 0x239   :  { %3097 = vmatmul.mubr.f32.gmra.mrb[46].mxu0 %v2425_v47  ;;  %6471 = vmatprep.subr.bf16.mxu1 %v6470_v7  ;;  %v3905_v8 = vld [vmem:[#allocation6 + $0x1270] sm:$0xff]  ;;  %v3908_v61 = vld [vmem:[#allocation6 + $0x1288] sm:$0xff]  ;;  %v3910_v40 = vld [vmem:[#allocation6 + $0x1298] sm:$0xff]  ;;  %v2457_v36 = vrot.slane %v2230_v46, 1  ;;  %v6352_v2 = vpack.c.bf16 %v3903_v15, %v3899_v28 }
 0x23a   :  { %3419 = vmatmul.mubr.f32.gmra.mrb[46].mxu1 %v2425_v47  ;;  %3102 = vmatprep.mubr.f32.mxu0 %v2439_v45  ;;  %v8641_v33 = vld [vmem:[#allocation2 + $0x210] sm:$0xff]  ;;  %v3914_v44 = vld [vmem:[#allocation6 + $0x12b8] sm:$0xff]  ;;  %v2234_v37 = vld [vmem:[#allocation2 + $0x238] sm:$0x1]  ;;  %v6480_v50 = vpack.c.bf16 %v3905_v8, %v3901_v13 }
 0x23b   :  { %3424 = vmatprep.mubr.f32.mxu1 %v2439_v45  ;;  %6345 = vmatpush1.bf16.msra.mxu0 %v6344_v62  ;;  %v3912_v5 = vld [vmem:[#allocation6 + $0x12a8] sm:$0xff]  ;;  %v2229_v3 = vld [vmem:[#allocation2 + $0x1f0] sm:$0xfe]  ;;  %v3907_v42 = vld [vmem:[#allocation6 + $0x1280] sm:$0xff]  ;;  %v2455_v58 = vrot.slane %v8641_v33, 1  ;;  %v2459_v1 = vsel %vm2347_vm3, %v2457_v36, %v2458_v43  ;;  %v6482_v24 = vpack.c.bf16 %v3914_v44, %v3910_v40  ;;  %v2466_v23 = vrot.slane %v2234_v37, 1 }
 0x23c   :  { %6473 = vmatpush1.bf16.msra.mxu1 %v6472_v4  ;;  %6347 = vmatprep.subr.bf16.mxu0 %v6346_v20  ;;  %v6354_v38 = vpack.c.bf16 %v3912_v5, %v3908_v61  ;;  %v3911_v18 = vld [vmem:[#allocation6 + $0x12a0] sm:$0xff]  ;;  %v3909_v30 = vld [vmem:[#allocation6 + $0x1290] sm:$0xff]  ;;  %v2233_v51 = vld [vmem:[#allocation2 + $0x230] sm:$0x1]  ;;  %v2454_v35 = vrot.slane %v2229_v3, 1 }
 0x23d   :  { %3103 = vmatmul.mubr.f32.gmra.mrb[48].mxu0 %v2436_v60  ;;  %6475 = vmatprep.subr.bf16.mxu1 %v6474_v26  ;;  %v3913_v16 = vld [vmem:[#allocation6 + $0x12b0] sm:$0xff]  ;;  %v3916_v48 = vld [vmem:[#allocation6 + $0x12c8] sm:$0xff]  ;;  %v3918_v12 = vld [vmem:[#allocation6 + $0x12d8] sm:$0xff]  ;;  %v6356_v32 = vpack.c.bf16 %v3911_v18, %v3907_v42  ;;  %v2464_v53 = vrot.slane %v2233_v51, 1  ;;  %v2467_v20 = vsel %vm2347_vm3, %v2458_v43, %v2466_v23 }
 0x23e   :  { %3425 = vmatmul.mubr.f32.gmra.mrb[48].mxu1 %v2436_v60  ;;  %3108 = vmatprep.mubr.f32.mxu0 %v2447_v29  ;;  %v3920_v7 = vld [vmem:[#allocation6 + $0x12e8] sm:$0xff]  ;;  %v3922_v52 = vld [vmem:[#allocation6 + $0x12f8] sm:$0xff]  ;;  %v3915_v56 = vld [vmem:[#allocation6 + $0x12c0] sm:$0xff]  ;;  %v2456_v55 = vsel %vm2347_vm3, %v2454_v35, %v2455_v58  ;;  %v6484_v62 = vpack.c.bf16 %v3913_v16, %v3909_v30 }
 0x23f   :  { %3430 = vmatprep.mubr.f32.mxu1 %v2447_v29  ;;  %6349 = vmatpush1.bf16.msra.mxu0 %v6348_v34  ;;  %v8646_v21 = vld [vmem:[#allocation2 + $0x278] sm:$0xff]  ;;  %v3919_v54 = vld [vmem:[#allocation6 + $0x12e0] sm:$0xff]  ;;  %v6358_v14 = vpack.c.bf16 %v3920_v7, %v3916_v48  ;;  %v6486_v41 = vpack.c.bf16 %v3922_v52, %v3918_v12  ;;  %v8651_v6 = vld [vmem:[#allocation2 + $0x270] sm:$0xff]  ;;  %v2465_v10 = vsel %vm2347_vm3, %v2455_v58, %v2464_v53 }
 0x240   :  { %6477 = vmatpush1.bf16.msra.mxu1 %v6476_v25  ;;  %6351 = vmatprep.subr.bf16.mxu0 %v6350_v39  ;;  %v2238_v47 = vld [vmem:[#allocation2 + $0x258] sm:$0xfe]  ;;  %v3917_v4 = vld [vmem:[#allocation6 + $0x12d0] sm:$0xff]  ;;  %v2478_v22 = vrot.slane %v8646_v21, 1  ;;  %v3924_v45 = vld [vmem:[#allocation6 + $0x1308] sm:$0xff]  ;;  %v6360_v17 = vpack.c.bf16 %v3919_v54, %v3915_v56  ;;  %v2475_v28 = vrot.slane %v8651_v6, 1 }
 0x241   :  { %3109 = vmatmul.mubr.f32.gmra.mrb[50].mxu0 %v2445_v57  ;;  %6479 = vmatprep.subr.bf16.mxu1 %v6478_v27  ;;  %v3921_v11 = vld [vmem:[#allocation6 + $0x12f0] sm:$0xff]  ;;  %v3928_v26 = vld [vmem:[#allocation6 + $0x1328] sm:$0xff]  ;;  %v3926_v59 = vld [vmem:[#allocation6 + $0x1318] sm:$0xff]  ;;  %v2477_v9 = vrot.slane %v2238_v47, 1 }
 0x242   :  { %3431 = vmatmul.mubr.f32.gmra.mrb[50].mxu1 %v2445_v57  ;;  %3114 = vmatprep.mubr.f32.mxu0 %v2459_v1  ;;  %v3930_v63 = vld [vmem:[#allocation6 + $0x1338] sm:$0xff]  ;;  %v2242_v19 = vld [vmem:[#allocation2 + $0x298] sm:$0x1]  ;;  %v2237_v0 = vld [vmem:[#allocation2 + $0x250] sm:$0xfe]  ;;  %v6488_v34 = vpack.c.bf16 %v3921_v11, %v3917_v4  ;;  %v6362_v15 = vpack.c.bf16 %v3928_v26, %v3924_v45 }
 0x243   :  { %3436 = vmatprep.mubr.f32.mxu1 %v2459_v1  ;;  %6353 = vmatpush1.bf16.msra.mxu0 %v6352_v2  ;;  %v3923_v49 = vld [vmem:[#allocation6 + $0x1300] sm:$0xff]  ;;  %v3925_v25 = vld [vmem:[#allocation6 + $0x1310] sm:$0xff]  ;;  %v2479_v39 = vsel %vm2347_vm3, %v2477_v9, %v2478_v22  ;;  %v6490_v46 = vpack.c.bf16 %v3930_v63, %v3926_v59  ;;  %v2486_v13 = vrot.slane %v2242_v19, 1  ;;  %v2241_v8 = vld [vmem:[#allocation2 + $0x290] sm:$0x1]  ;;  %v2474_v43 = vrot.slane %v2237_v0, 1 }
 0x244   :  { %6481 = vmatpush1.bf16.msra.mxu1 %v6480_v50  ;;  %6355 = vmatprep.subr.bf16.mxu0 %v6354_v38  ;;  %v3927_v60 = vld [vmem:[#allocation6 + $0x1320] sm:$0xff]  ;;  %v3929_v31 = vld [vmem:[#allocation6 + $0x1330] sm:$0xff]  ;;  %v3932_v29 = vld [vmem:[#allocation6 + $0x1348] sm:$0xff]  ;;  %v2484_v3 = vrot.slane %v2241_v8, 1 }
 0x245   :  { %3115 = vmatmul.mubr.f32.gmra.mrb[52].mxu0 %v2456_v55  ;;  %6483 = vmatprep.subr.bf16.mxu1 %v6482_v24  ;;  %v3936_v27 = vld [vmem:[#allocation6 + $0x1368] sm:$0xff]  ;;  %v3934_v33 = vld [vmem:[#allocation6 + $0x1358] sm:$0xff]  ;;  %v6364_v40 = vpack.c.bf16 %v3927_v60, %v3923_v49  ;;  %v3931_v44 = vld [vmem:[#allocation6 + $0x1340] sm:$0xff]  ;;  %v2476_v36 = vsel %vm2347_vm3, %v2474_v43, %v2475_v28  ;;  %v6492_v2 = vpack.c.bf16 %v3929_v31, %v3925_v25 }
 0x246   :  { %3437 = vmatmul.mubr.f32.gmra.mrb[52].mxu1 %v2456_v55  ;;  %3120 = vmatprep.mubr.f32.mxu0 %v2467_v20  ;;  %v3938_v61 = vld [vmem:[#allocation6 + $0x1378] sm:$0xff]  ;;  %v3935_v37 = vld [vmem:[#allocation6 + $0x1360] sm:$0xff]  ;;  %v6366_v42 = vpack.c.bf16 %v3936_v27, %v3932_v29  ;;  %v3933_v50 = vld [vmem:[#allocation6 + $0x1350] sm:$0xff]  ;;  %v2487_v38 = vsel %vm2347_vm3, %v2478_v22, %v2486_v13  ;;  %v2485_v21 = vsel %vm2347_vm3, %v2475_v28, %v2484_v3 }
 0x247   :  { %3442 = vmatprep.mubr.f32.mxu1 %v2467_v20  ;;  %6357 = vmatpush1.bf16.msra.mxu0 %v6356_v32  ;;  %v8656_v5 = vld [vmem:[#allocation2 + $0x2d8] sm:$0xff]  ;;  %v6494_v18 = vpack.c.bf16 %v3938_v61, %v3934_v33  ;;  %v8661_v16 = vld [vmem:[#allocation2 + $0x2d0] sm:$0xff]  ;;  %v6368_v35 = vpack.c.bf16 %v3935_v37, %v3931_v44  ;;  %v3939_v52 = vld [vmem:[#allocation6 + $0x1380] sm:$0xff] }
 0x248   :  { %6485 = vmatpush1.bf16.msra.mxu1 %v6484_v62  ;;  %6359 = vmatprep.subr.bf16.mxu0 %v6358_v14  ;;  %v2246_v57 = vld [vmem:[#allocation2 + $0x2b8] sm:$0xfe]  ;;  %v3937_v58 = vld [vmem:[#allocation6 + $0x1370] sm:$0xff]  ;;  %v2498_v30 = vrot.slane %v8656_v5, 1  ;;  %v3940_v1 = vld [vmem:[#allocation6 + $0x1388] sm:$0xff]  ;;  %v2495_v56 = vrot.slane %v8661_v16, 1 }
 0x249   :  { %3121 = vmatmul.mubr.f32.gmra.mrb[54].mxu0 %v2465_v10  ;;  %6487 = vmatprep.subr.bf16.mxu1 %v6486_v41  ;;  %v3944_v24 = vld [vmem:[#allocation6 + $0x13a8] sm:$0xff]  ;;  %v3942_v23 = vld [vmem:[#allocation6 + $0x1398] sm:$0xff]  ;;  %v2250_v48 = vld [vmem:[#allocation2 + $0x2f8] sm:$0x1]  ;;  %v2497_v7 = vrot.slane %v2246_v57, 1  ;;  %v6496_v32 = vpack.c.bf16 %v3937_v58, %v3933_v50 }
 0x24a   :  { %3443 = vmatmul.mubr.f32.gmra.mrb[54].mxu1 %v2465_v10  ;;  %3126 = vmatprep.mubr.f32.mxu0 %v2479_v39  ;;  %v3946_v51 = vld [vmem:[#allocation6 + $0x13b8] sm:$0xff]  ;;  %v2245_v12 = vld [vmem:[#allocation2 + $0x2b0] sm:$0xfe]  ;;  %v6370_v54 = vpack.c.bf16 %v3944_v24, %v3940_v1  ;;  %v3943_v55 = vld [vmem:[#allocation6 + $0x13a0] sm:$0xff]  ;;  %v2506_v4 = vrot.slane %v2250_v48, 1 }
 0x24b   :  { %3448 = vmatprep.mubr.f32.mxu1 %v2479_v39  ;;  %6361 = vmatpush1.bf16.msra.mxu0 %v6360_v17  ;;  %v3941_v62 = vld [vmem:[#allocation6 + $0x1390] sm:$0xff]  ;;  %v2499_v14 = vsel %vm2347_vm3, %v2497_v7, %v2498_v30  ;;  %v6498_v47 = vpack.c.bf16 %v3946_v51, %v3942_v23  ;;  %v2249_v11 = vld [vmem:[#allocation2 + $0x2f0] sm:$0x1]  ;;  %v2494_v22 = vrot.slane %v2245_v12, 1  ;;  %v3950_v6 = vld [vmem:[#allocation6 + $0x13d8] sm:$0xff]  ;;  %v6372_v59 = vpack.c.bf16 %v3943_v55, %v3939_v52 }
 0x24c   :  { %6489 = vmatpush1.bf16.msra.mxu1 %v6488_v34  ;;  %6363 = vmatprep.subr.bf16.mxu0 %v6362_v15  ;;  %v3945_v53 = vld [vmem:[#allocation6 + $0x13b0] sm:$0xff]  ;;  %v3948_v20 = vld [vmem:[#allocation6 + $0x13c8] sm:$0xff]  ;;  %v3954_v45 = vld [vmem:[#allocation6 + $0x13f8] sm:$0xff]  ;;  %v2504_v9 = vrot.slane %v2249_v11, 1  ;;  %v2507_v34 = vsel %vm2347_vm3, %v2498_v30, %v2506_v4 }
 0x24d   :  { %3127 = vmatmul.mubr.f32.gmra.mrb[56].mxu0 %v2476_v36  ;;  %6491 = vmatprep.subr.bf16.mxu1 %v6490_v46  ;;  %v3952_v41 = vld [vmem:[#allocation6 + $0x13e8] sm:$0xff]  ;;  %v2496_v63 = vsel %vm2347_vm3, %v2494_v22, %v2495_v56  ;;  %v6500_v19 = vpack.c.bf16 %v3945_v53, %v3941_v62  ;;  %v3947_v0 = vld [vmem:[#allocation6 + $0x13c0] sm:$0xff]  ;;  %v3949_v10 = vld [vmem:[#allocation6 + $0x13d0] sm:$0xff]  ;;  %v6502_v28 = vpack.c.bf16 %v3954_v45, %v3950_v6 }
 0x24e   :  { %3449 = vmatmul.mubr.f32.gmra.mrb[56].mxu1 %v2476_v36  ;;  %3132 = vmatprep.mubr.f32.mxu0 %v2487_v38  ;;  %v3474_v26 = vld [vmem:[#allocation2 + $0x8] sm:$0xfc]  ;;  %v6374_v17 = vpack.c.bf16 %v3952_v41, %v3948_v20  ;;  %v3951_v49 = vld [vmem:[#allocation6 + $0x13e0] sm:$0xff]  ;;  %v3953_v60 = vld [vmem:[#allocation6 + $0x13f0] sm:$0xff]  ;;  %v2505_v33 = vsel %vm2347_vm3, %v2495_v56, %v2504_v9 }
 0x24f   :  { %3454 = vmatprep.mubr.f32.mxu1 %v2487_v38  ;;  %6365 = vmatpush1.bf16.msra.mxu0 %v6364_v40  ;;  %v3605_v15 = vrot.slane %v3474_v26, 2  ;;  %v3956_v25 = vld [vmem:[#allocation6 + $0x1408] sm:$0xff]  ;;  %v3473_v39 = vld [vmem:[#allocation2] sm:$0xfc]  ;;  %v3958_v46 = vld [vmem:[#allocation6 + $0x1418] sm:$0xff]  ;;  %v6376_v8 = vpack.c.bf16 %v3951_v49, %v3947_v0  ;;  %v6504_v61 = vpack.c.bf16 %v3953_v60, %v3949_v10 }
 0x250   :  { %6493 = vmatpush1.bf16.msra.mxu1 %v6492_v2  ;;  %6367 = vmatprep.subr.bf16.mxu0 %v6366_v42  ;;  %v3960_v31 = vld [vmem:[#allocation6 + $0x1428] sm:$0xff]  ;;  %v3962_v13 = vld [vmem:[#allocation6 + $0x1438] sm:$0xff]  ;;  %v3955_v40 = vld [vmem:[#allocation6 + $0x1400] sm:$0xff]  ;;  %v3602_v37 = vrot.slane %v3473_v39, 2 }
 0x251   :  { %3133 = vmatmul.mubr.f32.gmra.mrb[58].mxu0 %v2485_v21  ;;  %6495 = vmatprep.subr.bf16.mxu1 %v6494_v18  ;;  %v7281_v29 = vld [vmem:[#allocation2 + $0x28] sm:$0xff]  ;;  %v6378_v5 = vpack.c.bf16 %v3960_v31, %v3956_v25  ;;  %v6506_v36 = vpack.c.bf16 %v3962_v13, %v3958_v46  ;;  %v3957_v3 = vld [vmem:[#allocation6 + $0x1410] sm:$0xff]  ;;  %v3477_v50 = vld [vmem:[#allocation2 + $0x40] sm:$0x3] }
 0x252   :  { %3455 = vmatmul.mubr.f32.gmra.mrb[58].mxu1 %v2485_v21  ;;  %3138 = vmatprep.mubr.f32.mxu0 %v2499_v14  ;;  %v3606_v27 = vrot.slane %v7281_v29, 2  ;;  %v3478_v43 = vld [vmem:[#allocation2 + $0x48] sm:$0x3]  ;;  %v3961_v42 = vld [vmem:[#allocation6 + $0x1430] sm:$0xff]  ;;  %v7282_v18 = vld [vmem:[#allocation2 + $0x20] sm:$0xff] }
 0x253   :  { %3460 = vmatprep.mubr.f32.mxu1 %v2499_v14  ;;  %6369 = vmatpush1.bf16.msra.mxu0 %v6368_v35  ;;  %v3959_v2 = vld [vmem:[#allocation6 + $0x1420] sm:$0xff]  ;;  %v3616_v57 = vrot.slane %v3478_v43, 2  ;;  %v3964_v58 = vld [vmem:[#allocation6 + $0x1448] sm:$0xff]  ;;  %v3603_v30 = vrot.slane %v7282_v18, 2  ;;  %v3966_v16 = vld [vmem:[#allocation6 + $0x1458] sm:$0xff]  ;;  %v6508_v7 = vpack.c.bf16 %v3961_v42, %v3957_v3  ;;  %v3614_v35 = vrot.slane %v3477_v50, 2 }
 0x254   :  { %6497 = vmatpush1.bf16.msra.mxu1 %v6496_v32  ;;  %6371 = vmatprep.subr.bf16.mxu0 %v6370_v54  ;;  %v3607_v44 = vsel %vm3601_vm4, %v3605_v15, %v3606_v27  ;;  %v3968_v38 = vld [vmem:[#allocation6 + $0x1468] sm:$0xff]  ;;  %v3970_v1 = vld [vmem:[#allocation6 + $0x1478] sm:$0xff]  ;;  %v6380_v23 = vpack.c.bf16 %v3959_v2, %v3955_v40  ;;  %v3963_v51 = vld [vmem:[#allocation6 + $0x1440] sm:$0xff] }
 0x255   :  { %3139 = vmatmul.mubr.f32.gmra.mrb[60].mxu0 %v2496_v63  ;;  %6499 = vmatprep.subr.bf16.mxu1 %v6498_v47  ;;  %v3482_v24 = vld [vmem:[#allocation2 + $0x68] sm:$0xfc]  ;;  %v3604_v48 = vsel %vm3601_vm4, %v3602_v37, %v3603_v30  ;;  %v6382_v12 = vpack.c.bf16 %v3968_v38, %v3964_v58  ;;  %v3967_v52 = vld [vmem:[#allocation6 + $0x1460] sm:$0xff]  ;;  %v3965_v21 = vld [vmem:[#allocation6 + $0x1450] sm:$0xff]  ;;  %v3617_v56 = vsel %vm3601_vm4, %v3606_v27, %v3616_v57 }
 0x256   :  { %3461 = vmatmul.mubr.f32.gmra.mrb[60].mxu1 %v2496_v63  ;;  %3144 = vmatprep.mubr.f32.mxu0 %v2507_v34  ;;  %v3969_v32 = vld [vmem:[#allocation6 + $0x1470] sm:$0xff]  ;;  %v6510_v54 = vpack.c.bf16 %v3970_v1, %v3966_v16  ;;  %v3625_v55 = vrot.slane %v3482_v24, 2  ;;  %v3481_v62 = vld [vmem:[#allocation2 + $0x60] sm:$0xfc]  ;;  %v3972_v53 = vld [vmem:[#allocation6 + $0x1488] sm:$0xff]  ;;  %v6384_v22 = vpack.c.bf16 %v3967_v52, %v3963_v51  ;;  %v3615_v45 = vsel %vm3601_vm4, %v3603_v30, %v3614_v35 }
 0x257   :  { %3466 = vmatprep.mubr.f32.mxu1 %v2507_v34  ;;  %6373 = vmatpush1.bf16.msra.mxu0 %v6372_v59  ;;  %v3976_v14 = vld [vmem:[#allocation6 + $0x14a8] sm:$0xff]  ;;  %v3974_v47 = vld [vmem:[#allocation6 + $0x1498] sm:$0xff]  ;;  %v3971_v6 = vld [vmem:[#allocation6 + $0x1480] sm:$0xff]  ;;  %v6512_v26 = vpack.c.bf16 %v3969_v32, %v3965_v21  ;;  %v3622_v59 = vrot.slane %v3481_v62, 2 }
 0x258   :  { %6501 = vmatpush1.bf16.msra.mxu1 %v6500_v19  ;;  %6375 = vmatprep.subr.bf16.mxu0 %v6374_v17  ;;  %v3978_v4 = vld [vmem:[#allocation6 + $0x14b8] sm:$0xff]  ;;  %v3486_v11 = vld [vmem:[#allocation2 + $0xa8] sm:$0x3]  ;;  %v6386_v63 = vpack.c.bf16 %v3976_v14, %v3972_v53  ;;  %v3973_v9 = vld [vmem:[#allocation6 + $0x1490] sm:$0xff] }
 0x259   :  { %3145 = vmatmul.mubr.f32.gmra.mrb[62].mxu0 %v2505_v33  ;;  %6503 = vmatprep.subr.bf16.mxu1 %v6502_v28  ;;  %v7283_v20 = vld [vmem:[#allocation2 + $0x88] sm:$0xff]  ;;  %v3977_v17 = vld [vmem:[#allocation6 + $0x14b0] sm:$0xff]  ;;  %v6514_v49 = vpack.c.bf16 %v3978_v4, %v3974_v47  ;;  %v3636_v10 = vrot.slane %v3486_v11, 2  ;;  %v3485_v34 = vld [vmem:[#allocation2 + $0xa0] sm:$0x3] }
 0x25a   :  { %3467 = vmatmul.mubr.f32.gmra.mrb[62].mxu1 %v2505_v33  ;;  %4147 = vmatprep.mubr.f32.mxu0 %v3607_v44  ;;  %v3626_v41 = vrot.slane %v7283_v20, 2  ;;  %v3975_v19 = vld [vmem:[#allocation6 + $0x14a0] sm:$0xff]  ;;  %v3980_v28 = vld [vmem:[#allocation6 + $0x14c8] sm:$0xff]  ;;  %v3982_v31 = vld [vmem:[#allocation6 + $0x14d8] sm:$0xff]  ;;  %v6516_v27 = vpack.c.bf16 %v3977_v17, %v3973_v9  ;;  %v3634_v43 = vrot.slane %v3485_v34, 2 }
 0x25b   :  { %6377 = vmatpush1.bf16.msra.mxu0 %v6376_v8  ;;  %4469 = vmatprep.mubr.f32.mxu1 %v3607_v44  ;;  %v3984_v15 = vld [vmem:[#allocation6 + $0x14e8] sm:$0xff]  ;;  %v7284_v60 = vld [vmem:[#allocation2 + $0x80] sm:$0xff]  ;;  %v6388_v13 = vpack.c.bf16 %v3975_v19, %v3971_v6  ;;  %v3985_v40 = vld [vmem:[#allocation6 + $0x14f0] sm:$0xff] }
 0x25c   :  { %6505 = vmatpush1.bf16.msra.mxu1 %v6504_v61  ;;  %6379 = vmatprep.subr.bf16.mxu0 %v6378_v5  ;;  %v3627_v0 = vsel %vm3601_vm4, %v3625_v55, %v3626_v41  ;;  %v3623_v25 = vrot.slane %v7284_v60, 2  ;;  %v3986_v39 = vld [vmem:[#allocation6 + $0x14f8] sm:$0xff]  ;;  %v3490_v46 = vld [vmem:[#allocation2 + $0xc8] sm:$0xfc]  ;;  %v3979_v8 = vld [vmem:[#allocation6 + $0x14c0] sm:$0xff]  ;;  %v6390_v33 = vpack.c.bf16 %v3984_v15, %v3980_v28  ;;  %v3637_v44 = vsel %vm3601_vm4, %v3626_v41, %v3636_v10 }
 0x25d   :  { %6507 = vmatprep.subr.bf16.mxu1 %v6506_v36  ;;  %v3983_v61 = vld [vmem:[#allocation6 + $0x14e0] sm:$0xff]  ;;  %v3981_v5 = vld [vmem:[#allocation6 + $0x14d0] sm:$0xff]  ;;  %v6518_v37 = vpack.c.bf16 %v3986_v39, %v3982_v31  ;;  %v3645_v36 = vrot.slane %v3490_v46, 2  ;;  %v3988_v3 = vld [vmem:[#allocation6 + $0x1508] sm:$0xff] }
 0x25e   :  { %4148 = vmatmul.mubr.f32.vlgmr.msra.gmra.mrb[32].mxu0 %v3604_v48  ;;  %v3624_v29 = vsel %vm3601_vm4, %v3622_v59, %v3623_v25  ;;  %v3489_v2 = vld [vmem:[#allocation2 + $0xc0] sm:$0xfc]  ;;  %v3992_v42 = vld [vmem:[#allocation6 + $0x1528] sm:$0xff]  ;;  %v3990_v57 = vld [vmem:[#allocation6 + $0x1518] sm:$0xff]  ;;  %v6392_v30 = vpack.c.bf16 %v3983_v61, %v3979_v8  ;;  %v3635_v1 = vsel %vm3601_vm4, %v3623_v25, %v3634_v43  ;;  %v6520_v24 = vpack.c.bf16 %v3985_v40, %v3981_v5 }
 0x25f   :  { %4470 = vmatmul.mubr.f32.vlgmr.msra.gmra.mrb[32].mxu1 %v3604_v48  ;;  %4153 = vmatprep.mubr.f32.mxu0 %v3617_v56  ;;  %v3994_v50 = vld [vmem:[#allocation6 + $0x1538] sm:$0xff]  ;;  %v3494_v58 = vld [vmem:[#allocation2 + $0x108] sm:$0x3]  ;;  %v6394_v51 = vpack.c.bf16 %v3992_v42, %v3988_v3  ;;  %v3993_v35 = vld [vmem:[#allocation6 + $0x1530] sm:$0xff] }
 0x260   :  { %6381 = vmatpush1.bf16.msra.mxu0 %v6380_v23  ;;  %4475 = vmatprep.mubr.f32.mxu1 %v3617_v56  ;;  %v7285_v38 = vld [vmem:[#allocation2 + $0xe8] sm:$0xff]  ;;  %v3642_v23 = vrot.slane %v3489_v2, 2  ;;  %v6522_v52 = vpack.c.bf16 %v3994_v50, %v3990_v57  ;;  %v3656_v21 = vrot.slane %v3494_v58, 2  ;;  %v3493_v32 = vld [vmem:[#allocation2 + $0x100] sm:$0x3]  ;;  %v4001_v59 = vld [vmem:[#allocation6 + $0x1570] sm:$0xff] }
 0x261   :  { %6509 = vmatpush1.bf16.msra.mxu1 %v6508_v7  ;;  %6383 = vmatprep.subr.bf16.mxu0 %v6382_v12  ;;  %v3646_v18 = vrot.slane %v7285_v38, 2  ;;  %v3987_v16 = vld [vmem:[#allocation6 + $0x1500] sm:$0xff]  ;;  %v3989_v7 = vld [vmem:[#allocation6 + $0x1510] sm:$0xff]  ;;  %v3996_v56 = vld [vmem:[#allocation6 + $0x1548] sm:$0xff] }
 0x262   :  { %4154 = vmatmul.mubr.f32.gmra.mrb[34].mxu0 %v3615_v45  ;;  %6511 = vmatprep.subr.bf16.mxu1 %v6510_v54  ;;  %v3991_v48 = vld [vmem:[#allocation6 + $0x1520] sm:$0xff]  ;;  %v4000_v54 = vld [vmem:[#allocation6 + $0x1568] sm:$0xff]  ;;  %v3998_v53 = vld [vmem:[#allocation6 + $0x1558] sm:$0xff]  ;;  %v6524_v41 = vpack.c.bf16 %v3993_v35, %v3989_v7 }
 0x263   :  { %4476 = vmatmul.mubr.f32.gmra.mrb[34].mxu1 %v3615_v45  ;;  %4159 = vmatprep.mubr.f32.mxu0 %v3627_v0  ;;  %v3647_v12 = vsel %vm3601_vm4, %v3645_v36, %v3646_v18  ;;  %v7286_v55 = vld [vmem:[#allocation2 + $0xe0] sm:$0xff]  ;;  %v3498_v47 = vld [vmem:[#allocation2 + $0x128] sm:$0xfc]  ;;  %v6396_v4 = vpack.c.bf16 %v3991_v48, %v3987_v16  ;;  %v6398_v6 = vpack.c.bf16 %v4000_v54, %v3996_v56  ;;  %v3502_v28 = vld [vmem:[#allocation2 + $0x168] sm:$0x3] }
 0x264   :  { %6385 = vmatpush1.bf16.msra.mxu0 %v6384_v22  ;;  %4481 = vmatprep.mubr.f32.mxu1 %v3627_v0  ;;  %v3643_v62 = vrot.slane %v7286_v55, 2  ;;  %v4002_v14 = vld [vmem:[#allocation6 + $0x1578] sm:$0xff]  ;;  %v3995_v11 = vld [vmem:[#allocation6 + $0x1540] sm:$0xff]  ;;  %v3654_v22 = vrot.slane %v3493_v32, 2  ;;  %v3665_v9 = vrot.slane %v3498_v47, 2  ;;  %v4004_v0 = vld [vmem:[#allocation6 + $0x1588] sm:$0xff] }
 0x265   :  { %6513 = vmatpush1.bf16.msra.mxu1 %v6512_v26  ;;  %6387 = vmatprep.subr.bf16.mxu0 %v6386_v63  ;;  %v3999_v45 = vld [vmem:[#allocation6 + $0x1560] sm:$0xff]  ;;  %v3997_v26 = vld [vmem:[#allocation6 + $0x1550] sm:$0xff]  ;;  %v3657_v63 = vsel %vm3601_vm4, %v3646_v18, %v3656_v21  ;;  %v6526_v19 = vpack.c.bf16 %v4002_v14, %v3998_v53  ;;  %v4006_v10 = vld [vmem:[#allocation6 + $0x1598] sm:$0xff]  ;;  %v3676_v5 = vrot.slane %v3502_v28, 2 }
 0x266   :  { %4160 = vmatmul.mubr.f32.gmra.mrb[36].mxu0 %v3624_v29  ;;  %6515 = vmatprep.subr.bf16.mxu1 %v6514_v49  ;;  %v3644_v20 = vsel %vm3601_vm4, %v3642_v23, %v3643_v62  ;;  %v3497_v17 = vld [vmem:[#allocation2 + $0x120] sm:$0xfc]  ;;  %v4008_v49 = vld [vmem:[#allocation6 + $0x15a8] sm:$0xff]  ;;  %v4010_v34 = vld [vmem:[#allocation6 + $0x15b8] sm:$0xff]  ;;  %v6400_v25 = vpack.c.bf16 %v3999_v45, %v3995_v11  ;;  %v3655_v39 = vsel %vm3601_vm4, %v3643_v62, %v3654_v22 }
 0x267   :  { %4482 = vmatmul.mubr.f32.gmra.mrb[36].mxu1 %v3624_v29  ;;  %4165 = vmatprep.mubr.f32.mxu0 %v3637_v44  ;;  %v7287_v15 = vld [vmem:[#allocation2 + $0x148] sm:$0xff]  ;;  %v6528_v46 = vpack.c.bf16 %v4001_v59, %v3997_v26  ;;  %v6402_v8 = vpack.c.bf16 %v4008_v49, %v4004_v0  ;;  %v4009_v43 = vld [vmem:[#allocation6 + $0x15b0] sm:$0xff]  ;;  %v6530_v61 = vpack.c.bf16 %v4010_v34, %v4006_v10  ;;  %v3501_v40 = vld [vmem:[#allocation2 + $0x160] sm:$0x3] }
 0x268   :  { %6389 = vmatpush1.bf16.msra.mxu0 %v6388_v13  ;;  %4487 = vmatprep.mubr.f32.mxu1 %v3637_v44  ;;  %v3666_v60 = vrot.slane %v7287_v15, 2  ;;  %v4003_v31 = vld [vmem:[#allocation6 + $0x1580] sm:$0xff]  ;;  %v3662_v13 = vrot.slane %v3497_v17, 2  ;;  %v4012_v44 = vld [vmem:[#allocation6 + $0x15c8] sm:$0xff]  ;;  %v4014_v3 = vld [vmem:[#allocation6 + $0x15d8] sm:$0xff] }
 0x269   :  { %6517 = vmatpush1.bf16.msra.mxu1 %v6516_v27  ;;  %6391 = vmatprep.subr.bf16.mxu0 %v6390_v33  ;;  %v4007_v29 = vld [vmem:[#allocation6 + $0x15a0] sm:$0xff]  ;;  %v4005_v27 = vld [vmem:[#allocation6 + $0x1590] sm:$0xff]  ;;  %v4018_v42 = vld [vmem:[#allocation6 + $0x15f8] sm:$0xff] }
 0x26a   :  { %4166 = vmatmul.mubr.f32.gmra.mrb[38].mxu0 %v3635_v1  ;;  %6519 = vmatprep.subr.bf16.mxu1 %v6518_v37  ;;  %v3667_v33 = vsel %vm3601_vm4, %v3665_v9, %v3666_v60  ;;  %v4016_v37 = vld [vmem:[#allocation6 + $0x15e8] sm:$0xff]  ;;  %v7288_v36 = vld [vmem:[#allocation2 + $0x140] sm:$0xff]  ;;  %v6404_v50 = vpack.c.bf16 %v4007_v29, %v4003_v31  ;;  %v6532_v18 = vpack.c.bf16 %v4009_v43, %v4005_v27  ;;  %v4017_v23 = vld [vmem:[#allocation6 + $0x15f0] sm:$0xff] }
 0x26b   :  { %4488 = vmatmul.mubr.f32.gmra.mrb[38].mxu1 %v3635_v1  ;;  %4171 = vmatprep.mubr.f32.mxu0 %v3647_v12  ;;  %v3663_v2 = vrot.slane %v7288_v36, 2  ;;  %v3506_v57 = vld [vmem:[#allocation2 + $0x188] sm:$0xfc]  ;;  %v4011_v58 = vld [vmem:[#allocation6 + $0x15c0] sm:$0xff]  ;;  %v6406_v16 = vpack.c.bf16 %v4016_v37, %v4012_v44  ;;  %v6534_v48 = vpack.c.bf16 %v4018_v42, %v4014_v3  ;;  %v4022_v21 = vld [vmem:[#allocation6 + $0x1618] sm:$0xff] }
 0x26c   :  { %6393 = vmatpush1.bf16.msra.mxu0 %v6392_v30  ;;  %4493 = vmatprep.mubr.f32.mxu1 %v3647_v12  ;;  %v3674_v30 = vrot.slane %v3501_v40, 2  ;;  %v4015_v1 = vld [vmem:[#allocation6 + $0x15e0] sm:$0xff]  ;;  %v3685_v7 = vrot.slane %v3506_v57, 2  ;;  %v4020_v12 = vld [vmem:[#allocation6 + $0x1608] sm:$0xff]  ;;  %v4026_v32 = vld [vmem:[#allocation6 + $0x1638] sm:$0xff] }
 0x26d   :  { %6521 = vmatpush1.bf16.msra.mxu1 %v6520_v24  ;;  %6395 = vmatprep.subr.bf16.mxu0 %v6394_v51  ;;  %v3664_v38 = vsel %vm3601_vm4, %v3662_v13, %v3663_v2  ;;  %v4013_v24 = vld [vmem:[#allocation6 + $0x15d0] sm:$0xff]  ;;  %v3677_v51 = vsel %vm3601_vm4, %v3666_v60, %v3676_v5  ;;  %v3505_v35 = vld [vmem:[#allocation2 + $0x180] sm:$0xfc]  ;;  %v3510_v56 = vld [vmem:[#allocation2 + $0x1c8] sm:$0x3]  ;;  %v6408_v62 = vpack.c.bf16 %v4015_v1, %v4011_v58 }
 0x26e   :  { %4172 = vmatmul.mubr.f32.gmra.mrb[40].mxu0 %v3644_v20  ;;  %6523 = vmatprep.subr.bf16.mxu1 %v6522_v52  ;;  %v4024_v52 = vld [vmem:[#allocation6 + $0x1628] sm:$0xff]  ;;  %v4019_v53 = vld [vmem:[#allocation6 + $0x1600] sm:$0xff]  ;;  %v3675_v14 = vsel %vm3601_vm4, %v3663_v2, %v3674_v30  ;;  %v6536_v47 = vpack.c.bf16 %v4017_v23, %v4013_v24  ;;  %v4025_v22 = vld [vmem:[#allocation6 + $0x1630] sm:$0xff]  ;;  %v6538_v45 = vpack.c.bf16 %v4026_v32, %v4022_v21  ;;  %v3696_v26 = vrot.slane %v3510_v56, 2 }
 0x26f   :  { %4494 = vmatmul.mubr.f32.gmra.mrb[40].mxu1 %v3644_v20  ;;  %4177 = vmatprep.mubr.f32.mxu0 %v3657_v63  ;;  %v7289_v54 = vld [vmem:[#allocation2 + $0x1a8] sm:$0xff]  ;;  %v6410_v11 = vpack.c.bf16 %v4024_v52, %v4020_v12  ;;  %v3509_v59 = vld [vmem:[#allocation2 + $0x1c0] sm:$0x3]  ;;  %v4033_v13 = vld [vmem:[#allocation6 + $0x1670] sm:$0xff] }
 0x270   :  { %6397 = vmatpush1.bf16.msra.mxu0 %v6396_v4  ;;  %4499 = vmatprep.mubr.f32.mxu1 %v3657_v63  ;;  %v3686_v55 = vrot.slane %v7289_v54, 2  ;;  %v3682_v4 = vrot.slane %v3505_v35, 2  ;;  %v4023_v20 = vld [vmem:[#allocation6 + $0x1620] sm:$0xff]  ;;  %v4028_v63 = vld [vmem:[#allocation6 + $0x1648] sm:$0xff]  ;;  %v4030_v0 = vld [vmem:[#allocation6 + $0x1658] sm:$0xff] }
 0x271   :  { %6525 = vmatpush1.bf16.msra.mxu1 %v6524_v41  ;;  %6399 = vmatprep.subr.bf16.mxu0 %v6398_v6  ;;  %v4021_v41 = vld [vmem:[#allocation6 + $0x1610] sm:$0xff]  ;;  %v7290_v9 = vld [vmem:[#allocation2 + $0x1a0] sm:$0xff]  ;;  %v3514_v10 = vld [vmem:[#allocation2 + $0x1e8] sm:$0xfc]  ;;  %v6412_v34 = vpack.c.bf16 %v4023_v20, %v4019_v53 }
 0x272   :  { %4178 = vmatmul.mubr.f32.gmra.mrb[42].mxu0 %v3655_v39  ;;  %6527 = vmatprep.subr.bf16.mxu1 %v6526_v19  ;;  %v3687_v6 = vsel %vm3601_vm4, %v3685_v7, %v3686_v55  ;;  %v4032_v19 = vld [vmem:[#allocation6 + $0x1668] sm:$0xff]  ;;  %v3683_v17 = vrot.slane %v7290_v9, 2  ;;  %v4034_v49 = vld [vmem:[#allocation6 + $0x1678] sm:$0xff]  ;;  %v4027_v28 = vld [vmem:[#allocation6 + $0x1640] sm:$0xff]  ;;  %v6540_v60 = vpack.c.bf16 %v4025_v22, %v4021_v41  ;;  %v3705_v27 = vrot.slane %v3514_v10, 2 }
 0x273   :  { %4500 = vmatmul.mubr.f32.gmra.mrb[42].mxu1 %v3655_v39  ;;  %4183 = vmatprep.mubr.f32.mxu0 %v3667_v33  ;;  %v6414_v31 = vpack.c.bf16 %v4032_v19, %v4028_v63  ;;  %v4031_v39 = vld [vmem:[#allocation6 + $0x1660] sm:$0xff]  ;;  %v6542_v29 = vpack.c.bf16 %v4034_v49, %v4030_v0  ;;  %v4038_v5 = vld [vmem:[#allocation6 + $0x1698] sm:$0xff]  ;;  %v4041_v30 = vld [vmem:[#allocation6 + $0x16b0] sm:$0xff] }
 0x274   :  { %6401 = vmatpush1.bf16.msra.mxu0 %v6400_v25  ;;  %4505 = vmatprep.mubr.f32.mxu1 %v3667_v33  ;;  %v3684_v15 = vsel %vm3601_vm4, %v3682_v4, %v3683_v17  ;;  %v3694_v25 = vrot.slane %v3509_v59, 2  ;;  %v3513_v43 = vld [vmem:[#allocation2 + $0x1e0] sm:$0xfc]  ;;  %v4036_v33 = vld [vmem:[#allocation6 + $0x1688] sm:$0xff]  ;;  %v4042_v40 = vld [vmem:[#allocation6 + $0x16b8] sm:$0xff]  ;;  %v6416_v2 = vpack.c.bf16 %v4031_v39, %v4027_v28 }
 0x275   :  { %6529 = vmatpush1.bf16.msra.mxu1 %v6528_v46  ;;  %6403 = vmatprep.subr.bf16.mxu0 %v6402_v8  ;;  %v4029_v46 = vld [vmem:[#allocation6 + $0x1650] sm:$0xff]  ;;  %v3697_v8 = vsel %vm3601_vm4, %v3686_v55, %v3696_v26  ;;  %v3518_v44 = vld [vmem:[#allocation2 + $0x228] sm:$0x3]  ;;  %v6546_v1 = vpack.c.bf16 %v4042_v40, %v4038_v5  ;;  %v3517_v23 = vld [vmem:[#allocation2 + $0x220] sm:$0x3] }
 0x276   :  { %4184 = vmatmul.mubr.f32.gmra.mrb[44].mxu0 %v3664_v38  ;;  %6531 = vmatprep.subr.bf16.mxu1 %v6530_v61  ;;  %v4040_v61 = vld [vmem:[#allocation6 + $0x16a8] sm:$0xff]  ;;  %v4035_v3 = vld [vmem:[#allocation6 + $0x1680] sm:$0xff]  ;;  %v3695_v42 = vsel %vm3601_vm4, %v3683_v17, %v3694_v25  ;;  %v6544_v57 = vpack.c.bf16 %v4033_v13, %v4029_v46  ;;  %v3716_v24 = vrot.slane %v3518_v44, 2  ;;  %v4046_v12 = vld [vmem:[#allocation6 + $0x16d8] sm:$0xff] }
 0x277   :  { %4506 = vmatmul.mubr.f32.gmra.mrb[44].mxu1 %v3664_v38  ;;  %4189 = vmatprep.mubr.f32.mxu0 %v3677_v51  ;;  %v7291_v37 = vld [vmem:[#allocation2 + $0x208] sm:$0xff]  ;;  %v6418_v58 = vpack.c.bf16 %v4040_v61, %v4036_v33  ;;  %v7292_v7 = vld [vmem:[#allocation2 + $0x200] sm:$0xff]  ;;  %v4049_v4 = vld [vmem:[#allocation6 + $0x16f0] sm:$0xff] }
 0x278   :  { %6405 = vmatpush1.bf16.msra.mxu0 %v6404_v50  ;;  %4511 = vmatprep.mubr.f32.mxu1 %v3677_v51  ;;  %v3706_v36 = vrot.slane %v7291_v37, 2  ;;  %v3702_v50 = vrot.slane %v3513_v43, 2  ;;  %v4039_v38 = vld [vmem:[#allocation6 + $0x16a0] sm:$0xff]  ;;  %v4044_v51 = vld [vmem:[#allocation6 + $0x16c8] sm:$0xff]  ;;  %v3703_v35 = vrot.slane %v7292_v7, 2  ;;  %v4050_v52 = vld [vmem:[#allocation6 + $0x16f8] sm:$0xff] }
 0x279   :  { %6533 = vmatpush1.bf16.msra.mxu1 %v6532_v18  ;;  %6407 = vmatprep.subr.bf16.mxu0 %v6406_v16  ;;  %v4037_v18 = vld [vmem:[#allocation6 + $0x1690] sm:$0xff]  ;;  %v3522_v21 = vld [vmem:[#allocation2 + $0x248] sm:$0xfc]  ;;  %v6420_v32 = vpack.c.bf16 %v4039_v38, %v4035_v3  ;;  %v4043_v56 = vld [vmem:[#allocation6 + $0x16c0] sm:$0xff]  ;;  %v6550_v20 = vpack.c.bf16 %v4050_v52, %v4046_v12 }
 0x27a   :  { %4190 = vmatmul.mubr.f32.gmra.mrb[46].mxu0 %v3675_v14  ;;  %6535 = vmatprep.subr.bf16.mxu1 %v6534_v48  ;;  %v3707_v16 = vsel %vm3601_vm4, %v3705_v27, %v3706_v36  ;;  %v4048_v48 = vld [vmem:[#allocation6 + $0x16e8] sm:$0xff]  ;;  %v3704_v54 = vsel %vm3601_vm4, %v3702_v50, %v3703_v35  ;;  %v6548_v55 = vpack.c.bf16 %v4041_v30, %v4037_v18  ;;  %v3725_v41 = vrot.slane %v3522_v21, 2  ;;  %v3521_v22 = vld [vmem:[#allocation2 + $0x240] sm:$0xfc]  ;;  %v4054_v26 = vld [vmem:[#allocation6 + $0x1718] sm:$0xff] }
 0x27b   :  { %4512 = vmatmul.mubr.f32.gmra.mrb[46].mxu1 %v3675_v14  ;;  %4195 = vmatprep.mubr.f32.mxu0 %v3687_v6  ;;  %v6422_v53 = vpack.c.bf16 %v4048_v48, %v4044_v51  ;;  %v4047_v14 = vld [vmem:[#allocation6 + $0x16e0] sm:$0xff]  ;;  %v4058_v59 = vld [vmem:[#allocation6 + $0x1738] sm:$0xff]  ;;  %v4057_v25 = vld [vmem:[#allocation6 + $0x1730] sm:$0xff] }
 0x27c   :  { %6409 = vmatpush1.bf16.msra.mxu0 %v6408_v62  ;;  %4517 = vmatprep.mubr.f32.mxu1 %v3687_v6  ;;  %v3714_v62 = vrot.slane %v3517_v23, 2  ;;  %v4052_v6 = vld [vmem:[#allocation6 + $0x1708] sm:$0xff]  ;;  %v6424_v17 = vpack.c.bf16 %v4047_v14, %v4043_v56  ;;  %v4051_v0 = vld [vmem:[#allocation6 + $0x1700] sm:$0xff]  ;;  %v6554_v39 = vpack.c.bf16 %v4058_v59, %v4054_v26  ;;  %v4062_v33 = vld [vmem:[#allocation6 + $0x1758] sm:$0xff] }
 0x27d   :  { %6537 = vmatpush1.bf16.msra.mxu1 %v6536_v47  ;;  %6411 = vmatprep.subr.bf16.mxu0 %v6410_v11  ;;  %v4045_v47 = vld [vmem:[#allocation6 + $0x16d0] sm:$0xff]  ;;  %v3717_v11 = vsel %vm3601_vm4, %v3706_v36, %v3716_v24  ;;  %v3526_v63 = vld [vmem:[#allocation2 + $0x288] sm:$0x3]  ;;  %v3525_v13 = vld [vmem:[#allocation2 + $0x280] sm:$0x3] }
 0x27e   :  { %4196 = vmatmul.mubr.f32.gmra.mrb[48].mxu0 %v3684_v15  ;;  %6539 = vmatprep.subr.bf16.mxu1 %v6538_v45  ;;  %v4056_v45 = vld [vmem:[#allocation6 + $0x1728] sm:$0xff]  ;;  %v3715_v49 = vsel %vm3601_vm4, %v3703_v35, %v3714_v62  ;;  %v6552_v10 = vpack.c.bf16 %v4049_v4, %v4045_v47  ;;  %v3736_v46 = vrot.slane %v3526_v63, 2  ;;  %v7294_v27 = vld [vmem:[#allocation2 + $0x260] sm:$0xff]  ;;  %v4065_v50 = vld [vmem:[#allocation6 + $0x1770] sm:$0xff] }
 0x27f   :  { %4518 = vmatmul.mubr.f32.gmra.mrb[48].mxu1 %v3684_v15  ;;  %4201 = vmatprep.mubr.f32.mxu0 %v3697_v8  ;;  %v7293_v19 = vld [vmem:[#allocation2 + $0x268] sm:$0xff]  ;;  %v6426_v28 = vpack.c.bf16 %v4056_v45, %v4052_v6  ;;  %v3723_v43 = vrot.slane %v7294_v27, 2  ;;  %v4066_v61 = vld [vmem:[#allocation6 + $0x1778] sm:$0xff]  ;;  %v3529_v30 = vld [vmem:[#allocation2 + $0x2a0] sm:$0xfc] }
 0x280   :  { %6413 = vmatpush1.bf16.msra.mxu0 %v6412_v34  ;;  %4523 = vmatprep.mubr.f32.mxu1 %v3697_v8  ;;  %v3726_v9 = vrot.slane %v7293_v19, 2  ;;  %v3722_v34 = vrot.slane %v3521_v22, 2  ;;  %v4055_v15 = vld [vmem:[#allocation6 + $0x1720] sm:$0xff]  ;;  %v4060_v8 = vld [vmem:[#allocation6 + $0x1748] sm:$0xff]  ;;  %v6558_v38 = vpack.c.bf16 %v4066_v61, %v4062_v33  ;;  %v4070_v24 = vld [vmem:[#allocation6 + $0x1798] sm:$0xff] }
 0x281   :  { %6541 = vmatpush1.bf16.msra.mxu1 %v6540_v60  ;;  %6415 = vmatprep.subr.bf16.mxu0 %v6414_v31  ;;  %v4053_v60 = vld [vmem:[#allocation6 + $0x1710] sm:$0xff]  ;;  %v3530_v5 = vld [vmem:[#allocation2 + $0x2a8] sm:$0xfc]  ;;  %v6428_v40 = vpack.c.bf16 %v4055_v15, %v4051_v0  ;;  %v4059_v44 = vld [vmem:[#allocation6 + $0x1740] sm:$0xff] }
 0x282   :  { %4202 = vmatmul.mubr.f32.gmra.mrb[50].mxu0 %v3695_v42  ;;  %6543 = vmatprep.subr.bf16.mxu1 %v6542_v29  ;;  %v3727_v31 = vsel %vm3601_vm4, %v3725_v41, %v3726_v9  ;;  %v4064_v29 = vld [vmem:[#allocation6 + $0x1768] sm:$0xff]  ;;  %v3724_v37 = vsel %vm3601_vm4, %v3722_v34, %v3723_v43  ;;  %v6556_v36 = vpack.c.bf16 %v4057_v25, %v4053_v60  ;;  %v3745_v18 = vrot.slane %v3530_v5, 2  ;;  %v4074_v23 = vld [vmem:[#allocation6 + $0x17b8] sm:$0xff]  ;;  %v4067_v12 = vld [vmem:[#allocation6 + $0x1780] sm:$0xff] }
 0x283   :  { %4524 = vmatmul.mubr.f32.gmra.mrb[50].mxu1 %v3695_v42  ;;  %4207 = vmatprep.mubr.f32.mxu0 %v3707_v16  ;;  %v6430_v3 = vpack.c.bf16 %v4064_v29, %v4060_v8  ;;  %v4063_v42 = vld [vmem:[#allocation6 + $0x1760] sm:$0xff]  ;;  %v4073_v62 = vld [vmem:[#allocation6 + $0x17b0] sm:$0xff]  ;;  %v6562_v14 = vpack.c.bf16 %v4074_v23, %v4070_v24  ;;  %v4078_v6 = vld [vmem:[#allocation6 + $0x17d8] sm:$0xff] }
 0x284   :  { %6417 = vmatpush1.bf16.msra.mxu0 %v6416_v2  ;;  %4529 = vmatprep.mubr.f32.mxu1 %v3707_v16  ;;  %v3734_v2 = vrot.slane %v3525_v13, 2  ;;  %v4068_v16 = vld [vmem:[#allocation6 + $0x1788] sm:$0xff]  ;;  %v6432_v35 = vpack.c.bf16 %v4063_v42, %v4059_v44  ;;  %v3533_v4 = vld [vmem:[#allocation2 + $0x2e0] sm:$0x3]  ;;  %v7297_v15 = vld [vmem:[#allocation2 + $0x38] sm:$0xff] }
 0x285   :  { %6545 = vmatpush1.bf16.msra.mxu1 %v6544_v57  ;;  %6419 = vmatprep.subr.bf16.mxu0 %v6418_v58  ;;  %v4061_v57 = vld [vmem:[#allocation6 + $0x1750] sm:$0xff]  ;;  %v3737_v58 = vsel %vm3601_vm4, %v3726_v9, %v3736_v46  ;;  %v3534_v51 = vld [vmem:[#allocation2 + $0x2e8] sm:$0x3]  ;;  %v7296_v41 = vld [vmem:[#allocation2 + $0x2c0] sm:$0xff]  ;;  %v3754_v9 = vrot.slane %v3533_v4, 2  ;;  %v3612_v60 = vrot.slane %v7297_v15, 2 }
 0x286   :  { %4208 = vmatmul.mubr.f32.gmra.mrb[52].mxu0 %v3704_v54  ;;  %6547 = vmatprep.subr.bf16.mxu1 %v6546_v1  ;;  %v4072_v1 = vld [vmem:[#allocation6 + $0x17a8] sm:$0xff]  ;;  %v3735_v52 = vsel %vm3601_vm4, %v3723_v43, %v3734_v2  ;;  %v6560_v21 = vpack.c.bf16 %v4065_v50, %v4061_v57  ;;  %v3756_v47 = vrot.slane %v3534_v51, 2  ;;  %v3743_v22 = vrot.slane %v7296_v41, 2  ;;  %v4082_v45 = vld [vmem:[#allocation6 + $0x17f8] sm:$0xff]  ;;  %v4075_v59 = vld [vmem:[#allocation6 + $0x17c0] sm:$0xff] }
 0x287   :  { %4530 = vmatmul.mubr.f32.gmra.mrb[52].mxu1 %v3704_v54  ;;  %4213 = vmatprep.mubr.f32.mxu0 %v3717_v11  ;;  %v7295_v48 = vld [vmem:[#allocation2 + $0x2c8] sm:$0xff]  ;;  %v6434_v56 = vpack.c.bf16 %v4072_v1, %v4068_v16  ;;  %v4081_v25 = vld [vmem:[#allocation6 + $0x17f0] sm:$0xff]  ;;  %v1934_v46 = vld [vmem:[#allocation6 + $0x18] sm:$0xff] }
 0x288   :  { %6421 = vmatpush1.bf16.msra.mxu0 %v6420_v32  ;;  %4535 = vmatprep.mubr.f32.mxu1 %v3717_v11  ;;  %v3746_v7 = vrot.slane %v7295_v48, 2  ;;  %v3742_v32 = vrot.slane %v3529_v30, 2  ;;  %v4071_v54 = vld [vmem:[#allocation6 + $0x17a0] sm:$0xff]  ;;  %v4076_v11 = vld [vmem:[#allocation6 + $0x17c8] sm:$0xff]  ;;  %v1938_v13 = vld [vmem:[#allocation6 + $0x38] sm:$0xff]  ;;  %v3755_v43 = vsel %vm3601_vm4, %v3743_v22, %v3754_v9 }
 0x289   :  { %6549 = vmatpush1.bf16.msra.mxu1 %v6548_v55  ;;  %6423 = vmatprep.subr.bf16.mxu0 %v6422_v53  ;;  %v4069_v55 = vld [vmem:[#allocation6 + $0x1790] sm:$0xff]  ;;  %v6436_v26 = vpack.c.bf16 %v4071_v54, %v4067_v12  ;;  %v4079_v0 = vld [vmem:[#allocation6 + $0x17e0] sm:$0xff]  ;;  %v6698_v2 = vpack.c.bf16 %v1938_v13, %v1934_v46  ;;  %v1942_v16 = vld [vmem:[#allocation6 + $0x58] sm:$0xff] }
 0x28a   :  { %4214 = vmatmul.mubr.f32.gmra.mrb[54].mxu0 %v3715_v49  ;;  %6551 = vmatprep.subr.bf16.mxu1 %v6550_v20  ;;  %v3747_v53 = vsel %vm3601_vm4, %v3745_v18, %v3746_v7  ;;  %v4080_v20 = vld [vmem:[#allocation6 + $0x17e8] sm:$0xff]  ;;  %v3744_v63 = vsel %vm3601_vm4, %v3742_v32, %v3743_v22  ;;  %v6564_v19 = vpack.c.bf16 %v4073_v62, %v4069_v55  ;;  %v3480_v27 = vld [vmem:[#allocation2 + $0x58] sm:$0x3]  ;;  %v3475_v61 = vld [vmem:[#allocation2 + $0x10] sm:$0xfc] }
 0x28b   :  { %4536 = vmatmul.mubr.f32.gmra.mrb[54].mxu1 %v3715_v49  ;;  %4219 = vmatprep.mubr.f32.mxu0 %v3727_v31  ;;  %v3476_v49 = vld [vmem:[#allocation2 + $0x18] sm:$0xfc]  ;;  %v3757_v34 = vsel %vm3601_vm4, %v3746_v7, %v3756_v47  ;;  %v6440_v8 = vpack.c.bf16 %v4079_v0, %v4075_v59  ;;  %v1933_v42 = vld [vmem:[#allocation6 + $0x10] sm:$0xff]  ;;  %v3620_v50 = vrot.slane %v3480_v27, 2  ;;  %v1944_v18 = vld [vmem:[#allocation6 + $0x68] sm:$0xff]  ;;  %v3608_v30 = vrot.slane %v3475_v61, 2 }
 0x28c   :  { %6425 = vmatpush1.bf16.msra.mxu0 %v6424_v17  ;;  %4541 = vmatprep.mubr.f32.mxu1 %v3727_v31  ;;  %v6438_v17 = vpack.c.bf16 %v4080_v20, %v4076_v11  ;;  %v1932_v31 = vld [vmem:[#allocation6 + $0x8] sm:$0xff]  ;;  %v3611_v29 = vrot.slane %v3476_v49, 2  ;;  %v1937_v57 = vld [vmem:[#allocation6 + $0x30] sm:$0xff]  ;;  %v1946_v1 = vld [vmem:[#allocation6 + $0x78] sm:$0xff] }
 0x28d   :  { %6553 = vmatpush1.bf16.msra.mxu1 %v6552_v10  ;;  %6427 = vmatprep.subr.bf16.mxu0 %v6426_v28  ;;  %v4077_v10 = vld [vmem:[#allocation6 + $0x17d0] sm:$0xff]  ;;  %v6566_v28 = vpack.c.bf16 %v4082_v45, %v4078_v6  ;;  %v3484_v23 = vld [vmem:[#allocation2 + $0x78] sm:$0xfc]  ;;  %v6700_v48 = vpack.c.bf16 %v1937_v57, %v1933_v42  ;;  %v1939_v12 = vld [vmem:[#allocation6 + $0x40] sm:$0xff]  ;;  %v3621_v32 = vsel %vm3601_vm4, %v3612_v60, %v3620_v50 }
 0x28e   :  { %4220 = vmatmul.mubr.f32.gmra.mrb[56].mxu0 %v3724_v37  ;;  %6555 = vmatprep.subr.bf16.mxu1 %v6554_v39  ;;  %v1936_v39 = vld [vmem:[#allocation6 + $0x28] sm:$0xff]  ;;  %v6568_v33 = vpack.c.bf16 %v4081_v25, %v4077_v10  ;;  %v3613_v44 = vsel %vm3601_vm4, %v3611_v29, %v3612_v60  ;;  %v7299_v54 = vld [vmem:[#allocation2 + $0x98] sm:$0xff]  ;;  %v3631_v20 = vrot.slane %v3484_v23, 2  ;;  %v3483_v22 = vld [vmem:[#allocation2 + $0x70] sm:$0xfc] }
 0x28f   :  { %4542 = vmatmul.mubr.f32.gmra.mrb[56].mxu1 %v3724_v37  ;;  %4225 = vmatprep.mubr.f32.mxu0 %v3737_v58  ;;  %v6570_v5 = vpack.c.bf16 %v1936_v39, %v1932_v31  ;;  %v7298_v37 = vld [vmem:[#allocation2 + $0x30] sm:$0xff]  ;;  %v3632_v55 = vrot.slane %v7299_v54, 2  ;;  %v1950_v47 = vld [vmem:[#allocation6 + $0x98] sm:$0xff]  ;;  %v1947_v6 = vld [vmem:[#allocation6 + $0x80] sm:$0xff]  ;;  %v3628_v25 = vrot.slane %v3483_v22, 2 }
 0x290   :  { %6429 = vmatpush1.bf16.msra.mxu0 %v6428_v40  ;;  %4547 = vmatprep.mubr.f32.mxu1 %v3737_v58  ;;  %v1931_v40 = vld [vmem:[#allocation6] sm:$0xff]  ;;  %v3479_v58 = vld [vmem:[#allocation2 + $0x50] sm:$0x3]  ;;  %v1954_v4 = vld [vmem:[#allocation6 + $0xb8] sm:$0xff] }
 0x291   :  { %6557 = vmatpush1.bf16.msra.mxu1 %v6556_v36  ;;  %6431 = vmatprep.subr.bf16.mxu0 %v6430_v3  ;;  %v3609_v36 = vrot.slane %v7298_v37, 2  ;;  %v1935_v3 = vld [vmem:[#allocation6 + $0x20] sm:$0xff]  ;;  %v3618_v7 = vrot.slane %v3479_v58, 2  ;;  %v1945_v62 = vld [vmem:[#allocation6 + $0x70] sm:$0xff]  ;;  %v3633_v49 = vsel %vm3601_vm4, %v3631_v20, %v3632_v55  ;;  %v6706_v10 = vpack.c.bf16 %v1954_v4, %v1950_v47  ;;  %v1956_v15 = vld [vmem:[#allocation6 + $0xc8] sm:$0xff] }
 0x292   :  { %4226 = vmatmul.mubr.f32.gmra.mrb[58].mxu0 %v3735_v52  ;;  %6559 = vmatprep.subr.bf16.mxu1 %v6558_v38  ;;  %v1940_v38 = vld [vmem:[#allocation6 + $0x48] sm:$0xff]  ;;  %v6572_v24 = vpack.c.bf16 %v1935_v3, %v1931_v40  ;;  %v3488_v11 = vld [vmem:[#allocation2 + $0xb8] sm:$0x3]  ;;  %v1951_v9 = vld [vmem:[#allocation6 + $0xa0] sm:$0xff] }
 0x293   :  { %4548 = vmatmul.mubr.f32.gmra.mrb[58].mxu1 %v3735_v52  ;;  %4231 = vmatprep.mubr.f32.mxu0 %v3747_v53  ;;  %v3610_v51 = vsel %vm3601_vm4, %v3608_v30, %v3609_v36  ;;  %v1943_v52 = vld [vmem:[#allocation6 + $0x60] sm:$0xff]  ;;  %v3619_v45 = vsel %vm3601_vm4, %v3609_v36, %v3618_v7  ;;  %v7300_v59 = vld [vmem:[#allocation2 + $0x90] sm:$0xff]  ;;  %v1958_v31 = vld [vmem:[#allocation6 + $0xd8] sm:$0xff]  ;;  %v6580_v46 = vpack.c.bf16 %v1951_v9, %v1947_v6 }
 0x294   :  { %6433 = vmatpush1.bf16.msra.mxu0 %v6432_v35  ;;  %4553 = vmatprep.mubr.f32.mxu1 %v3747_v53  ;;  %v6574_v35 = vpack.c.bf16 %v1944_v18, %v1940_v38  ;;  %v1948_v53 = vld [vmem:[#allocation6 + $0x88] sm:$0xff]  ;;  %v6576_v41 = vpack.c.bf16 %v1943_v52, %v1939_v12  ;;  %v1953_v0 = vld [vmem:[#allocation6 + $0xb0] sm:$0xff]  ;;  %v1962_v39 = vld [vmem:[#allocation6 + $0xf8] sm:$0xff] }
 0x295   :  { %6561 = vmatpush1.bf16.msra.mxu1 %v6560_v21  ;;  %6435 = vmatprep.subr.bf16.mxu0 %v6434_v56  ;;  %v1941_v21 = vld [vmem:[#allocation6 + $0x50] sm:$0xff]  ;;  %v6702_v56 = vpack.c.bf16 %v1946_v1, %v1942_v16  ;;  %v1960_v60 = vld [vmem:[#allocation6 + $0xe8] sm:$0xff]  ;;  %v3492_v13 = vld [vmem:[#allocation2 + $0xd8] sm:$0xfc] }
 0x296   :  { %4232 = vmatmul.mubr.f32.gmra.mrb[60].mxu0 %v3744_v63  ;;  %6563 = vmatprep.subr.bf16.mxu1 %v6562_v14  ;;  %v1952_v14 = vld [vmem:[#allocation6 + $0xa8] sm:$0xff]  ;;  %v1959_v61 = vld [vmem:[#allocation6 + $0xe0] sm:$0xff]  ;;  %v7301_v37 = vld [vmem:[#allocation2 + $0xf8] sm:$0xff]  ;;  %v3651_v38 = vrot.slane %v3492_v13, 2 }
 0x297   :  { %4554 = vmatmul.mubr.f32.gmra.mrb[60].mxu1 %v3744_v63  ;;  %4237 = vmatprep.mubr.f32.mxu0 %v3757_v34  ;;  %v3629_v63 = vrot.slane %v7300_v59, 2  ;;  %v3652_v36 = vrot.slane %v7301_v37, 2  ;;  %v1964_v3 = vld [vmem:[#allocation6 + $0x108] sm:$0xff]  ;;  %v1966_v57 = vld [vmem:[#allocation6 + $0x118] sm:$0xff]  ;;  %v3491_v30 = vld [vmem:[#allocation2 + $0xd0] sm:$0xfc] }
 0x298   :  { %6437 = vmatpush1.bf16.msra.mxu0 %v6436_v26  ;;  %4559 = vmatprep.mubr.f32.mxu1 %v3757_v34  ;;  %v6704_v26 = vpack.c.bf16 %v1945_v62, %v1941_v21  ;;  %v3640_v34 = vrot.slane %v3488_v11, 2  ;;  %v1968_v42 = vld [vmem:[#allocation6 + $0x128] sm:$0xff]  ;;  %v1970_v50 = vld [vmem:[#allocation6 + $0x138] sm:$0xff]  ;;  %v1963_v16 = vld [vmem:[#allocation6 + $0x100] sm:$0xff]  ;;  %v3648_v62 = vrot.slane %v3491_v30, 2 }
 0x299   :  { %6565 = vmatpush1.bf16.msra.mxu1 %v6564_v19  ;;  %6439 = vmatprep.subr.bf16.mxu0 %v6438_v17  ;;  %v6578_v19 = vpack.c.bf16 %v1952_v14, %v1948_v53  ;;  %v1949_v17 = vld [vmem:[#allocation6 + $0x90] sm:$0xff]  ;;  %v1967_v7 = vld [vmem:[#allocation6 + $0x120] sm:$0xff]  ;;  %v3653_v52 = vsel %vm3601_vm4, %v3651_v38, %v3652_v36  ;;  %v6714_v21 = vpack.c.bf16 %v1970_v50, %v1966_v57  ;;  %v1972_v54 = vld [vmem:[#allocation6 + $0x148] sm:$0xff] }
 0x29a   :  { %4238 = vmatmul.mubr.f32.gmra.mrb[62].mxu0 %v3755_v43  ;;  %6567 = vmatprep.subr.bf16.mxu1 %v6566_v28  ;;  %v3487_v28 = vld [vmem:[#allocation2 + $0xb0] sm:$0x3]  ;;  %v6708_v29 = vpack.c.bf16 %v1953_v0, %v1949_v17  ;;  %v3641_v40 = vsel %vm3601_vm4, %v3632_v55, %v3640_v34  ;;  %v3496_v58 = vld [vmem:[#allocation2 + $0x118] sm:$0x3]  ;;  %v6588_v47 = vpack.c.bf16 %v1967_v7, %v1963_v16  ;;  %v3500_v4 = vld [vmem:[#allocation2 + $0x138] sm:$0xfc] }
 0x29b   :  { %4560 = vmatmul.mubr.f32.gmra.mrb[62].mxu1 %v3755_v43  ;;  %4308 = vmatprep.mubr.f32.mxu0 %v3613_v44  ;;  %v3638_v27 = vrot.slane %v3487_v28, 2  ;;  %v6582_v43 = vpack.c.bf16 %v1960_v60, %v1956_v15  ;;  %v7302_v23 = vld [vmem:[#allocation2 + $0xf0] sm:$0xff]  ;;  %v1974_v53 = vld [vmem:[#allocation6 + $0x158] sm:$0xff]  ;;  %v1971_v6 = vld [vmem:[#allocation6 + $0x140] sm:$0xff]  ;;  %v3671_v15 = vrot.slane %v3500_v4, 2 }
 0x29c   :  { %6441 = vmatpush1.bf16.msra.mxu0 %v6440_v8  ;;  %4630 = vmatprep.mubr.f32.mxu1 %v3613_v44  ;;  %v3630_v8 = vsel %vm3601_vm4, %v3628_v25, %v3629_v63  ;;  %v6710_v44 = vpack.c.bf16 %v1962_v39, %v1958_v31  ;;  %v1969_v12 = vld [vmem:[#allocation6 + $0x130] sm:$0xff]  ;;  %v1976_v55 = vld [vmem:[#allocation6 + $0x168] sm:$0xff]  ;;  %v1978_v14 = vld [vmem:[#allocation6 + $0x178] sm:$0xff] }
 0x29d   :  { %6569 = vmatpush1.bf16.msra.mxu1 %v6568_v33  ;;  %6571 = vmatprep.subr.bf16.mxu0 %v6570_v5  ;;  %v1955_v33 = vld [vmem:[#allocation6 + $0xc0] sm:$0xff]  ;;  %v1957_v5 = vld [vmem:[#allocation6 + $0xd0] sm:$0xff]  ;;  %v3639_v1 = vsel %vm3601_vm4, %v3629_v63, %v3638_v27  ;;  %v6590_v22 = vpack.c.bf16 %v1976_v55, %v1972_v54  ;;  %v6718_v63 = vpack.c.bf16 %v1978_v14, %v1974_v53  ;;  %v1980_v0 = vld [vmem:[#allocation6 + $0x188] sm:$0xff] }
 0x29e   :  { %6699 = vmatprep.subr.bf16.mxu1 %v6698_v2  ;;  %v1961_v2 = vld [vmem:[#allocation6 + $0xf0] sm:$0xff]  ;;  %v6584_v18 = vpack.c.bf16 %v1959_v61, %v1955_v33  ;;  %v1986_v34 = vld [vmem:[#allocation6 + $0x1b8] sm:$0xff]  ;;  %v1979_v31 = vld [vmem:[#allocation6 + $0x180] sm:$0xff] }
 0x29f   :  { %4309 = vmatmul.mubr.f32.vlgmr.msra.gmra.mrb[32].mxu0 %v3610_v51  ;;  %v1977_v17 = vld [vmem:[#allocation6 + $0x170] sm:$0xff]  ;;  %v1983_v27 = vld [vmem:[#allocation6 + $0x1a0] sm:$0xff]  ;;  %v1988_v37 = vld [vmem:[#allocation6 + $0x1c8] sm:$0xff] }
 0x2a0   :  { %4631 = vmatmul.mubr.f32.vlgmr.msra.gmra.mrb[32].mxu1 %v3610_v51  ;;  %4314 = vmatprep.mubr.f32.mxu0 %v3621_v32  ;;  %v3649_v51 = vrot.slane %v7302_v23, 2  ;;  %v3504_v28 = vld [vmem:[#allocation2 + $0x178] sm:$0x3]  ;;  %v3499_v25 = vld [vmem:[#allocation2 + $0x130] sm:$0xfc]  ;;  %v6596_v57 = vpack.c.bf16 %v1983_v27, %v1979_v31  ;;  %v1987_v16 = vld [vmem:[#allocation6 + $0x1c0] sm:$0xff] }
 0x2a1   :  { %4636 = vmatprep.mubr.f32.mxu1 %v3621_v32  ;;  %6573 = vmatpush1.bf16.msra.mxu0 %v6572_v24  ;;  %v6712_v24 = vpack.c.bf16 %v1961_v2, %v1957_v5  ;;  %v3660_v32 = vrot.slane %v3496_v58, 2  ;;  %v7304_v13 = vld [vmem:[#allocation2 + $0x150] sm:$0xff]  ;;  %v3668_v2 = vrot.slane %v3499_v25, 2  ;;  %v3508_v50 = vld [vmem:[#allocation2 + $0x198] sm:$0xfc]  ;;  %v1995_v53 = vld [vmem:[#allocation6 + $0x200] sm:$0xff] }
 0x2a2   :  { %6701 = vmatpush1.bf16.msra.mxu1 %v6700_v48  ;;  %6575 = vmatprep.subr.bf16.mxu0 %v6574_v35  ;;  %v6586_v48 = vpack.c.bf16 %v1968_v42, %v1964_v3  ;;  %v1965_v35 = vld [vmem:[#allocation6 + $0x110] sm:$0xff]  ;;  %v3650_v11 = vsel %vm3601_vm4, %v3648_v62, %v3649_v51  ;;  %v1990_v3 = vld [vmem:[#allocation6 + $0x1d8] sm:$0xff]  ;;  %v3691_v54 = vrot.slane %v3508_v50, 2  ;;  %v2003_v31 = vld [vmem:[#allocation6 + $0x240] sm:$0xff] }
 0x2a3   :  { %4315 = vmatmul.mubr.f32.gmra.mrb[34].mxu0 %v3619_v45  ;;  %6703 = vmatprep.subr.bf16.mxu1 %v6702_v56  ;;  %v3495_v56 = vld [vmem:[#allocation2 + $0x110] sm:$0x3]  ;;  %v6716_v20 = vpack.c.bf16 %v1969_v12, %v1965_v35  ;;  %v3661_v59 = vsel %vm3601_vm4, %v3652_v36, %v3660_v32  ;;  %v1994_v42 = vld [vmem:[#allocation6 + $0x1f8] sm:$0xff]  ;;  %v3507_v62 = vld [vmem:[#allocation2 + $0x190] sm:$0xfc] }
 0x2a4   :  { %4637 = vmatmul.mubr.f32.gmra.mrb[34].mxu1 %v3619_v45  ;;  %4320 = vmatprep.mubr.f32.mxu0 %v3633_v49  ;;  %v1975_v45 = vld [vmem:[#allocation6 + $0x160] sm:$0xff]  ;;  %v1985_v33 = vld [vmem:[#allocation6 + $0x1b0] sm:$0xff]  ;;  %v1992_v36 = vld [vmem:[#allocation6 + $0x1e8] sm:$0xff] }
 0x2a5   :  { %4642 = vmatprep.mubr.f32.mxu1 %v3633_v49  ;;  %6577 = vmatpush1.bf16.msra.mxu0 %v6576_v41  ;;  %v3658_v41 = vrot.slane %v3495_v56, 2  ;;  %v1984_v49 = vld [vmem:[#allocation6 + $0x1a8] sm:$0xff]  ;;  %v6592_v60 = vpack.c.bf16 %v1975_v45, %v1971_v6  ;;  %v6598_v30 = vpack.c.bf16 %v1992_v36, %v1988_v37  ;;  %v1993_v35 = vld [vmem:[#allocation6 + $0x1f0] sm:$0xff]  ;;  %v2002_v32 = vld [vmem:[#allocation6 + $0x238] sm:$0xff] }
 0x2a6   :  { %6705 = vmatpush1.bf16.msra.mxu1 %v6704_v26  ;;  %6579 = vmatprep.subr.bf16.mxu0 %v6578_v19  ;;  %v1973_v26 = vld [vmem:[#allocation6 + $0x150] sm:$0xff]  ;;  %v1996_v12 = vld [vmem:[#allocation6 + $0x208] sm:$0xff] }
 0x2a7   :  { %4321 = vmatmul.mubr.f32.gmra.mrb[36].mxu0 %v3630_v8  ;;  %6707 = vmatprep.subr.bf16.mxu1 %v6706_v10  ;;  %v7303_v19 = vld [vmem:[#allocation2 + $0x158] sm:$0xff]  ;;  %v3659_v39 = vsel %vm3601_vm4, %v3649_v51, %v3658_v41  ;;  %v6726_v51 = vpack.c.bf16 %v1994_v42, %v1990_v3  ;;  %v7306_v4 = vld [vmem:[#allocation2 + $0x1b0] sm:$0xff]  ;;  %v1999_v41 = vld [vmem:[#allocation6 + $0x220] sm:$0xff] }
 0x2a8   :  { %4643 = vmatmul.mubr.f32.gmra.mrb[36].mxu1 %v3630_v8  ;;  %4326 = vmatprep.mubr.f32.mxu0 %v3641_v40  ;;  %v3672_v9 = vrot.slane %v7303_v19, 2  ;;  %v1982_v10 = vld [vmem:[#allocation6 + $0x198] sm:$0xff]  ;;  %v3669_v8 = vrot.slane %v7304_v13, 2  ;;  %v2001_v6 = vld [vmem:[#allocation6 + $0x230] sm:$0xff]  ;;  %v2004_v19 = vld [vmem:[#allocation6 + $0x248] sm:$0xff] }
 0x2a9   :  { %4648 = vmatprep.mubr.f32.mxu1 %v3641_v40  ;;  %6581 = vmatpush1.bf16.msra.mxu0 %v6580_v46  ;;  %v6720_v46 = vpack.c.bf16 %v1977_v17, %v1973_v26  ;;  %v6722_v5 = vpack.c.bf16 %v1986_v34, %v1982_v10  ;;  %v3680_v40 = vrot.slane %v3504_v28, 2  ;;  %v3512_v56 = vld [vmem:[#allocation2 + $0x1d8] sm:$0x3]  ;;  %v3688_v17 = vrot.slane %v3507_v62, 2  ;;  %v3516_v34 = vld [vmem:[#allocation2 + $0x1f8] sm:$0xfc] }
 0x2aa   :  { %6709 = vmatpush1.bf16.msra.mxu1 %v6708_v29  ;;  %6583 = vmatprep.subr.bf16.mxu0 %v6582_v43  ;;  %v6594_v29 = vpack.c.bf16 %v1984_v49, %v1980_v0  ;;  %v1981_v43 = vld [vmem:[#allocation6 + $0x190] sm:$0xff]  ;;  %v3673_v61 = vsel %vm3601_vm4, %v3671_v15, %v3672_v9  ;;  %v3670_v58 = vsel %vm3601_vm4, %v3668_v2, %v3669_v8  ;;  %v2006_v0 = vld [vmem:[#allocation6 + $0x258] sm:$0xff]  ;;  %v3711_v37 = vrot.slane %v3516_v34, 2  ;;  %v2011_v3 = vld [vmem:[#allocation6 + $0x280] sm:$0xff] }
 0x2ab   :  { %4327 = vmatmul.mubr.f32.gmra.mrb[38].mxu0 %v3639_v1  ;;  %6711 = vmatprep.subr.bf16.mxu1 %v6710_v44  ;;  %v3503_v44 = vld [vmem:[#allocation2 + $0x170] sm:$0x3]  ;;  %v6724_v38 = vpack.c.bf16 %v1985_v33, %v1981_v43  ;;  %v3681_v23 = vsel %vm3601_vm4, %v3672_v9, %v3680_v40  ;;  %v2010_v49 = vld [vmem:[#allocation6 + $0x278] sm:$0xff]  ;;  %v6604_v10 = vpack.c.bf16 %v1999_v41, %v1995_v53  ;;  %v3515_v2 = vld [vmem:[#allocation2 + $0x1f0] sm:$0xfc] }
 0x2ac   :  { %4649 = vmatmul.mubr.f32.gmra.mrb[38].mxu1 %v3639_v1  ;;  %4332 = vmatprep.mubr.f32.mxu0 %v3653_v52  ;;  %v1991_v1 = vld [vmem:[#allocation6 + $0x1e0] sm:$0xff]  ;;  %v2008_v9 = vld [vmem:[#allocation6 + $0x268] sm:$0xff]  ;;  %v2009_v43 = vld [vmem:[#allocation6 + $0x270] sm:$0xff] }
 0x2ad   :  { %4654 = vmatprep.mubr.f32.mxu1 %v3653_v52  ;;  %6585 = vmatpush1.bf16.msra.mxu0 %v6584_v18  ;;  %v3678_v18 = vrot.slane %v3503_v44, 2  ;;  %v2000_v52 = vld [vmem:[#allocation6 + $0x228] sm:$0xff]  ;;  %v6600_v55 = vpack.c.bf16 %v1991_v1, %v1987_v16  ;;  %v6606_v25 = vpack.c.bf16 %v2008_v9, %v2004_v19  ;;  %v2018_v40 = vld [vmem:[#allocation6 + $0x2b8] sm:$0xff]  ;;  %v2017_v16 = vld [vmem:[#allocation6 + $0x2b0] sm:$0xff] }
 0x2ae   :  { %6713 = vmatpush1.bf16.msra.mxu1 %v6712_v24  ;;  %6587 = vmatprep.subr.bf16.mxu0 %v6586_v48  ;;  %v1989_v24 = vld [vmem:[#allocation6 + $0x1d0] sm:$0xff]  ;;  %v2012_v33 = vld [vmem:[#allocation6 + $0x288] sm:$0xff]  ;;  %v2019_v53 = vld [vmem:[#allocation6 + $0x2c0] sm:$0xff] }
 0x2af   :  { %4333 = vmatmul.mubr.f32.gmra.mrb[40].mxu0 %v3650_v11  ;;  %6715 = vmatprep.subr.bf16.mxu1 %v6714_v21  ;;  %v7305_v48 = vld [vmem:[#allocation2 + $0x1b8] sm:$0xff]  ;;  %v3679_v14 = vsel %vm3601_vm4, %v3669_v8, %v3678_v18  ;;  %v6734_v8 = vpack.c.bf16 %v2010_v49, %v2006_v0  ;;  %v7308_v50 = vld [vmem:[#allocation2 + $0x210] sm:$0xff]  ;;  %v2015_v18 = vld [vmem:[#allocation6 + $0x2a0] sm:$0xff] }
 0x2b0   :  { %4655 = vmatmul.mubr.f32.gmra.mrb[40].mxu1 %v3650_v11  ;;  %4338 = vmatprep.mubr.f32.mxu0 %v3661_v59  ;;  %v3692_v7 = vrot.slane %v7305_v48, 2  ;;  %v1998_v21 = vld [vmem:[#allocation6 + $0x218] sm:$0xff]  ;;  %v3689_v11 = vrot.slane %v7306_v4, 2  ;;  %v2020_v48 = vld [vmem:[#allocation6 + $0x2c8] sm:$0xff]  ;;  %v2027_v0 = vld [vmem:[#allocation6 + $0x300] sm:$0xff] }
 0x2b1   :  { %4660 = vmatprep.mubr.f32.mxu1 %v3661_v59  ;;  %6589 = vmatpush1.bf16.msra.mxu0 %v6588_v47  ;;  %v6728_v47 = vpack.c.bf16 %v1993_v35, %v1989_v24  ;;  %v6730_v26 = vpack.c.bf16 %v2002_v32, %v1998_v21  ;;  %v3700_v59 = vrot.slane %v3512_v56, 2  ;;  %v3520_v44 = vld [vmem:[#allocation2 + $0x238] sm:$0x3]  ;;  %v3708_v35 = vrot.slane %v3515_v2, 2  ;;  %v3524_v32 = vld [vmem:[#allocation2 + $0x258] sm:$0xfc] }
 0x2b2   :  { %6717 = vmatpush1.bf16.msra.mxu1 %v6716_v20  ;;  %6591 = vmatprep.subr.bf16.mxu0 %v6590_v22  ;;  %v6602_v20 = vpack.c.bf16 %v2000_v52, %v1996_v12  ;;  %v1997_v22 = vld [vmem:[#allocation6 + $0x210] sm:$0xff]  ;;  %v3693_v45 = vsel %vm3601_vm4, %v3691_v54, %v3692_v7  ;;  %v3690_v28 = vsel %vm3601_vm4, %v3688_v17, %v3689_v11  ;;  %v2022_v12 = vld [vmem:[#allocation6 + $0x2d8] sm:$0xff]  ;;  %v3731_v19 = vrot.slane %v3524_v32, 2 }
 0x2b3   :  { %4339 = vmatmul.mubr.f32.gmra.mrb[42].mxu0 %v3659_v39  ;;  %6719 = vmatprep.subr.bf16.mxu1 %v6718_v63  ;;  %v3511_v63 = vld [vmem:[#allocation2 + $0x1d0] sm:$0x3]  ;;  %v6732_v15 = vpack.c.bf16 %v2001_v6, %v1997_v22  ;;  %v3701_v13 = vsel %vm3601_vm4, %v3692_v7, %v3700_v59  ;;  %v2026_v52 = vld [vmem:[#allocation6 + $0x2f8] sm:$0xff]  ;;  %v6612_v21 = vpack.c.bf16 %v2015_v18, %v2011_v3  ;;  %v3523_v17 = vld [vmem:[#allocation2 + $0x250] sm:$0xfc] }
 0x2b4   :  { %4661 = vmatmul.mubr.f32.gmra.mrb[42].mxu1 %v3659_v39  ;;  %4344 = vmatprep.mubr.f32.mxu0 %v3673_v61  ;;  %v2007_v39 = vld [vmem:[#allocation6 + $0x260] sm:$0xff]  ;;  %v2024_v7 = vld [vmem:[#allocation6 + $0x2e8] sm:$0xff]  ;;  %v2025_v22 = vld [vmem:[#allocation6 + $0x2f0] sm:$0xff] }
 0x2b5   :  { %4666 = vmatprep.mubr.f32.mxu1 %v3673_v61  ;;  %6593 = vmatpush1.bf16.msra.mxu0 %v6592_v60  ;;  %v3698_v60 = vrot.slane %v3511_v63, 2  ;;  %v2016_v61 = vld [vmem:[#allocation6 + $0x2a8] sm:$0xff]  ;;  %v6608_v36 = vpack.c.bf16 %v2007_v39, %v2003_v31  ;;  %v6614_v62 = vpack.c.bf16 %v2024_v7, %v2020_v48  ;;  %v2034_v59 = vld [vmem:[#allocation6 + $0x338] sm:$0xff]  ;;  %v2033_v31 = vld [vmem:[#allocation6 + $0x330] sm:$0xff] }
 0x2b6   :  { %6721 = vmatpush1.bf16.msra.mxu1 %v6720_v46  ;;  %6595 = vmatprep.subr.bf16.mxu0 %v6594_v29  ;;  %v2005_v46 = vld [vmem:[#allocation6 + $0x250] sm:$0xff]  ;;  %v2028_v6 = vld [vmem:[#allocation6 + $0x308] sm:$0xff]  ;;  %v2035_v3 = vld [vmem:[#allocation6 + $0x340] sm:$0xff] }
 0x2b7   :  { %4345 = vmatmul.mubr.f32.gmra.mrb[44].mxu0 %v3670_v58  ;;  %6723 = vmatprep.subr.bf16.mxu1 %v6722_v5  ;;  %v7307_v29 = vld [vmem:[#allocation2 + $0x218] sm:$0xff]  ;;  %v3699_v42 = vsel %vm3601_vm4, %v3689_v11, %v3698_v60  ;;  %v6742_v11 = vpack.c.bf16 %v2026_v52, %v2022_v12  ;;  %v8725_v34 = vld [vmem:[#allocation2 + $0x270] sm:$0xff]  ;;  %v2031_v60 = vld [vmem:[#allocation6 + $0x320] sm:$0xff] }
 0x2b8   :  { %4667 = vmatmul.mubr.f32.gmra.mrb[44].mxu1 %v3670_v58  ;;  %4350 = vmatprep.mubr.f32.mxu0 %v3681_v23  ;;  %v3712_v27 = vrot.slane %v7307_v29, 2  ;;  %v2014_v5 = vld [vmem:[#allocation6 + $0x298] sm:$0xff]  ;;  %v3709_v58 = vrot.slane %v7308_v50, 2  ;;  %v2036_v29 = vld [vmem:[#allocation6 + $0x348] sm:$0xff]  ;;  %v2043_v12 = vld [vmem:[#allocation6 + $0x380] sm:$0xff] }
 0x2b9   :  { %4672 = vmatprep.mubr.f32.mxu1 %v3681_v23  ;;  %6597 = vmatpush1.bf16.msra.mxu0 %v6596_v57  ;;  %v6736_v57 = vpack.c.bf16 %v2009_v43, %v2005_v46  ;;  %v6738_v24 = vpack.c.bf16 %v2018_v40, %v2014_v5  ;;  %v3720_v23 = vrot.slane %v3520_v44, 2  ;;  %v3528_v63 = vld [vmem:[#allocation2 + $0x298] sm:$0x3]  ;;  %v3728_v43 = vrot.slane %v3523_v17, 2  ;;  %v3532_v40 = vld [vmem:[#allocation2 + $0x2b8] sm:$0xfc] }
 0x2ba   :  { %6725 = vmatpush1.bf16.msra.mxu1 %v6724_v38  ;;  %6599 = vmatprep.subr.bf16.mxu0 %v6598_v30  ;;  %v6610_v38 = vpack.c.bf16 %v2016_v61, %v2012_v33  ;;  %v2013_v30 = vld [vmem:[#allocation6 + $0x290] sm:$0xff]  ;;  %v3713_v1 = vsel %vm3601_vm4, %v3711_v37, %v3712_v27  ;;  %v3710_v56 = vsel %vm3601_vm4, %v3708_v35, %v3709_v58  ;;  %v2038_v33 = vld [vmem:[#allocation6 + $0x358] sm:$0xff]  ;;  %v3751_v48 = vrot.slane %v3532_v40, 2  ;;  %v2051_v17 = vld [vmem:[#allocation6 + $0x3c0] sm:$0xff] }
 0x2bb   :  { %4351 = vmatmul.mubr.f32.gmra.mrb[46].mxu0 %v3679_v14  ;;  %6727 = vmatprep.subr.bf16.mxu1 %v6726_v51  ;;  %v3519_v51 = vld [vmem:[#allocation2 + $0x230] sm:$0x3]  ;;  %v6740_v54 = vpack.c.bf16 %v2017_v16, %v2013_v30  ;;  %v3721_v4 = vsel %vm3601_vm4, %v3712_v27, %v3720_v23  ;;  %v2042_v61 = vld [vmem:[#allocation6 + $0x378] sm:$0xff]  ;;  %v6620_v5 = vpack.c.bf16 %v2031_v60, %v2027_v0  ;;  %v3531_v35 = vld [vmem:[#allocation2 + $0x2b0] sm:$0xfc] }
 0x2bc   :  { %4673 = vmatmul.mubr.f32.gmra.mrb[46].mxu1 %v3679_v14  ;;  %4356 = vmatprep.mubr.f32.mxu0 %v3693_v45  ;;  %v2023_v14 = vld [vmem:[#allocation6 + $0x2e0] sm:$0xff]  ;;  %v2040_v27 = vld [vmem:[#allocation6 + $0x368] sm:$0xff]  ;;  %v2041_v30 = vld [vmem:[#allocation6 + $0x370] sm:$0xff] }
 0x2bd   :  { %4678 = vmatprep.mubr.f32.mxu1 %v3693_v45  ;;  %6601 = vmatpush1.bf16.msra.mxu0 %v6600_v55  ;;  %v3718_v55 = vrot.slane %v3519_v51, 2  ;;  %v2032_v45 = vld [vmem:[#allocation6 + $0x328] sm:$0xff]  ;;  %v6616_v9 = vpack.c.bf16 %v2023_v14, %v2019_v53  ;;  %v6622_v2 = vpack.c.bf16 %v2040_v27, %v2036_v29  ;;  %v2050_v23 = vld [vmem:[#allocation6 + $0x3b8] sm:$0xff]  ;;  %v2049_v53 = vld [vmem:[#allocation6 + $0x3b0] sm:$0xff] }
 0x2be   :  { %6729 = vmatpush1.bf16.msra.mxu1 %v6728_v47  ;;  %6603 = vmatprep.subr.bf16.mxu0 %v6602_v20  ;;  %v2021_v47 = vld [vmem:[#allocation6 + $0x2d0] sm:$0xff]  ;;  %v2044_v16 = vld [vmem:[#allocation6 + $0x388] sm:$0xff]  ;;  %v2055_v0 = vld [vmem:[#allocation6 + $0x3e0] sm:$0xff] }
 0x2bf   :  { %4357 = vmatmul.mubr.f32.gmra.mrb[48].mxu0 %v3690_v28  ;;  %6731 = vmatprep.subr.bf16.mxu1 %v6730_v26  ;;  %v7309_v20 = vld [vmem:[#allocation2 + $0x278] sm:$0xff]  ;;  %v3719_v49 = vsel %vm3601_vm4, %v3709_v58, %v3718_v55  ;;  %v6750_v58 = vpack.c.bf16 %v2042_v61, %v2038_v33  ;;  %v8735_v32 = vld [vmem:[#allocation2 + $0x2d0] sm:$0xff]  ;;  %v2047_v55 = vld [vmem:[#allocation6 + $0x3a0] sm:$0xff] }
 0x2c0   :  { %4679 = vmatmul.mubr.f32.gmra.mrb[48].mxu1 %v3690_v28  ;;  %4362 = vmatprep.mubr.f32.mxu0 %v3701_v13  ;;  %v3732_v41 = vrot.slane %v7309_v20, 2  ;;  %v2030_v26 = vld [vmem:[#allocation6 + $0x318] sm:$0xff]  ;;  %v3729_v28 = vrot.slane %v8725_v34, 2  ;;  %v2052_v20 = vld [vmem:[#allocation6 + $0x3c8] sm:$0xff]  ;;  %v2059_v33 = vld [vmem:[#allocation6 + $0x400] sm:$0xff] }
 0x2c1   :  { %4684 = vmatprep.mubr.f32.mxu1 %v3701_v13  ;;  %6605 = vmatpush1.bf16.msra.mxu0 %v6604_v10  ;;  %v6744_v10 = vpack.c.bf16 %v2025_v22, %v2021_v47  ;;  %v6746_v46 = vpack.c.bf16 %v2034_v59, %v2030_v26  ;;  %v3740_v13 = vrot.slane %v3528_v63, 2  ;;  %v3536_v51 = vld [vmem:[#allocation2 + $0x2f8] sm:$0x3]  ;;  %v3748_v22 = vrot.slane %v3531_v35, 2  ;;  %v2060_v60 = vld [vmem:[#allocation6 + $0x408] sm:$0xff]  ;;  %v2063_v61 = vld [vmem:[#allocation6 + $0x420] sm:$0xff] }
 0x2c2   :  { %6733 = vmatpush1.bf16.msra.mxu1 %v6732_v15  ;;  %6607 = vmatprep.subr.bf16.mxu0 %v6606_v25  ;;  %v6618_v15 = vpack.c.bf16 %v2032_v45, %v2028_v6  ;;  %v2029_v25 = vld [vmem:[#allocation6 + $0x310] sm:$0xff]  ;;  %v3733_v39 = vsel %vm3601_vm4, %v3731_v19, %v3732_v41  ;;  %v3730_v44 = vsel %vm3601_vm4, %v3728_v43, %v3729_v28  ;;  %v2054_v6 = vld [vmem:[#allocation6 + $0x3d8] sm:$0xff]  ;;  %v1876_v35 = vld [vmem:[#allocation2 + $0x68] sm:$0xff] }
 0x2c3   :  { %4363 = vmatmul.mubr.f32.gmra.mrb[50].mxu0 %v3699_v42  ;;  %6735 = vmatprep.subr.bf16.mxu1 %v6734_v8  ;;  %v3527_v8 = vld [vmem:[#allocation2 + $0x290] sm:$0x3]  ;;  %v6748_v37 = vpack.c.bf16 %v2033_v31, %v2029_v25  ;;  %v3741_v50 = vsel %vm3601_vm4, %v3732_v41, %v3740_v13  ;;  %v2058_v45 = vld [vmem:[#allocation6 + $0x3f8] sm:$0xff]  ;;  %v6628_v26 = vpack.c.bf16 %v2047_v55, %v2043_v12 }
 0x2c4   :  { %4685 = vmatmul.mubr.f32.gmra.mrb[50].mxu1 %v3699_v42  ;;  %4368 = vmatprep.mubr.f32.mxu0 %v3713_v1  ;;  %v2039_v42 = vld [vmem:[#allocation6 + $0x360] sm:$0xff]  ;;  %v2056_v41 = vld [vmem:[#allocation6 + $0x3e8] sm:$0xff]  ;;  %v2062_v31 = vld [vmem:[#allocation6 + $0x418] sm:$0xff] }
 0x2c5   :  { %4690 = vmatprep.mubr.f32.mxu1 %v3713_v1  ;;  %6609 = vmatpush1.bf16.msra.mxu0 %v6608_v36  ;;  %v3738_v36 = vrot.slane %v3527_v8, 2  ;;  %v2048_v1 = vld [vmem:[#allocation6 + $0x3a8] sm:$0xff]  ;;  %v6624_v7 = vpack.c.bf16 %v2039_v42, %v2035_v3  ;;  %v2065_v40 = vld [vmem:[#allocation6 + $0x430] sm:$0xff]  ;;  %v1867_v3 = vld [vmem:[#allocation2] sm:$0xff]  ;;  %v6636_v42 = vpack.c.bf16 %v2063_v61, %v2059_v33 }
 0x2c6   :  { %6737 = vmatpush1.bf16.msra.mxu1 %v6736_v57  ;;  %6611 = vmatprep.subr.bf16.mxu0 %v6610_v38  ;;  %v2037_v57 = vld [vmem:[#allocation6 + $0x350] sm:$0xff]  ;;  %v2064_v25 = vld [vmem:[#allocation6 + $0x428] sm:$0xff]  ;;  %v2102_v61 = vld [vmem:[#allocation6 + $0x558] sm:$0xff] }
 0x2c7   :  { %4369 = vmatmul.mubr.f32.gmra.mrb[52].mxu0 %v3710_v56  ;;  %6739 = vmatprep.subr.bf16.mxu1 %v6738_v24  ;;  %v8731_v38 = vld [vmem:[#allocation2 + $0x2d8] sm:$0xff]  ;;  %v3739_v52 = vsel %vm3601_vm4, %v3729_v28, %v3738_v36  ;;  %v6758_v28 = vpack.c.bf16 %v2058_v45, %v2054_v6  ;;  %v1868_v8 = vld [vmem:[#allocation2 + $0x8] sm:$0xff]  ;;  %v6634_v27 = vpack.c.bf16 %v2064_v25, %v2060_v60 }
 0x2c8   :  { %4691 = vmatmul.mubr.f32.gmra.mrb[52].mxu1 %v3710_v56  ;;  %4374 = vmatprep.mubr.f32.mxu0 %v3721_v4  ;;  %v3752_v18 = vrot.slane %v8731_v38, 2  ;;  %v2046_v24 = vld [vmem:[#allocation6 + $0x398] sm:$0xff]  ;;  %v3749_v56 = vrot.slane %v8735_v32, 2  ;;  %v2077_v55 = vld [vmem:[#allocation6 + $0x490] sm:$0xff]  ;;  %v2104_v33 = vld [vmem:[#allocation6 + $0x568] sm:$0xff] }
 0x2c9   :  { %4696 = vmatprep.mubr.f32.mxu1 %v3721_v4  ;;  %6613 = vmatpush1.bf16.msra.mxu0 %v6612_v21  ;;  %v6752_v21 = vpack.c.bf16 %v2041_v30, %v2037_v57  ;;  %v6754_v47 = vpack.c.bf16 %v2050_v23, %v2046_v24  ;;  %v3760_v4 = vrot.slane %v3536_v51, 2  ;;  %v2070_v36 = vld [vmem:[#allocation6 + $0x458] sm:$0xff]  ;;  %v2069_v30 = vld [vmem:[#allocation6 + $0x450] sm:$0xff]  ;;  %v2076_v24 = vld [vmem:[#allocation6 + $0x488] sm:$0xff] }
 0x2ca   :  { %6741 = vmatpush1.bf16.msra.mxu1 %v6740_v54  ;;  %6615 = vmatprep.subr.bf16.mxu0 %v6614_v62  ;;  %v6626_v54 = vpack.c.bf16 %v2048_v1, %v2044_v16  ;;  %v2045_v62 = vld [vmem:[#allocation6 + $0x390] sm:$0xff]  ;;  %v3753_v14 = vsel %vm3601_vm4, %v3751_v48, %v3752_v18  ;;  %v3750_v59 = vsel %vm3601_vm4, %v3748_v22, %v3749_v56  ;;  %v2080_v23 = vld [vmem:[#allocation6 + $0x4a8] sm:$0xff]  ;;  %v2078_v48 = vld [vmem:[#allocation6 + $0x498] sm:$0xff] }
 0x2cb   :  { %4375 = vmatmul.mubr.f32.gmra.mrb[54].mxu0 %v3719_v49  ;;  %6743 = vmatprep.subr.bf16.mxu1 %v6742_v11  ;;  %v3535_v11 = vld [vmem:[#allocation2 + $0x2f0] sm:$0x3]  ;;  %v6756_v63 = vpack.c.bf16 %v2049_v53, %v2045_v62  ;;  %v7313_v51 = vld [vmem:[#allocation2 + $0x28] sm:$0xff]  ;;  %v7314_v62 = vld [vmem:[#allocation2 + $0x20] sm:$0xff] }
 0x2cc   :  { %4697 = vmatmul.mubr.f32.gmra.mrb[54].mxu1 %v3719_v49  ;;  %4380 = vmatprep.mubr.f32.mxu0 %v3733_v39  ;;  %v3758_v19 = vrot.slane %v3535_v11, 2  ;;  %v2053_v49 = vld [vmem:[#allocation6 + $0x3d0] sm:$0xff]  ;;  %v2086_v11 = vld [vmem:[#allocation6 + $0x4d8] sm:$0xff] }
 0x2cd   :  { %4702 = vmatprep.mubr.f32.mxu1 %v3733_v39  ;;  %6617 = vmatpush1.bf16.msra.mxu0 %v6616_v9  ;;  %v6630_v9 = vpack.c.bf16 %v2056_v41, %v2052_v20  ;;  %v2066_v39 = vld [vmem:[#allocation6 + $0x438] sm:$0xff]  ;;  %v2073_v1 = vld [vmem:[#allocation6 + $0x470] sm:$0xff] }
 0x2ce   :  { %6745 = vmatpush1.bf16.msra.mxu1 %v6744_v10  ;;  %6619 = vmatprep.subr.bf16.mxu0 %v6618_v15  ;;  %v3761_v10 = vsel %vm3601_vm4, %v3752_v18, %v3760_v4  ;;  %v2057_v15 = vld [vmem:[#allocation6 + $0x3f0] sm:$0xff]  ;;  %v3759_v13 = vsel %vm3601_vm4, %v3749_v56, %v3758_v19  ;;  %v6762_v43 = vpack.c.bf16 %v2066_v39, %v2062_v31  ;;  %v2071_v18 = vld [vmem:[#allocation6 + $0x460] sm:$0xff]  ;;  %v2088_v4 = vld [vmem:[#allocation6 + $0x4e8] sm:$0xff] }
 0x2cf   :  { %4381 = vmatmul.mubr.f32.gmra.mrb[56].mxu0 %v3730_v44  ;;  %6747 = vmatprep.subr.bf16.mxu1 %v6746_v46  ;;  %v6632_v46 = vpack.c.bf16 %v2055_v0, %v2051_v17  ;;  %v6760_v29 = vpack.c.bf16 %v2057_v15, %v2053_v49  ;;  %v2075_v56 = vld [vmem:[#allocation6 + $0x480] sm:$0xff]  ;;  %v2090_v20 = vld [vmem:[#allocation6 + $0x4f8] sm:$0xff]  ;;  %v2092_v17 = vld [vmem:[#allocation6 + $0x508] sm:$0xff] }
 0x2d0   :  { %4703 = vmatmul.mubr.f32.gmra.mrb[56].mxu1 %v3730_v44  ;;  %4386 = vmatprep.mubr.f32.mxu0 %v3741_v50  ;;  %v2068_v44 = vld [vmem:[#allocation6 + $0x448] sm:$0xff]  ;;  %v1875_v41 = vld [vmem:[#allocation2 + $0x60] sm:$0xff]  ;;  %v6774_v19 = vpack.c.bf16 %v2090_v20, %v2086_v11 }
 0x2d1   :  { %4708 = vmatprep.mubr.f32.mxu1 %v3741_v50  ;;  %6621 = vmatpush1.bf16.msra.mxu0 %v6620_v5  ;;  %v2061_v5 = vld [vmem:[#allocation6 + $0x410] sm:$0xff]  ;;  %v2096_v0 = vld [vmem:[#allocation6 + $0x528] sm:$0xff]  ;;  %v2091_v39 = vld [vmem:[#allocation6 + $0x500] sm:$0xff] }
 0x2d2   :  { %6749 = vmatpush1.bf16.msra.mxu1 %v6748_v37  ;;  %6623 = vmatprep.subr.bf16.mxu0 %v6622_v2  ;;  %v2072_v37 = vld [vmem:[#allocation6 + $0x468] sm:$0xff]  ;;  %v2074_v2 = vld [vmem:[#allocation6 + $0x478] sm:$0xff]  ;;  %v6764_v57 = vpack.c.bf16 %v2065_v40, %v2061_v5  ;;  %v6650_v31 = vpack.c.bf16 %v2096_v0, %v2092_v17  ;;  %v2115_v20 = vld [vmem:[#allocation6 + $0x5c0] sm:$0xff] }
 0x2d3   :  { %4387 = vmatmul.mubr.f32.gmra.mrb[58].mxu0 %v3739_v52  ;;  %6751 = vmatprep.subr.bf16.mxu1 %v6750_v58  ;;  %v6638_v50 = vpack.c.bf16 %v2072_v37, %v2068_v44  ;;  %v2067_v58 = vld [vmem:[#allocation6 + $0x440] sm:$0xff]  ;;  %v6766_v16 = vpack.c.bf16 %v2074_v2, %v2070_v36  ;;  %v2106_v5 = vld [vmem:[#allocation6 + $0x578] sm:$0xff] }
 0x2d4   :  { %4709 = vmatmul.mubr.f32.gmra.mrb[58].mxu1 %v3739_v52  ;;  %4392 = vmatprep.mubr.f32.mxu0 %v3753_v14  ;;  %v6640_v12 = vpack.c.bf16 %v2071_v18, %v2067_v58  ;;  %v6768_v52 = vpack.c.bf16 %v2073_v1, %v2069_v30  ;;  %v7315_v49 = vld [vmem:[#allocation2 + $0x88] sm:$0xff]  ;;  %v1883_v40 = vld [vmem:[#allocation2 + $0xc0] sm:$0xff] }
 0x2d5   :  { %4714 = vmatprep.mubr.f32.mxu1 %v3753_v14  ;;  %6625 = vmatpush1.bf16.msra.mxu0 %v6624_v7  ;;  %v2082_v7 = vld [vmem:[#allocation6 + $0x4b8] sm:$0xff]  ;;  %v2081_v14 = vld [vmem:[#allocation6 + $0x4b0] sm:$0xff]  ;;  %v1884_v15 = vld [vmem:[#allocation2 + $0xc8] sm:$0xff] }
 0x2d6   :  { %6753 = vmatpush1.bf16.msra.mxu1 %v6752_v21  ;;  %6627 = vmatprep.subr.bf16.mxu0 %v6626_v54  ;;  %v6642_v21 = vpack.c.bf16 %v2080_v23, %v2076_v24  ;;  %v2079_v54 = vld [vmem:[#allocation6 + $0x4a0] sm:$0xff]  ;;  %v6770_v53 = vpack.c.bf16 %v2082_v7, %v2078_v48  ;;  %v6772_v6 = vpack.c.bf16 %v2081_v14, %v2077_v55  ;;  %v2108_v58 = vld [vmem:[#allocation6 + $0x588] sm:$0xff]  ;;  %v2114_v1 = vld [vmem:[#allocation6 + $0x5b8] sm:$0xff] }
 0x2d7   :  { %4393 = vmatmul.mubr.f32.gmra.mrb[60].mxu0 %v3750_v59  ;;  %6755 = vmatprep.subr.bf16.mxu1 %v6754_v47  ;;  %v2084_v47 = vld [vmem:[#allocation6 + $0x4c8] sm:$0xff]  ;;  %v6644_v22 = vpack.c.bf16 %v2079_v54, %v2075_v56  ;;  %v2099_v2 = vld [vmem:[#allocation6 + $0x540] sm:$0xff]  ;;  %v2113_v56 = vld [vmem:[#allocation6 + $0x5b0] sm:$0xff] }
 0x2d8   :  { %4715 = vmatmul.mubr.f32.gmra.mrb[60].mxu1 %v3750_v59  ;;  %4398 = vmatprep.mubr.f32.mxu0 %v3761_v10  ;;  %v6646_v45 = vpack.c.bf16 %v2088_v4, %v2084_v47  ;;  %v2087_v59 = vld [vmem:[#allocation6 + $0x4e0] sm:$0xff]  ;;  %v2112_v18 = vld [vmem:[#allocation6 + $0x5a8] sm:$0xff] }
 0x2d9   :  { %4720 = vmatprep.mubr.f32.mxu1 %v3761_v10  ;;  %6629 = vmatpush1.bf16.msra.mxu0 %v6628_v26  ;;  %v2083_v26 = vld [vmem:[#allocation6 + $0x4c0] sm:$0xff]  ;;  %v2094_v10 = vld [vmem:[#allocation6 + $0x518] sm:$0xff]  ;;  %v6658_v48 = vpack.c.bf16 %v2112_v18, %v2108_v58  ;;  %v2116_v54 = vld [vmem:[#allocation6 + $0x5c8] sm:$0xff] }
 0x2da   :  { %6757 = vmatpush1.bf16.msra.mxu1 %v6756_v63  ;;  %6631 = vmatprep.subr.bf16.mxu0 %v6630_v9  ;;  %v2085_v63 = vld [vmem:[#allocation6 + $0x4d0] sm:$0xff]  ;;  %v6648_v60 = vpack.c.bf16 %v2087_v59, %v2083_v26  ;;  %v7317_v30 = vld [vmem:[#allocation2 + $0xe8] sm:$0xff]  ;;  %v1891_v14 = vld [vmem:[#allocation2 + $0x120] sm:$0xff] }
 0x2db   :  { %4399 = vmatmul.mubr.f32.gmra.mrb[62].mxu0 %v3759_v13  ;;  %6759 = vmatprep.subr.bf16.mxu1 %v6758_v28  ;;  %v2089_v9 = vld [vmem:[#allocation6 + $0x4f0] sm:$0xff]  ;;  %v2098_v28 = vld [vmem:[#allocation6 + $0x538] sm:$0xff]  ;;  %v1892_v24 = vld [vmem:[#allocation2 + $0x128] sm:$0xff] }
 0x2dc   :  { %4721 = vmatmul.mubr.f32.gmra.mrb[62].mxu1 %v3759_v13  ;;  %4791 = vmatprep.mubr.f32.mxu0 %v1868_v8  ;;  %v6776_v25 = vpack.c.bf16 %v2089_v9, %v2085_v63  ;;  %v2093_v13 = vld [vmem:[#allocation6 + $0x510] sm:$0xff]  ;;  %v2107_v7 = vld [vmem:[#allocation6 + $0x580] sm:$0xff]  ;;  %v2120_v55 = vld [vmem:[#allocation6 + $0x5e8] sm:$0xff] }
 0x2dd   :  { %6633 = vmatpush1.bf16.msra.mxu0 %v6632_v46  ;;  %5113 = vmatprep.mubr.f32.mxu1 %v1868_v8  ;;  %v2095_v46 = vld [vmem:[#allocation6 + $0x520] sm:$0xff]  ;;  %v6662_v11 = vpack.c.bf16 %v2120_v55, %v2116_v54  ;;  %v2124_v26 = vld [vmem:[#allocation6 + $0x608] sm:$0xff]  ;;  %v2130_v9 = vld [vmem:[#allocation6 + $0x638] sm:$0xff] }
 0x2de   :  { %6761 = vmatpush1.bf16.msra.mxu1 %v6760_v29  ;;  %6635 = vmatprep.subr.bf16.mxu0 %v6634_v27  ;;  %v7316_v8 = vld [vmem:[#allocation2 + $0x80] sm:$0xff]  ;;  %v6778_v29 = vpack.c.bf16 %v2098_v28, %v2094_v10  ;;  %v2097_v27 = vld [vmem:[#allocation6 + $0x530] sm:$0xff]  ;;  %v6652_v44 = vpack.c.bf16 %v2095_v46, %v2091_v39  ;;  %v2128_v59 = vld [vmem:[#allocation6 + $0x628] sm:$0xff] }
 0x2df   :  { %6763 = vmatprep.subr.bf16.mxu1 %v6762_v43  ;;  %v2100_v43 = vld [vmem:[#allocation6 + $0x548] sm:$0xff]  ;;  %v6780_v37 = vpack.c.bf16 %v2097_v27, %v2093_v13  ;;  %v6666_v10 = vpack.c.bf16 %v2128_v59, %v2124_v26  ;;  %v2123_v28 = vld [vmem:[#allocation6 + $0x600] sm:$0xff]  ;;  %v2129_v39 = vld [vmem:[#allocation6 + $0x630] sm:$0xff] }
 0x2e0   :  { %4792 = vmatmul.mubr.f32.vlgmr.msra.gmra.mrb[32].mxu0 %v1867_v3  ;;  %v6654_v36 = vpack.c.bf16 %v2104_v33, %v2100_v43  ;;  %v7319_v63 = vld [vmem:[#allocation2 + $0x148] sm:$0xff]  ;;  %v1899_v27 = vld [vmem:[#allocation2 + $0x180] sm:$0xff] }
 0x2e1   :  { %5114 = vmatmul.mubr.f32.vlgmr.msra.gmra.mrb[32].mxu1 %v1867_v3  ;;  %4797 = vmatprep.mubr.f32.mxu0 %v7313_v51  ;;  %v2103_v3 = vld [vmem:[#allocation6 + $0x560] sm:$0xff]  ;;  %v2132_v46 = vld [vmem:[#allocation6 + $0x648] sm:$0xff] }
 0x2e2   :  { %6637 = vmatpush1.bf16.msra.mxu0 %v6636_v42  ;;  %5119 = vmatprep.mubr.f32.mxu1 %v7313_v51  ;;  %v2101_v42 = vld [vmem:[#allocation6 + $0x550] sm:$0xff]  ;;  %v6656_v23 = vpack.c.bf16 %v2103_v3, %v2099_v2  ;;  %v1900_v17 = vld [vmem:[#allocation2 + $0x188] sm:$0xff] }
 0x2e3   :  { %6765 = vmatpush1.bf16.msra.mxu1 %v6764_v57  ;;  %6639 = vmatprep.subr.bf16.mxu0 %v6638_v50  ;;  %v6782_v57 = vpack.c.bf16 %v2106_v5, %v2102_v61  ;;  %v2105_v50 = vld [vmem:[#allocation6 + $0x570] sm:$0xff]  ;;  %v2136_v13 = vld [vmem:[#allocation6 + $0x668] sm:$0xff]  ;;  %v2131_v5 = vld [vmem:[#allocation6 + $0x640] sm:$0xff] }
 0x2e4   :  { %4798 = vmatmul.mubr.f32.gmra.mrb[34].mxu0 %v7314_v62  ;;  %6767 = vmatprep.subr.bf16.mxu1 %v6766_v16  ;;  %v2110_v16 = vld [vmem:[#allocation6 + $0x598] sm:$0xff]  ;;  %v6784_v51 = vpack.c.bf16 %v2105_v50, %v2101_v42  ;;  %v6670_v61 = vpack.c.bf16 %v2136_v13, %v2132_v46  ;;  %v2140_v2 = vld [vmem:[#allocation6 + $0x688] sm:$0xff] }
 0x2e5   :  { %5120 = vmatmul.mubr.f32.gmra.mrb[34].mxu1 %v7314_v62  ;;  %4803 = vmatprep.mubr.f32.mxu0 %v1876_v35  ;;  %v2118_v62 = vld [vmem:[#allocation6 + $0x5d8] sm:$0xff]  ;;  %v2144_v3 = vld [vmem:[#allocation6 + $0x6a8] sm:$0xff] }
 0x2e6   :  { %6641 = vmatpush1.bf16.msra.mxu0 %v6640_v12  ;;  %5125 = vmatprep.mubr.f32.mxu1 %v1876_v35  ;;  %v2111_v35 = vld [vmem:[#allocation6 + $0x5a0] sm:$0xff]  ;;  %v2109_v12 = vld [vmem:[#allocation6 + $0x590] sm:$0xff]  ;;  %v2146_v50 = vld [vmem:[#allocation6 + $0x6b8] sm:$0xff] }
 0x2e7   :  { %6769 = vmatpush1.bf16.msra.mxu1 %v6768_v52  ;;  %6643 = vmatprep.subr.bf16.mxu0 %v6642_v21  ;;  %v7318_v52 = vld [vmem:[#allocation2 + $0xe0] sm:$0xff]  ;;  %v6786_v21 = vpack.c.bf16 %v2114_v1, %v2110_v16  ;;  %v6660_v47 = vpack.c.bf16 %v2111_v35, %v2107_v7  ;;  %v6788_v4 = vpack.c.bf16 %v2113_v56, %v2109_v12  ;;  %v7321_v42 = vld [vmem:[#allocation2 + $0x1a8] sm:$0xff]  ;;  %v2145_v7 = vld [vmem:[#allocation6 + $0x6b0] sm:$0xff] }
 0x2e8   :  { %4804 = vmatmul.mubr.f32.gmra.mrb[36].mxu0 %v1875_v41  ;;  %6771 = vmatprep.subr.bf16.mxu1 %v6770_v53  ;;  %v2122_v53 = vld [vmem:[#allocation6 + $0x5f8] sm:$0xff]  ;;  %v1908_v58 = vld [vmem:[#allocation2 + $0x1e8] sm:$0xff]  ;;  %v6674_v16 = vpack.c.bf16 %v2144_v3, %v2140_v2 }
 0x2e9   :  { %5126 = vmatmul.mubr.f32.gmra.mrb[36].mxu1 %v1875_v41  ;;  %4809 = vmatprep.mubr.f32.mxu0 %v7315_v49  ;;  %v2119_v41 = vld [vmem:[#allocation6 + $0x5e0] sm:$0xff]  ;;  %v2148_v35 = vld [vmem:[#allocation6 + $0x6c8] sm:$0xff] }
 0x2ea   :  { %6645 = vmatpush1.bf16.msra.mxu0 %v6644_v22  ;;  %5131 = vmatprep.mubr.f32.mxu1 %v7315_v49  ;;  %v2117_v22 = vld [vmem:[#allocation6 + $0x5d0] sm:$0xff]  ;;  %v6664_v0 = vpack.c.bf16 %v2119_v41, %v2115_v20  ;;  %v2139_v1 = vld [vmem:[#allocation6 + $0x680] sm:$0xff]  ;;  %v2152_v12 = vld [vmem:[#allocation6 + $0x6e8] sm:$0xff] }
 0x2eb   :  { %6773 = vmatpush1.bf16.msra.mxu1 %v6772_v6  ;;  %6647 = vmatprep.subr.bf16.mxu0 %v6646_v45  ;;  %v6790_v6 = vpack.c.bf16 %v2122_v53, %v2118_v62  ;;  %v2121_v45 = vld [vmem:[#allocation6 + $0x5f0] sm:$0xff]  ;;  %v1907_v56 = vld [vmem:[#allocation2 + $0x1e0] sm:$0xff]  ;;  %v6678_v62 = vpack.c.bf16 %v2152_v12, %v2148_v35  ;;  %v2156_v20 = vld [vmem:[#allocation6 + $0x708] sm:$0xff] }
 0x2ec   :  { %4810 = vmatmul.mubr.f32.gmra.mrb[38].mxu0 %v7316_v8  ;;  %6775 = vmatprep.subr.bf16.mxu1 %v6774_v19  ;;  %v2126_v19 = vld [vmem:[#allocation6 + $0x618] sm:$0xff]  ;;  %v6792_v49 = vpack.c.bf16 %v2121_v45, %v2117_v22  ;;  %v2147_v53 = vld [vmem:[#allocation6 + $0x6c0] sm:$0xff]  ;;  %v2160_v41 = vld [vmem:[#allocation6 + $0x728] sm:$0xff] }
 0x2ed   :  { %5132 = vmatmul.mubr.f32.gmra.mrb[38].mxu1 %v7316_v8  ;;  %4815 = vmatprep.mubr.f32.mxu0 %v1884_v15  ;;  %v2134_v8 = vld [vmem:[#allocation6 + $0x658] sm:$0xff]  ;;  %v7323_v22 = vld [vmem:[#allocation2 + $0x208] sm:$0xff] }
 0x2ee   :  { %6649 = vmatpush1.bf16.msra.mxu0 %v6648_v60  ;;  %5137 = vmatprep.mubr.f32.mxu1 %v1884_v15  ;;  %v2127_v15 = vld [vmem:[#allocation6 + $0x620] sm:$0xff]  ;;  %v2125_v60 = vld [vmem:[#allocation6 + $0x610] sm:$0xff]  ;;  %v2162_v45 = vld [vmem:[#allocation6 + $0x738] sm:$0xff] }
 0x2ef   :  { %6777 = vmatpush1.bf16.msra.mxu1 %v6776_v25  ;;  %6651 = vmatprep.subr.bf16.mxu0 %v6650_v31  ;;  %v7320_v25 = vld [vmem:[#allocation2 + $0x140] sm:$0xff]  ;;  %v6794_v31 = vpack.c.bf16 %v2130_v9, %v2126_v19  ;;  %v6668_v43 = vpack.c.bf16 %v2127_v15, %v2123_v28  ;;  %v6796_v33 = vpack.c.bf16 %v2129_v39, %v2125_v60  ;;  %v1916_v26 = vld [vmem:[#allocation2 + $0x248] sm:$0xff]  ;;  %v2161_v28 = vld [vmem:[#allocation6 + $0x730] sm:$0xff] }
 0x2f0   :  { %4816 = vmatmul.mubr.f32.gmra.mrb[40].mxu0 %v1883_v40  ;;  %6779 = vmatprep.subr.bf16.mxu1 %v6778_v29  ;;  %v2138_v29 = vld [vmem:[#allocation6 + $0x678] sm:$0xff]  ;;  %v6682_v19 = vpack.c.bf16 %v2160_v41, %v2156_v20  ;;  %v2155_v9 = vld [vmem:[#allocation6 + $0x700] sm:$0xff]  ;;  %v2164_v15 = vld [vmem:[#allocation6 + $0x748] sm:$0xff] }
 0x2f1   :  { %5138 = vmatmul.mubr.f32.gmra.mrb[40].mxu1 %v1883_v40  ;;  %4821 = vmatprep.mubr.f32.mxu0 %v7317_v30  ;;  %v2135_v40 = vld [vmem:[#allocation6 + $0x660] sm:$0xff]  ;;  %v2168_v60 = vld [vmem:[#allocation6 + $0x768] sm:$0xff]  ;;  %v7329_v41 = vld [vmem:[#allocation2 + $0x38] sm:$0xff] }
 0x2f2   :  { %6653 = vmatpush1.bf16.msra.mxu0 %v6652_v44  ;;  %5143 = vmatprep.mubr.f32.mxu1 %v7317_v30  ;;  %v2133_v44 = vld [vmem:[#allocation6 + $0x650] sm:$0xff]  ;;  %v6672_v18 = vpack.c.bf16 %v2135_v40, %v2131_v5  ;;  %v1915_v39 = vld [vmem:[#allocation2 + $0x240] sm:$0xff]  ;;  %v2172_v5 = vld [vmem:[#allocation6 + $0x788] sm:$0xff] }
 0x2f3   :  { %6781 = vmatpush1.bf16.msra.mxu1 %v6780_v37  ;;  %6655 = vmatprep.subr.bf16.mxu0 %v6654_v36  ;;  %v6798_v37 = vpack.c.bf16 %v2138_v29, %v2134_v8  ;;  %v2137_v36 = vld [vmem:[#allocation6 + $0x670] sm:$0xff]  ;;  %v6686_v8 = vpack.c.bf16 %v2168_v60, %v2164_v15  ;;  %v2163_v29 = vld [vmem:[#allocation6 + $0x740] sm:$0xff]  ;;  %v2176_v40 = vld [vmem:[#allocation6 + $0x7a8] sm:$0xff] }
 0x2f4   :  { %4822 = vmatmul.mubr.f32.gmra.mrb[42].mxu0 %v7318_v52  ;;  %6783 = vmatprep.subr.bf16.mxu1 %v6782_v57  ;;  %v2142_v57 = vld [vmem:[#allocation6 + $0x698] sm:$0xff]  ;;  %v6800_v30 = vpack.c.bf16 %v2137_v36, %v2133_v44  ;;  %v7325_v44 = vld [vmem:[#allocation2 + $0x268] sm:$0xff]  ;;  %v1869_v20 = vld [vmem:[#allocation2 + $0x10] sm:$0xff] }
 0x2f5   :  { %5144 = vmatmul.mubr.f32.gmra.mrb[42].mxu1 %v7318_v52  ;;  %4827 = vmatprep.mubr.f32.mxu0 %v1892_v24  ;;  %v2150_v52 = vld [vmem:[#allocation6 + $0x6d8] sm:$0xff]  ;;  %v1924_v2 = vld [vmem:[#allocation2 + $0x2a8] sm:$0xff]  ;;  %v1901_v60 = vld [vmem:[#allocation2 + $0x190] sm:$0xff] }
 0x2f6   :  { %6657 = vmatpush1.bf16.msra.mxu0 %v6656_v23  ;;  %5149 = vmatprep.mubr.f32.mxu1 %v1892_v24  ;;  %v2143_v24 = vld [vmem:[#allocation6 + $0x6a0] sm:$0xff]  ;;  %v2141_v23 = vld [vmem:[#allocation6 + $0x690] sm:$0xff]  ;;  %v2178_v36 = vld [vmem:[#allocation6 + $0x7b8] sm:$0xff] }
 0x2f7   :  { %6785 = vmatpush1.bf16.msra.mxu1 %v6784_v51  ;;  %6659 = vmatprep.subr.bf16.mxu0 %v6658_v48  ;;  %v7322_v51 = vld [vmem:[#allocation2 + $0x1a0] sm:$0xff]  ;;  %v6802_v48 = vpack.c.bf16 %v2146_v50, %v2142_v57  ;;  %v6676_v54 = vpack.c.bf16 %v2143_v24, %v2139_v1  ;;  %v6804_v55 = vpack.c.bf16 %v2145_v7, %v2141_v23  ;;  %v2177_v1 = vld [vmem:[#allocation6 + $0x7b0] sm:$0xff]  ;;  %v2180_v24 = vld [vmem:[#allocation6 + $0x7c8] sm:$0xff] }
 0x2f8   :  { %4828 = vmatmul.mubr.f32.gmra.mrb[44].mxu0 %v1891_v14  ;;  %6787 = vmatprep.subr.bf16.mxu1 %v6786_v21  ;;  %v2154_v21 = vld [vmem:[#allocation6 + $0x6f8] sm:$0xff]  ;;  %v6690_v57 = vpack.c.bf16 %v2176_v40, %v2172_v5  ;;  %v2171_v50 = vld [vmem:[#allocation6 + $0x780] sm:$0xff]  ;;  %v2184_v23 = vld [vmem:[#allocation6 + $0x7e8] sm:$0xff]  ;;  %v9093_v5 = vlaneseq }
 0x2f9   :  { %5150 = vmatmul.mubr.f32.gmra.mrb[44].mxu1 %v1891_v14  ;;  %4833 = vmatprep.mubr.f32.mxu0 %v7319_v63  ;;  %v2151_v14 = vld [vmem:[#allocation6 + $0x6e0] sm:$0xff]  ;;  %v1902_v15 = vld [vmem:[#allocation2 + $0x198] sm:$0xff] }
 0x2fa   :  { %6661 = vmatpush1.bf16.msra.mxu0 %v6660_v47  ;;  %5155 = vmatprep.mubr.f32.mxu1 %v7319_v63  ;;  %v2149_v47 = vld [vmem:[#allocation6 + $0x6d0] sm:$0xff]  ;;  %v6680_v59 = vpack.c.bf16 %v2151_v14, %v2147_v53  ;;  %v1923_v35 = vld [vmem:[#allocation2 + $0x2a0] sm:$0xff]  ;;  %v7327_v53 = vld [vmem:[#allocation2 + $0x2c8] sm:$0xff]  ;;  %v8749_v40 = vshrl.u32 %v9093_v5, 7 }
 0x2fb   :  { %6789 = vmatpush1.bf16.msra.mxu1 %v6788_v4  ;;  %6663 = vmatprep.subr.bf16.mxu0 %v6662_v11  ;;  %v6806_v4 = vpack.c.bf16 %v2154_v21, %v2150_v52  ;;  %v2153_v11 = vld [vmem:[#allocation6 + $0x6f0] sm:$0xff]  ;;  %v6694_v52 = vpack.c.bf16 %v2184_v23, %v2180_v24  ;;  %v2179_v21 = vld [vmem:[#allocation6 + $0x7c0] sm:$0xff] }
 0x2fc   :  { %4834 = vmatmul.mubr.f32.gmra.mrb[46].mxu0 %v7320_v25  ;;  %6791 = vmatprep.subr.bf16.mxu1 %v6790_v6  ;;  %v2158_v6 = vld [vmem:[#allocation6 + $0x718] sm:$0xff]  ;;  %v6808_v63 = vpack.c.bf16 %v2153_v11, %v2149_v47 }
 0x2fd   :  { %5156 = vmatmul.mubr.f32.gmra.mrb[46].mxu1 %v7320_v25  ;;  %4839 = vmatprep.mubr.f32.mxu0 %v1900_v17  ;;  %v2166_v25 = vld [vmem:[#allocation6 + $0x758] sm:$0xff] }
 0x2fe   :  { %6665 = vmatpush1.bf16.msra.mxu0 %v6664_v0  ;;  %5161 = vmatprep.mubr.f32.mxu1 %v1900_v17  ;;  %v2159_v17 = vld [vmem:[#allocation6 + $0x720] sm:$0xff]  ;;  %v2157_v0 = vld [vmem:[#allocation6 + $0x710] sm:$0xff] }
 0x2ff   :  { %6793 = vmatpush1.bf16.msra.mxu1 %v6792_v49  ;;  %6667 = vmatprep.subr.bf16.mxu0 %v6666_v10  ;;  %v7324_v49 = vld [vmem:[#allocation2 + $0x200] sm:$0xff]  ;;  %v6810_v10 = vpack.c.bf16 %v2162_v45, %v2158_v6  ;;  %v6684_v46 = vpack.c.bf16 %v2159_v17, %v2155_v9  ;;  %v6812_v13 = vpack.c.bf16 %v2161_v28, %v2157_v0  ;;  %v1870_v11 = vld [vmem:[#allocation2 + $0x18] sm:$0xff]  ;;  %v1877_v45 = vld [vmem:[#allocation2 + $0x70] sm:$0xff] }
 0x300   :  { %4840 = vmatmul.mubr.f32.gmra.mrb[48].mxu0 %v1899_v27  ;;  %6795 = vmatprep.subr.bf16.mxu1 %v6794_v31  ;;  %v2170_v31 = vld [vmem:[#allocation6 + $0x778] sm:$0xff]  ;;  %v7334_v17 = vld [vmem:[#allocation2 + $0xf0] sm:$0xff] }
 0x301   :  { %5162 = vmatmul.mubr.f32.gmra.mrb[48].mxu1 %v1899_v27  ;;  %4845 = vmatprep.mubr.f32.mxu0 %v7321_v42  ;;  %v2167_v27 = vld [vmem:[#allocation6 + $0x760] sm:$0xff]  ;;  %v1878_v6 = vld [vmem:[#allocation2 + $0x78] sm:$0xff]  ;;  %v7336_v28 = vld [vmem:[#allocation2 + $0x150] sm:$0xff] }
 0x302   :  { %6669 = vmatpush1.bf16.msra.mxu0 %v6668_v43  ;;  %5167 = vmatprep.mubr.f32.mxu1 %v7321_v42  ;;  %v2165_v43 = vld [vmem:[#allocation6 + $0x750] sm:$0xff]  ;;  %v6688_v3 = vpack.c.bf16 %v2167_v27, %v2163_v29 }
 0x303   :  { %6797 = vmatpush1.bf16.msra.mxu1 %v6796_v33  ;;  %6671 = vmatprep.subr.bf16.mxu0 %v6670_v61  ;;  %v6814_v33 = vpack.c.bf16 %v2170_v31, %v2166_v25  ;;  %v2169_v61 = vld [vmem:[#allocation6 + $0x770] sm:$0xff] }
 0x304   :  { %4846 = vmatmul.mubr.f32.gmra.mrb[50].mxu0 %v7322_v51  ;;  %6799 = vmatprep.subr.bf16.mxu1 %v6798_v37  ;;  %v2174_v37 = vld [vmem:[#allocation6 + $0x798] sm:$0xff]  ;;  %v6816_v42 = vpack.c.bf16 %v2169_v61, %v2165_v43  ;;  %v7338_v31 = vld [vmem:[#allocation2 + $0x1b0] sm:$0xff] }
 0x305   :  { %5168 = vmatmul.mubr.f32.gmra.mrb[50].mxu1 %v7322_v51  ;;  %4851 = vmatprep.mubr.f32.mxu0 %v1908_v58  ;;  %v2182_v51 = vld [vmem:[#allocation6 + $0x7d8] sm:$0xff]  ;;  %v1917_v27 = vld [vmem:[#allocation2 + $0x250] sm:$0xff] }
 0x306   :  { %6673 = vmatpush1.bf16.msra.mxu0 %v6672_v18  ;;  %5173 = vmatprep.mubr.f32.mxu1 %v1908_v58  ;;  %v2175_v58 = vld [vmem:[#allocation6 + $0x7a0] sm:$0xff]  ;;  %v2173_v18 = vld [vmem:[#allocation6 + $0x790] sm:$0xff] }
 0x307   :  { %6801 = vmatpush1.bf16.msra.mxu1 %v6800_v30  ;;  %6675 = vmatprep.subr.bf16.mxu0 %v6674_v16  ;;  %v7326_v30 = vld [vmem:[#allocation2 + $0x260] sm:$0xff]  ;;  %v6818_v16 = vpack.c.bf16 %v2178_v36, %v2174_v37  ;;  %v6692_v7 = vpack.c.bf16 %v2175_v58, %v2171_v50  ;;  %v6820_v12 = vpack.c.bf16 %v2177_v1, %v2173_v18  ;;  %v7333_v9 = vld [vmem:[#allocation2 + $0xf8] sm:$0xff]  ;;  %v1925_v61 = vld [vmem:[#allocation2 + $0x2b0] sm:$0xff]  ;;  %v5443_v36 = vsub.s32 1, %v8749_v40 }
 0x308   :  { %4852 = vmatmul.mubr.f32.gmra.mrb[52].mxu0 %v1907_v56  ;;  %6803 = vmatprep.subr.bf16.mxu1 %v6802_v48  ;;  %v2186_v48 = vld [vmem:[#allocation6 + $0x7f8] sm:$0xff]  ;;  %v5435_v37 = vld [vmem:[#allocation8] sm:$0xf] }
 0x309   :  { %5174 = vmatmul.mubr.f32.gmra.mrb[52].mxu1 %v1907_v56  ;;  %4857 = vmatprep.mubr.f32.mxu0 %v7323_v22  ;;  %v2183_v56 = vld [vmem:[#allocation6 + $0x7e0] sm:$0xff]  ;;  %v1894_v0 = vld [vmem:[#allocation2 + $0x138] sm:$0xff] }
 0x30a   :  { %6677 = vmatpush1.bf16.msra.mxu0 %v6676_v54  ;;  %5179 = vmatprep.mubr.f32.mxu1 %v7323_v22  ;;  %v6822_v54 = vpack.c.bf16 %v2186_v48, %v2182_v51  ;;  %v6696_v14 = vpack.c.bf16 %v2183_v56, %v2179_v21  ;;  %v7330_v22 = vld [vmem:[#allocation2 + $0x30] sm:$0xff]  ;;  %v7337_v25 = vld [vmem:[#allocation2 + $0x1b8] sm:$0xff] }
 0x30b   :  { %6805 = vmatpush1.bf16.msra.mxu1 %v6804_v55  ;;  %6679 = vmatprep.subr.bf16.mxu0 %v6678_v62  ;;  %v2181_v55 = vld [vmem:[#allocation6 + $0x7d0] sm:$0xff] }
 0x30c   :  { %4858 = vmatmul.mubr.f32.gmra.mrb[54].mxu0 %v7324_v49  ;;  %6807 = vmatprep.subr.bf16.mxu1 %v6806_v4  ;;  %v2185_v62 = vld [vmem:[#allocation6 + $0x7f0] sm:$0xff]  ;;  %v7328_v4 = vld [vmem:[#allocation2 + $0x2c0] sm:$0xff] }
 0x30d   :  { %5180 = vmatmul.mubr.f32.gmra.mrb[54].mxu1 %v7324_v49  ;;  %4863 = vmatprep.mubr.f32.mxu0 %v1916_v26  ;;  %v6824_v47 = vpack.c.bf16 %v2185_v62, %v2181_v55  ;;  %v1893_v49 = vld [vmem:[#allocation2 + $0x130] sm:$0xff]  ;;  %v1918_v29 = vld [vmem:[#allocation2 + $0x258] sm:$0xff] }
 0x30e   :  { %6681 = vmatpush1.bf16.msra.mxu0 %v6680_v59  ;;  %5185 = vmatprep.mubr.f32.mxu1 %v1916_v26  ;;  %v7331_v26 = vld [vmem:[#allocation2 + $0x98] sm:$0xff]  ;;  %v7332_v59 = vld [vmem:[#allocation2 + $0x90] sm:$0xff] }
 0x30f   :  { %6809 = vmatpush1.bf16.msra.mxu1 %v6808_v63  ;;  %6683 = vmatprep.subr.bf16.mxu0 %v6682_v19  ;;  %v1886_v63 = vld [vmem:[#allocation2 + $0xd8] sm:$0xff]  ;;  %v1885_v19 = vld [vmem:[#allocation2 + $0xd0] sm:$0xff] }
 0x310   :  { %4864 = vmatmul.mubr.f32.gmra.mrb[56].mxu0 %v1915_v39  ;;  %6811 = vmatprep.subr.bf16.mxu1 %v6810_v10  ;;  %v7335_v10 = vld [vmem:[#allocation2 + $0x158] sm:$0xff]  ;;  %v8768_v51 = vld [vmem:[#allocation9 + $0x8] sm:$0xff] }
 0x311   :  { %5186 = vmatmul.mubr.f32.gmra.mrb[56].mxu1 %v1915_v39  ;;  %4869 = vmatprep.mubr.f32.mxu0 %v7325_v44  ;;  %v1910_v39 = vld [vmem:[#allocation2 + $0x1f8] sm:$0xff] }
 0x312   :  { %6685 = vmatpush1.bf16.msra.mxu0 %v6684_v46  ;;  %5191 = vmatprep.mubr.f32.mxu1 %v7325_v44  ;;  %v1909_v46 = vld [vmem:[#allocation2 + $0x1f0] sm:$0xff]  ;;  %v7341_v43 = vld [vmem:[#allocation2 + $0x278] sm:$0xff]  ;;  %v5439_v44 = vsub.s32 0, %v8749_v40 }
 0x313   :  { %6813 = vmatpush1.bf16.msra.mxu1 %v6812_v13  ;;  %6687 = vmatprep.subr.bf16.mxu0 %v6686_v8  ;;  %v7339_v13 = vld [vmem:[#allocation2 + $0x218] sm:$0xff]  ;;  %v7340_v8 = vld [vmem:[#allocation2 + $0x210] sm:$0xff] }
 0x314   :  { %4870 = vmatmul.mubr.f32.gmra.mrb[58].mxu0 %v7326_v30  ;;  %6815 = vmatprep.subr.bf16.mxu1 %v6814_v33  ;;  %v1926_v33 = vld [vmem:[#allocation2 + $0x2b8] sm:$0xff] }
 0x315   :  { %5192 = vmatmul.mubr.f32.gmra.mrb[58].mxu1 %v7326_v30  ;;  %4875 = vmatprep.mubr.f32.mxu0 %v1924_v2  ;;  %v8764_v30 = vld [vmem:[#allocation9] sm:$0xff]  ;;  %v8773_v55 = vld [vmem:[#allocation9 + $0x10] sm:$0xff] }
 0x316   :  { %6689 = vmatpush1.bf16.msra.mxu0 %v6688_v3  ;;  %5197 = vmatprep.mubr.f32.mxu1 %v1924_v2  ;;  %v5451_v2 = vsub.s32 3, %v8749_v40  ;;  %v8755_v3 = vrot.slane %v5435_v37, %v5439_v44 }
 0x317   :  { %6817 = vmatpush1.bf16.msra.mxu1 %v6816_v42  ;;  %6691 = vmatprep.subr.bf16.mxu0 %v6690_v57 }
 0x318   :  { %4876 = vmatmul.mubr.f32.gmra.mrb[60].mxu0 %v1923_v35  ;;  %6819 = vmatprep.subr.bf16.mxu1 %v6818_v16  ;;  %v8761_v57 = vrot.slane %v5435_v37, %v5451_v2 }
 0x319   :  { %5198 = vmatmul.mubr.f32.gmra.mrb[60].mxu1 %v1923_v35  ;;  %4881 = vmatprep.mubr.f32.mxu0 %v7327_v53 }
 0x31a   :  { %6693 = vmatpush1.bf16.msra.mxu0 %v6692_v7  ;;  %5203 = vmatprep.mubr.f32.mxu1 %v7327_v53 }
 0x31b   :  { %6821 = vmatpush1.bf16.msra.mxu1 %v6820_v12  ;;  %6695 = vmatprep.subr.bf16.mxu0 %v6694_v52 }
 0x31c   :  { %4882 = vmatmul.mubr.f32.gmra.mrb[62].mxu0 %v7328_v4  ;;  %6823 = vmatprep.subr.bf16.mxu1 %v6822_v54 }
 0x31d   :  { %5204 = vmatmul.mubr.f32.gmra.mrb[62].mxu1 %v7328_v4  ;;  %4952 = vmatprep.mubr.f32.mxu0 %v1870_v11 }
 0x31e   :  { %6697 = vmatpush1.bf16.msra.mxu0 %v6696_v14  ;;  %5274 = vmatprep.mubr.f32.mxu1 %v1870_v11  ;;  %v8776_v14 = vld [vmem:[#allocation9 + $0x20] sm:$0xff] }
 0x31f   :  { %6825 = vmatpush1.bf16.msra.mxu1 %v6824_v47 }
 0x321   :  { %4953 = vmatmul.mubr.f32.vlgmr.msra.gmra.mrb[32].mxu0 %v1869_v20 }
 0x322   :  { %5275 = vmatmul.mubr.f32.vlgmr.msra.gmra.mrb[32].mxu1 %v1869_v20  ;;  %4958 = vmatprep.mubr.f32.mxu0 %v7329_v41 }
 0x323   :  { %5280 = vmatprep.mubr.f32.mxu1 %v7329_v41  ;;  %v8780_v41 = vld [vmem:[#allocation9 + $0x28] sm:$0xff] }
 0x325   :  { %4959 = vmatmul.mubr.f32.gmra.mrb[34].mxu0 %v7330_v22 }
 0x326   :  { %5281 = vmatmul.mubr.f32.gmra.mrb[34].mxu1 %v7330_v22  ;;  %4964 = vmatprep.mubr.f32.mxu0 %v1878_v6 }
 0x327   :  { %5286 = vmatprep.mubr.f32.mxu1 %v1878_v6  ;;  %v8783_v6 = vld [vmem:[#allocation9 + $0x18] sm:$0xff] }
 0x329   :  { %4965 = vmatmul.mubr.f32.gmra.mrb[36].mxu0 %v1877_v45 }
 0x32a   :  { %5287 = vmatmul.mubr.f32.gmra.mrb[36].mxu1 %v1877_v45  ;;  %4970 = vmatprep.mubr.f32.mxu0 %v7331_v26 }
 0x32b   :  { %5292 = vmatprep.mubr.f32.mxu1 %v7331_v26 }
 0x32d   :  { %4971 = vmatmul.mubr.f32.gmra.mrb[38].mxu0 %v7332_v59 }
 0x32e   :  { %5293 = vmatmul.mubr.f32.gmra.mrb[38].mxu1 %v7332_v59  ;;  %4976 = vmatprep.mubr.f32.mxu0 %v1886_v63 }
 0x32f   :  { %5298 = vmatprep.mubr.f32.mxu1 %v1886_v63 }
 0x331   :  { %4977 = vmatmul.mubr.f32.gmra.mrb[40].mxu0 %v1885_v19 }
 0x332   :  { %5299 = vmatmul.mubr.f32.gmra.mrb[40].mxu1 %v1885_v19  ;;  %4982 = vmatprep.mubr.f32.mxu0 %v7333_v9 }
 0x333   :  { %5304 = vmatprep.mubr.f32.mxu1 %v7333_v9 }
 0x335   :  { %4983 = vmatmul.mubr.f32.gmra.mrb[42].mxu0 %v7334_v17 }
 0x336   :  { %5305 = vmatmul.mubr.f32.gmra.mrb[42].mxu1 %v7334_v17  ;;  %4988 = vmatprep.mubr.f32.mxu0 %v1894_v0 }
 0x337   :  { %5310 = vmatprep.mubr.f32.mxu1 %v1894_v0 }
 0x339   :  { %4989 = vmatmul.mubr.f32.gmra.mrb[44].mxu0 %v1893_v49 }
 0x33a   :  { %5311 = vmatmul.mubr.f32.gmra.mrb[44].mxu1 %v1893_v49  ;;  %4994 = vmatprep.mubr.f32.mxu0 %v7335_v10 }
 0x33b   :  { %5316 = vmatprep.mubr.f32.mxu1 %v7335_v10  ;;  %v8788_v10 = vld [vmem:[#allocation9 + $0x30] sm:$0xff] }
 0x33d   :  { %4995 = vmatmul.mubr.f32.gmra.mrb[46].mxu0 %v7336_v28 }
 0x33e   :  { %5317 = vmatmul.mubr.f32.gmra.mrb[46].mxu1 %v7336_v28  ;;  %5000 = vmatprep.mubr.f32.mxu0 %v1902_v15 }
 0x33f   :  { %5322 = vmatprep.mubr.f32.mxu1 %v1902_v15 }
 0x341   :  { %5001 = vmatmul.mubr.f32.gmra.mrb[48].mxu0 %v1901_v60 }
 0x342   :  { %5323 = vmatmul.mubr.f32.gmra.mrb[48].mxu1 %v1901_v60  ;;  %5006 = vmatprep.mubr.f32.mxu0 %v7337_v25 }
 0x343   :  { %5328 = vmatprep.mubr.f32.mxu1 %v7337_v25 }
 0x345   :  { %5007 = vmatmul.mubr.f32.gmra.mrb[50].mxu0 %v7338_v31 }
 0x346   :  { %5329 = vmatmul.mubr.f32.gmra.mrb[50].mxu1 %v7338_v31  ;;  %5012 = vmatprep.mubr.f32.mxu0 %v1910_v39 }
 0x347   :  { %5334 = vmatprep.mubr.f32.mxu1 %v1910_v39 }
 0x349   :  { %5013 = vmatmul.mubr.f32.gmra.mrb[52].mxu0 %v1909_v46 }
 0x34a   :  { %5335 = vmatmul.mubr.f32.gmra.mrb[52].mxu1 %v1909_v46  ;;  %5018 = vmatprep.mubr.f32.mxu0 %v7339_v13 }
 0x34b   :  { %5340 = vmatprep.mubr.f32.mxu1 %v7339_v13 }
 0x34d   :  { %5019 = vmatmul.mubr.f32.gmra.mrb[54].mxu0 %v7340_v8 }
 0x34e   :  { %5341 = vmatmul.mubr.f32.gmra.mrb[54].mxu1 %v7340_v8  ;;  %5024 = vmatprep.mubr.f32.mxu0 %v1918_v29 }
 0x34f   :  { %5346 = vmatprep.mubr.f32.mxu1 %v1918_v29 }
 0x351   :  { %5025 = vmatmul.mubr.f32.gmra.mrb[56].mxu0 %v1917_v27 }
 0x352   :  { %5347 = vmatmul.mubr.f32.gmra.mrb[56].mxu1 %v1917_v27  ;;  %5030 = vmatprep.mubr.f32.mxu0 %v7341_v43  ;;  %v8795_v27 = vld [vmem:[#allocation9 + $0x38] sm:$0xff] }
 0x353   :  { %5352 = vmatprep.mubr.f32.mxu1 %v7341_v43 }
 0x355   :  { %5031 = vmatmul.mubr.f32.gmra.mrb[58].mxu0 %v8725_v34 }
 0x356   :  { %5353 = vmatmul.mubr.f32.gmra.mrb[58].mxu1 %v8725_v34  ;;  %5036 = vmatprep.mubr.f32.mxu0 %v1926_v33  ;;  %v5447_v34 = vsub.s32 2, %v8749_v40 }
 0x357   :  { %5358 = vmatprep.mubr.f32.mxu1 %v1926_v33 }
 0x358   :  { %v8757_v42 = vrot.slane %v5435_v37, %v5447_v34 }
 0x359   :  { %5037 = vmatmul.mubr.f32.gmra.mrb[60].mxu0 %v1925_v61 }
 0x35a   :  { %5359 = vmatmul.mubr.f32.gmra.mrb[60].mxu1 %v1925_v61  ;;  %5042 = vmatprep.mubr.f32.mxu0 %v8731_v38 }
 0x35b   :  { %5364 = vmatprep.mubr.f32.mxu1 %v8731_v38  ;;  %v8759_v38 = vrot.slane %v5435_v37, %v5443_v36 }
 0x35d   :  { %5043 = vmatmul.mubr.f32.gmra.mrb[62].mxu0 %v8735_v32 }
 0x35e   :  { %5365 = vmatmul.mubr.f32.gmra.mrb[62].mxu1 %v8735_v32 }
 0x3f4   :  { %v4954_v32 = vpop.f32.mrb[32].mxu0 }
 0x3f5   :  { %v5457_v50 = vadd.f32 %v8755_v3, %v4954_v32  ;;  %v5276_v58 = vpop.f32.mrb[32].mxu1  ;;  %v4956_v18 = vpop.f32.mrb[33].mxu0 }
 0x3f6   :  { %v5459_v16 = vadd.f32 %v8757_v42, %v5276_v58  ;;  %v5458_v1 = vadd.f32 %v8759_v38, %v4956_v18  ;;  %v5278_v24 = vpop.f32.mrb[33].mxu1 }
 0x3f7   :  { %v5521_v23 = vmax.f32 %v5457_v50, 0.0  ;;  %v5460_v48 = vadd.f32 %v8761_v57, %v5278_v24 }
 0x3f8   :  { %v5522_v7 = vmax.f32 %v5458_v1, 0.0  ;;  %v4960_v35 = vpop.f32.mrb[34].mxu0  ;;  %v5523_v52 = vmax.f32 %v5459_v16, 0.0 }
 0x3f9   :  { %v5593_v12 = vmul.f32 %v8764_v30, %v5521_v23  ;;  %v5461_v21 = vadd.f32 %v8755_v3, %v4960_v35  ;;  %v5282_v56 = vpop.f32.mrb[34].mxu1  ;;  %v4962_v54 = vpop.f32.mrb[35].mxu0  ;;  %v5524_v53 = vmax.f32 %v5460_v48, 0.0 }
 0x3fa   :  { %v5594_v62 = vmul.f32 %v8768_v51, %v5522_v7  ;;  %v5463_v47 = vadd.f32 %v8757_v42, %v5282_v56  ;;  %v5462_v4 = vadd.f32 %v8759_v38, %v4962_v54  ;;  %v5284_v11 = vpop.f32.mrb[35].mxu1  ;;  %v5595_v63 = vmul.f32 %v8773_v55, %v5523_v52 }
 0x3fb   :  { %v5525_v20 = vmax.f32 %v5461_v21, 0.0  ;;  %v5464_v22 = vadd.f32 %v8761_v57, %v5284_v11  ;;  %v5596_v31 = vmul.f32 %v8783_v6, %v5524_v53 }
 0x3fc   :  { %v5526_v45 = vmax.f32 %v5462_v4, 0.0  ;;  %v4966_v26 = vpop.f32.mrb[36].mxu0  ;;  %v5657_v59 = vadd.f32 %v5594_v62, %v5593_v12  ;;  %v5527_v9 = vmax.f32 %v5463_v47, 0.0 }
 0x3fd   :  { %v5597_v19 = vmul.f32 %v8776_v14, %v5525_v20  ;;  %v5465_v17 = vadd.f32 %v8755_v3, %v4966_v26  ;;  %v5288_v0 = vpop.f32.mrb[36].mxu1  ;;  %v4968_v49 = vpop.f32.mrb[37].mxu0  ;;  %v5528_v39 = vmax.f32 %v5464_v22, 0.0 }
 0x3fe   :  { %v5598_v28 = vmul.f32 %v8780_v41, %v5526_v45  ;;  %v5467_v15 = vadd.f32 %v8757_v42, %v5288_v0  ;;  %v5466_v60 = vadd.f32 %v8759_v38, %v4968_v49  ;;  %v5290_v25 = vpop.f32.mrb[37].mxu1  ;;  %v5658_v8 = vadd.f32 %v5657_v59, %v5595_v63 }
 0x3ff   :  { %v5529_v46 = vmax.f32 %v5465_v17, 0.0  ;;  %v5468_v13 = vadd.f32 %v8761_v57, %v5290_v25  ;;  %v5599_v44 = vmul.f32 %v8788_v10, %v5527_v9  ;;  %v5600_v24 = vmul.f32 %v8795_v27, %v5528_v39 }
 0x400   :  { %v5662_v29 = vadd.f32 %v5598_v28, %v5597_v19  ;;  %v5531_v43 = vmax.f32 %v5467_v15, 0.0  ;;  %v5530_v33 = vmax.f32 %v5466_v60, 0.0  ;;  %v4972_v61 = vpop.f32.mrb[38].mxu0  ;;  %v5659_v32 = vadd.f32 %v5658_v8, %v5596_v31 }
 0x401   :  { %v5601_v37 = vmul.f32 %v8764_v30, %v5529_v46  ;;  %v5469_v34 = vadd.f32 %v8755_v3, %v4972_v61  ;;  %v5294_v36 = vpop.f32.mrb[38].mxu1  ;;  %v4974_v2 = vpop.f32.mrb[39].mxu0  ;;  %v5532_v58 = vmax.f32 %v5468_v13, 0.0 }
 0x402   :  { %v5602_v50 = vmul.f32 %v8768_v51, %v5530_v33  ;;  %v5471_v18 = vadd.f32 %v8757_v42, %v5294_v36  ;;  %v5470_v16 = vadd.f32 %v8759_v38, %v4974_v2  ;;  %v5296_v1 = vpop.f32.mrb[39].mxu1  ;;  %5660 = vadd.xlane.f32.xlu0 %v5659_v32  ;;  %v5663_v7 = vadd.f32 %v5662_v29, %v5599_v44 }
 0x403   :  { %v5533_v23 = vmax.f32 %v5469_v34, 0.0  ;;  %v5472_v48 = vadd.f32 %v8761_v57, %v5296_v1  ;;  %v5603_v35 = vmul.f32 %v8773_v55, %v5531_v43  ;;  %v5604_v26 = vmul.f32 %v8783_v6, %v5532_v58 }
 0x404   :  { %v5534_v12 = vmax.f32 %v5470_v16, 0.0  ;;  %v4978_v52 = vpop.f32.mrb[40].mxu0  ;;  %v5667_v21 = vadd.f32 %v5602_v50, %v5601_v37  ;;  %v5535_v54 = vmax.f32 %v5471_v18, 0.0  ;;  %v5664_v4 = vadd.f32 %v5663_v7, %v5600_v24 }
 0x405   :  { %v5605_v56 = vmul.f32 %v8776_v14, %v5533_v23  ;;  %v5473_v62 = vadd.f32 %v8755_v3, %v4978_v52  ;;  %v5300_v53 = vpop.f32.mrb[40].mxu1  ;;  %v4980_v47 = vpop.f32.mrb[41].mxu0  ;;  %v5536_v59 = vmax.f32 %v5472_v48, 0.0 }
 0x406   :  { %v5606_v11 = vmul.f32 %v8780_v41, %v5534_v12  ;;  %v5475_v20 = vadd.f32 %v8757_v42, %v5300_v53  ;;  %v5474_v22 = vadd.f32 %v8759_v38, %v4980_v47  ;;  %v5302_v45 = vpop.f32.mrb[41].mxu1  ;;  %5665 = vadd.xlane.f32.xlu0 %v5664_v4  ;;  %v5668_v9 = vadd.f32 %v5667_v21, %v5603_v35 }
 0x407   :  { %v5537_v63 = vmax.f32 %v5473_v62, 0.0  ;;  %v5476_v19 = vadd.f32 %v8761_v57, %v5302_v45  ;;  %v5607_v15 = vmul.f32 %v8788_v10, %v5535_v54  ;;  %v5608_v61 = vmul.f32 %v8795_v27, %v5536_v59 }
 0x408   :  { %v5672_v17 = vadd.f32 %v5606_v11, %v5605_v56  ;;  %v5539_v0 = vmax.f32 %v5475_v20, 0.0  ;;  %v5538_v49 = vmax.f32 %v5474_v22, 0.0  ;;  %v4984_v28 = vpop.f32.mrb[42].mxu0  ;;  %v5669_v46 = vadd.f32 %v5668_v9, %v5604_v26 }
 0x409   :  { %v5609_v60 = vmul.f32 %v8764_v30, %v5537_v63  ;;  %v5477_v25 = vadd.f32 %v8755_v3, %v4984_v28  ;;  %v5306_v31 = vpop.f32.mrb[42].mxu1  ;;  %v4986_v39 = vpop.f32.mrb[43].mxu0  ;;  %v5540_v8 = vmax.f32 %v5476_v19, 0.0 }
 0x40a   :  { %v5610_v13 = vmul.f32 %v8768_v51, %v5538_v49  ;;  %v5479_v29 = vadd.f32 %v8757_v42, %v5306_v31  ;;  %v5478_v43 = vadd.f32 %v8759_v38, %v4986_v39  ;;  %v5308_v33 = vpop.f32.mrb[43].mxu1  ;;  %5670 = vadd.xlane.f32.xlu1 %v5669_v46  ;;  %v5673_v34 = vadd.f32 %v5672_v17, %v5607_v15 }
 0x40b   :  { %v5541_v44 = vmax.f32 %v5477_v25, 0.0  ;;  %v5480_v37 = vadd.f32 %v8761_v57, %v5308_v33  ;;  %v5611_v36 = vmul.f32 %v8773_v55, %v5539_v0  ;;  %v5612_v48 = vmul.f32 %v8783_v6, %v5540_v8 }
 0x40c   :  { %v5677_v2 = vadd.f32 %v5610_v13, %v5609_v60  ;;  %v5542_v32 = vmax.f32 %v5478_v43, 0.0  ;;  %v4990_v50 = vpop.f32.mrb[44].mxu0  ;;  %v5543_v18 = vmax.f32 %v5479_v29, 0.0  ;;  %v5674_v23 = vadd.f32 %v5673_v34, %v5608_v61 }
 0x40d   :  { %v5613_v58 = vmul.f32 %v8776_v14, %v5541_v44  ;;  %v5481_v16 = vadd.f32 %v8755_v3, %v4990_v50  ;;  %v5312_v1 = vpop.f32.mrb[44].mxu1  ;;  %v4992_v24 = vpop.f32.mrb[45].mxu0  ;;  %v5544_v21 = vmax.f32 %v5480_v37, 0.0 }
 0x40e   :  { %v5614_v7 = vmul.f32 %v8780_v41, %v5542_v32  ;;  %v5483_v35 = vadd.f32 %v8757_v42, %v5312_v1  ;;  %v5482_v12 = vadd.f32 %v8759_v38, %v4992_v24  ;;  %v5314_v52 = vpop.f32.mrb[45].mxu1  ;;  %5675 = vadd.xlane.f32.xlu1 %v5674_v23  ;;  %v5678_v62 = vadd.f32 %v5677_v2, %v5611_v36 }
 0x40f   :  { %v5545_v56 = vmax.f32 %v5481_v16, 0.0  ;;  %v5484_v54 = vadd.f32 %v8761_v57, %v5314_v52  ;;  %v5615_v20 = vmul.f32 %v8788_v10, %v5543_v18  ;;  %v5616_v28 = vmul.f32 %v8795_v27, %v5544_v21 }
 0x410   :  { %v5682_v53 = vadd.f32 %v5614_v7, %v5613_v58  ;;  %v5547_v47 = vmax.f32 %v5483_v35, 0.0  ;;  %v5546_v4 = vmax.f32 %v5482_v12, 0.0  ;;  %v4996_v11 = vpop.f32.mrb[46].mxu0  ;;  %v5679_v63 = vadd.f32 %v5678_v62, %v5612_v48 }
 0x411   :  { %v5617_v22 = vmul.f32 %v8764_v30, %v5545_v56  ;;  %v5485_v45 = vadd.f32 %v8755_v3, %v4996_v11  ;;  %v5318_v26 = vpop.f32.mrb[46].mxu1  ;;  %v4998_v59 = vpop.f32.mrb[47].mxu0  ;;  %v5548_v9 = vmax.f32 %v5484_v54, 0.0 }
 0x412   :  { %v5618_v19 = vmul.f32 %v8768_v51, %v5546_v4  ;;  %v5487_v17 = vadd.f32 %v8757_v42, %v5318_v26  ;;  %v5486_v0 = vadd.f32 %v8759_v38, %v4998_v59  ;;  %v5320_v49 = vpop.f32.mrb[47].mxu1  ;;  %5680 = vadd.xlane.f32.xlu0 %v5679_v63  ;;  %v5683_v25 = vadd.f32 %v5682_v53, %v5615_v20 }
 0x413   :  { %v5549_v15 = vmax.f32 %v5485_v45, 0.0  ;;  %v5488_v60 = vadd.f32 %v8761_v57, %v5320_v49  ;;  %v5619_v31 = vmul.f32 %v8773_v55, %v5547_v47  ;;  %v5620_v37 = vmul.f32 %v8783_v6, %v5548_v9 }
 0x414   :  { %v5687_v39 = vadd.f32 %v5618_v19, %v5617_v22  ;;  %v5550_v46 = vmax.f32 %v5486_v0, 0.0  ;;  %v5002_v13 = vpop.f32.mrb[48].mxu0  ;;  %v5551_v29 = vmax.f32 %v5487_v17, 0.0  ;;  %v5684_v44 = vadd.f32 %v5683_v25, %v5616_v28 }
 0x415   :  { %v5621_v8 = vmul.f32 %v8776_v14, %v5549_v15  ;;  %v5489_v43 = vadd.f32 %v8755_v3, %v5002_v13  ;;  %v5324_v33 = vpop.f32.mrb[48].mxu1  ;;  %v5004_v61 = vpop.f32.mrb[49].mxu0  ;;  %v5552_v50 = vmax.f32 %v5488_v60, 0.0 }
 0x416   :  { %v5622_v34 = vmul.f32 %v8780_v41, %v5550_v46  ;;  %v5491_v36 = vadd.f32 %v8757_v42, %v5324_v33  ;;  %v5490_v2 = vadd.f32 %v8759_v38, %v5004_v61  ;;  %v5326_v32 = vpop.f32.mrb[49].mxu1  ;;  %5685 = vadd.xlane.f32.xlu1 %v5684_v44  ;;  %v5688_v16 = vadd.f32 %v5687_v39, %v5619_v31 }
 0x417   :  { %v5553_v58 = vmax.f32 %v5489_v43, 0.0  ;;  %v5492_v18 = vadd.f32 %v8761_v57, %v5326_v32  ;;  %v5623_v7 = vmul.f32 %v8788_v10, %v5551_v29  ;;  %v5624_v11 = vmul.f32 %v8795_v27, %v5552_v50 }
 0x418   :  { %v5692_v1 = vadd.f32 %v5622_v34, %v5621_v8  ;;  %v5555_v24 = vmax.f32 %v5491_v36, 0.0  ;;  %v5554_v23 = vmax.f32 %v5490_v2, 0.0  ;;  %v5008_v48 = vpop.f32.mrb[50].mxu0  ;;  %v5689_v56 = vadd.f32 %v5688_v16, %v5620_v37 }
 0x419   :  { %v5625_v35 = vmul.f32 %v8764_v30, %v5553_v58  ;;  %v5493_v12 = vadd.f32 %v8755_v3, %v5008_v48  ;;  %v5330_v52 = vpop.f32.mrb[50].mxu1  ;;  %v5010_v21 = vpop.f32.mrb[51].mxu0  ;;  %v5556_v62 = vmax.f32 %v5492_v18, 0.0 }
 0x41a   :  { %v5626_v54 = vmul.f32 %v8768_v51, %v5554_v23  ;;  %v5495_v53 = vadd.f32 %v8757_v42, %v5330_v52  ;;  %v5494_v47 = vadd.f32 %v8759_v38, %v5010_v21  ;;  %v5332_v4 = vpop.f32.mrb[51].mxu1  ;;  %5690 = vadd.xlane.f32.xlu0 %v5689_v56  ;;  %v5693_v45 = vadd.f32 %v5692_v1, %v5623_v7 }
 0x41b   :  { %v5557_v20 = vmax.f32 %v5493_v12, 0.0  ;;  %v5496_v22 = vadd.f32 %v8761_v57, %v5332_v4  ;;  %v5627_v26 = vmul.f32 %v8773_v55, %v5555_v24  ;;  %v5628_v60 = vmul.f32 %v8783_v6, %v5556_v62 }
 0x41c   :  { %v5697_v59 = vadd.f32 %v5626_v54, %v5625_v35  ;;  %v5558_v63 = vmax.f32 %v5494_v47, 0.0  ;;  %v5014_v19 = vpop.f32.mrb[52].mxu0  ;;  %v5559_v17 = vmax.f32 %v5495_v53, 0.0  ;;  %v5694_v15 = vadd.f32 %v5693_v45, %v5624_v11 }
 0x41d   :  { %v5629_v9 = vmul.f32 %v8776_v14, %v5557_v20  ;;  %v5497_v0 = vadd.f32 %v8755_v3, %v5014_v19  ;;  %v5336_v49 = vpop.f32.mrb[52].mxu1  ;;  %v5016_v28 = vpop.f32.mrb[53].mxu0  ;;  %v5560_v13 = vmax.f32 %v5496_v22, 0.0 }
 0x41e   :  { %v5630_v25 = vmul.f32 %v8780_v41, %v5558_v63  ;;  %v5499_v31 = vadd.f32 %v8757_v42, %v5336_v49  ;;  %v5498_v39 = vadd.f32 %v8759_v38, %v5016_v28  ;;  %v5338_v46 = vpop.f32.mrb[53].mxu1  ;;  %5695 = vadd.xlane.f32.xlu1 %v5694_v15  ;;  %v5698_v43 = vadd.f32 %v5697_v59, %v5627_v26 }
 0x41f   :  { %v5561_v8 = vmax.f32 %v5497_v0, 0.0  ;;  %v5500_v29 = vadd.f32 %v8761_v57, %v5338_v46  ;;  %v5631_v34 = vmul.f32 %v8788_v10, %v5559_v17  ;;  %v5632_v48 = vmul.f32 %v8795_v27, %v5560_v13 }
 0x420   :  { %v5702_v33 = vadd.f32 %v5630_v25, %v5629_v9  ;;  %v5563_v61 = vmax.f32 %v5499_v31, 0.0  ;;  %v5562_v44 = vmax.f32 %v5498_v39, 0.0  ;;  %v5020_v37 = vpop.f32.mrb[54].mxu0  ;;  %v5699_v58 = vadd.f32 %v5698_v43, %v5628_v60 }
 0x421   :  { %v5633_v36 = vmul.f32 %v8764_v30, %v5561_v8  ;;  %v5501_v2 = vadd.f32 %v8755_v3, %v5020_v37  ;;  %v5342_v32 = vpop.f32.mrb[54].mxu1  ;;  %v5022_v50 = vpop.f32.mrb[55].mxu0  ;;  %v5564_v16 = vmax.f32 %v5500_v29, 0.0 }
 0x422   :  { %v5634_v18 = vmul.f32 %v8768_v51, %v5562_v44  ;;  %v5503_v1 = vadd.f32 %v8757_v42, %v5342_v32  ;;  %v5502_v24 = vadd.f32 %v8759_v38, %v5022_v50  ;;  %v5344_v23 = vpop.f32.mrb[55].mxu1  ;;  %5700 = vadd.xlane.f32.xlu0 %v5699_v58  ;;  %v5703_v12 = vadd.f32 %v5702_v33, %v5631_v34 }
 0x423   :  { %v5565_v7 = vmax.f32 %v5501_v2, 0.0  ;;  %v5504_v35 = vadd.f32 %v8761_v57, %v5344_v23  ;;  %v5635_v52 = vmul.f32 %v8773_v55, %v5563_v61  ;;  %v5636_v22 = vmul.f32 %v8783_v6, %v5564_v16 }
 0x424   :  { %v5707_v21 = vadd.f32 %v5634_v18, %v5633_v36  ;;  %v5566_v56 = vmax.f32 %v5502_v24, 0.0  ;;  %v5026_v54 = vpop.f32.mrb[56].mxu0  ;;  %v5567_v53 = vmax.f32 %v5503_v1, 0.0  ;;  %v5704_v20 = vadd.f32 %v5703_v12, %v5632_v48 }
 0x425   :  { %v5637_v62 = vmul.f32 %v8776_v14, %v5565_v7  ;;  %v5505_v47 = vadd.f32 %v8755_v3, %v5026_v54  ;;  %v5348_v4 = vpop.f32.mrb[56].mxu1  ;;  %v5028_v11 = vpop.f32.mrb[57].mxu0  ;;  %v5568_v19 = vmax.f32 %v5504_v35, 0.0 }
 0x426   :  { %v5638_v45 = vmul.f32 %v8780_v41, %v5566_v56  ;;  %v5507_v26 = vadd.f32 %v8757_v42, %v5348_v4  ;;  %v5506_v59 = vadd.f32 %v8759_v38, %v5028_v11  ;;  %v5350_v63 = vpop.f32.mrb[57].mxu1  ;;  %5705 = vadd.xlane.f32.xlu1 %v5704_v20  ;;  %v5708_v0 = vadd.f32 %v5707_v21, %v5635_v52 }
 0x427   :  { %v5569_v9 = vmax.f32 %v5505_v47, 0.0  ;;  %v5508_v17 = vadd.f32 %v8761_v57, %v5350_v63  ;;  %v5639_v25 = vmul.f32 %v8788_v10, %v5567_v53  ;;  %v5640_v37 = vmul.f32 %v8795_v27, %v5568_v19 }
 0x428   :  { %v5712_v49 = vadd.f32 %v5638_v45, %v5637_v62  ;;  %v5571_v28 = vmax.f32 %v5507_v26, 0.0  ;;  %v5570_v15 = vmax.f32 %v5506_v59, 0.0  ;;  %v5032_v60 = vpop.f32.mrb[58].mxu0  ;;  %v5709_v8 = vadd.f32 %v5708_v0, %v5636_v22 }
 0x429   :  { %v5641_v31 = vmul.f32 %v8764_v30, %v5569_v9  ;;  %v5509_v39 = vadd.f32 %v8755_v3, %v5032_v60  ;;  %v5354_v46 = vpop.f32.mrb[58].mxu1  ;;  %v5034_v13 = vpop.f32.mrb[59].mxu0  ;;  %v5572_v43 = vmax.f32 %v5508_v17, 0.0 }
 0x42a   :  { %v5642_v29 = vmul.f32 %v8768_v51, %v5570_v15  ;;  %v5511_v33 = vadd.f32 %v8757_v42, %v5354_v46  ;;  %v5510_v61 = vadd.f32 %v8759_v38, %v5034_v13  ;;  %v5356_v44 = vpop.f32.mrb[59].mxu1  ;;  %5710 = vadd.xlane.f32.xlu0 %v5709_v8  ;;  %v5713_v2 = vadd.f32 %v5712_v49, %v5639_v25 }
 0x42b   :  { %v5573_v34 = vmax.f32 %v5509_v39, 0.0  ;;  %v5512_v36 = vadd.f32 %v8761_v57, %v5356_v44  ;;  %v5643_v32 = vmul.f32 %v8773_v55, %v5571_v28  ;;  %v5644_v35 = vmul.f32 %v8783_v6, %v5572_v43 }
 0x42c   :  { %v5717_v50 = vadd.f32 %v5642_v29, %v5641_v31  ;;  %v5574_v58 = vmax.f32 %v5510_v61, 0.0  ;;  %v5038_v18 = vpop.f32.mrb[60].mxu0  ;;  %v5575_v1 = vmax.f32 %v5511_v33, 0.0  ;;  %v5714_v7 = vadd.f32 %v5713_v2, %v5640_v37 }
 0x42d   :  { %v5645_v16 = vmul.f32 %v8776_v14, %v5573_v34  ;;  %v5513_v24 = vadd.f32 %v8755_v3, %v5038_v18  ;;  %v5360_v23 = vpop.f32.mrb[60].mxu1  ;;  %v5040_v48 = vpop.f32.mrb[61].mxu0  ;;  %v5576_v54 = vmax.f32 %v5512_v36, 0.0 }
 0x42e   :  { %v5646_v12 = vmul.f32 %v8780_v41, %v5574_v58  ;;  %v5515_v52 = vadd.f32 %v8757_v42, %v5360_v23  ;;  %v5514_v21 = vadd.f32 %v8759_v38, %v5040_v48  ;;  %v5362_v56 = vpop.f32.mrb[61].mxu1  ;;  %5715 = vadd.xlane.f32.xlu1 %v5714_v7  ;;  %v5718_v47 = vadd.f32 %v5717_v50, %v5643_v32 }
 0x42f   :  { %v5577_v62 = vmax.f32 %v5513_v24, 0.0  ;;  %v5516_v53 = vadd.f32 %v8761_v57, %v5362_v56  ;;  %v5647_v45 = vmul.f32 %v8788_v10, %v5575_v1  ;;  %v5648_v60 = vmul.f32 %v8795_v27, %v5576_v54 }
 0x430   :  { %v5722_v4 = vadd.f32 %v5646_v12, %v5645_v16  ;;  %v5579_v11 = vmax.f32 %v5515_v52, 0.0  ;;  %v5578_v20 = vmax.f32 %v5514_v21, 0.0  ;;  %v5044_v22 = vpop.f32.mrb[62].mxu0  ;;  %v5719_v9 = vadd.f32 %v5718_v47, %v5644_v35 }
 0x431   :  { %v5649_v26 = vmul.f32 %v8764_v30, %v5577_v62  ;;  %v5517_v59 = vadd.f32 %v8755_v3, %v5044_v22  ;;  %v5366_v63 = vpop.f32.mrb[62].mxu1  ;;  %v5046_v19 = vpop.f32.mrb[63].mxu0  ;;  %v5580_v0 = vmax.f32 %v5516_v53, 0.0  ;;  %v5754_v58 = vand.u32 127, %v9093_v5 }
 0x432   :  { %v5650_v17 = vmul.f32 %v8768_v51, %v5578_v20  ;;  %v5519_v49 = vadd.f32 %v8757_v42, %v5366_v63  ;;  %v5518_v28 = vadd.f32 %v8759_v38, %v5046_v19  ;;  %v5368_v15 = vpop.f32.mrb[63].mxu1  ;;  %5720 = vadd.xlane.f32.xlu0 %v5719_v9  ;;  %v5723_v30 = vadd.f32 %v5722_v4, %v5647_v45 }
 0x433   :  { %v5581_v25 = vmax.f32 %v5517_v59, 0.0  ;;  %v5520_v31 = vadd.f32 %v8761_v57, %v5368_v15  ;;  %v5651_v3 = vmul.f32 %v8773_v55, %v5579_v11  ;;  %v5652_v42 = vmul.f32 %v8783_v6, %v5580_v0 }
 0x434   :  { %v5727_v39 = vadd.f32 %v5650_v17, %v5649_v26  ;;  %v5583_v46 = vmax.f32 %v5519_v49, 0.0  ;;  %v5582_v13 = vmax.f32 %v5518_v28, 0.0  ;;  %v5724_v8 = vadd.f32 %v5723_v30, %v5648_v60 }
 0x435   :  { %v5653_v51 = vmul.f32 %v8776_v14, %v5581_v25  ;;  %v5584_v29 = vmax.f32 %v5520_v31, 0.0  ;;  %v5759_v18 = vadd.s32 4294967288, %v5754_v58  ;;  %v5757_v23 = vsub.s32 %v5754_v58, %v8749_v40 }
 0x436   :  { %v5654_v38 = vmul.f32 %v8780_v41, %v5582_v13  ;;  %v5728_v43 = vadd.f32 %v5727_v39, %v5651_v3  ;;  %5725 = vadd.xlane.f32.xlu1 %v5724_v8  ;;  %v5655_v33 = vmul.f32 %v8788_v10, %v5583_v46 }
 0x437   :  { %v5656_v44 = vmul.f32 %v8795_v27, %v5584_v29  ;;  %v5762_v1 = vsub.s32 %v5759_v18, %v8749_v40 }
 0x438   :  { %v5732_v57 = vadd.f32 %v5654_v38, %v5653_v51  ;;  %v5729_v61 = vadd.f32 %v5728_v43, %v5652_v42  ;;  %v5961_v51 = vld [vmem:[#allocation3] ss:$0 sm:$0xff] }
 0x43a   :  { %5730 = vadd.xlane.f32.xlu0 %v5729_v61  ;;  %v5733_v55 = vadd.f32 %v5732_v57, %v5655_v33 }
 0x43c   :  { %v5734_v37 = vadd.f32 %v5733_v55, %v5656_v44 }
 0x43e   :  { %5735 = vadd.xlane.f32.xlu1 %v5734_v37 }
 0x48f   :  { %v5661_v14 = vpop.xlane.xlu0 %5660 }
 0x490   :  { %v5758_v62 = vrot.slane %v5661_v14, %v5757_v23 }
 0x493   :  { %v5666_v2 = vpop.xlane.xlu0 %5665 }
 0x494   :  { %v5763_v35 = vrot.slane %v5666_v2, %v5762_v1 }
 0x496   :  { %v5765_v22 = vsel %vm5764_vm5, %v5763_v35, %v5758_v62 }
 0x497   :  { %v5671_v34 = vpop.xlane.xlu1 %5670 }
 0x498   :  { %v5769_v12 = vrot.slane %v5671_v34, %v5757_v23 }
 0x49b   :  { %v5676_v36 = vpop.xlane.xlu1 %5675 }
 0x49c   :  { %v5773_v48 = vrot.slane %v5676_v36, %v5762_v1 }
 0x49e   :  { %v5774_v53 = vsel %vm5764_vm5, %v5773_v48, %v5769_v12 }
 0x49f   :  { %v5681_v32 = vpop.xlane.xlu0 %5680  ;;  %v5830_v59 = vsel %vm5829_vm6, %v5774_v53, %v5765_v22 }
 0x4a0   :  { %v5778_v56 = vrot.slane %v5681_v32, %v5757_v23 }
 0x4a3   :  { %v5686_v6 = vpop.xlane.xlu1 %5685 }
 0x4a4   :  { %v5782_v7 = vrot.slane %v5686_v6, %v5762_v1 }
 0x4a6   :  { %v5783_v11 = vsel %vm5764_vm5, %v5782_v7, %v5778_v56 }
 0x4a7   :  { %v5691_v50 = vpop.xlane.xlu0 %5690  ;;  %v5832_v17 = vsel %vm5831_vm7, %v5783_v11, %v5830_v59 }
 0x4a8   :  { %v5787_v47 = vrot.slane %v5691_v50, %v5757_v23 }
 0x4ab   :  { %v5696_v41 = vpop.xlane.xlu1 %5695 }
 0x4ac   :  { %v5791_v52 = vrot.slane %v5696_v41, %v5762_v1 }
 0x4ae   :  { %v5792_v45 = vsel %vm5764_vm5, %v5791_v52, %v5787_v47 }
 0x4af   :  { %v5701_v16 = vpop.xlane.xlu0 %5700  ;;  %v5834_v49 = vsel %vm5833_vm8, %v5792_v45, %v5832_v17 }
 0x4b0   :  { %v5796_v40 = vrot.slane %v5701_v16, %v5757_v23 }
 0x4b3   :  { %v5706_v10 = vpop.xlane.xlu1 %5705 }
 0x4b4   :  { %v5800_v54 = vrot.slane %v5706_v10, %v5762_v1 }
 0x4b6   :  { %v5801_v63 = vsel %vm5764_vm5, %v5800_v54, %v5796_v40 }
 0x4b7   :  { %v5711_v24 = vpop.xlane.xlu0 %5710  ;;  %v5836_v60 = vsel %vm5835_vm9, %v5801_v63, %v5834_v49 }
 0x4b8   :  { %v5805_v26 = vrot.slane %v5711_v24, %v5757_v23 }
 0x4bb   :  { %v5716_v27 = vpop.xlane.xlu1 %5715 }
 0x4bc   :  { %v5809_v4 = vrot.slane %v5716_v27, %v5762_v1 }
 0x4be   :  { %v5810_v0 = vsel %vm5764_vm5, %v5809_v4, %v5805_v26 }
 0x4bf   :  { %v5721_v5 = vpop.xlane.xlu0 %5720  ;;  %v5838_v30 = vsel %vm5837_vm10, %v5810_v0, %v5836_v60 }
 0x4c0   :  { %v5814_v19 = vrot.slane %v5721_v5, %v5757_v23 }
 0x4c3   :  { %v5726_v21 = vpop.xlane.xlu1 %5725 }
 0x4c4   :  { %v5818_v20 = vrot.slane %v5726_v21, %v5762_v1 }
 0x4c6   :  { %v5819_v28 = vsel %vm5764_vm5, %v5818_v20, %v5814_v19 }
 0x4c7   :  { %v5731_v9 = vpop.xlane.xlu0 %5730  ;;  %v5840_v39 = vsel %vm5839_vm11, %v5819_v28, %v5838_v30 }
 0x4c8   :  { %v5823_v25 = vrot.slane %v5731_v9, %v5757_v23 }
 0x4cb   :  { %v5736_v15 = vpop.xlane.xlu1 %5735 }
 0x4cc   :  { %v5827_v31 = vrot.slane %v5736_v15, %v5762_v1 }
 0x4ce   :  { %v5828_v3 = vsel %vm5764_vm5, %v5827_v31, %v5823_v25 }
 0x4cf   :  { %v5842_v46 = vsel %vm5841_vm12, %v5828_v3, %v5840_v39 }
 0x4d0   :  { %v5845_v13 = vsel %vm5844_vm13, %v5842_v46, 0.0 }
 0x4d1   :  { %5846 = vadd.xlane.f32.xlu0 %v5845_v13 }
 0x55e   :  { %v5847_v8 = vpop.xlane.xlu0 %5846 }
 0x55f   :  { %v5855_v42 = vadd.f32 %v5961_v51, %v5847_v8 }
 0x561   :  { %5857 = vst.msk [vmem:[%s8928_s6] sm:$0xff] %vm5856_vm14, %v5855_v42 }
 0x562   :  { %5862 = vsyncpa [#allocation5], 1 }
 0x563   :  { %5863 = vsyncpa [#allocation7], 1 }
 0x564   :  { %5864 = vsyncpa [#allocation10], 1 }

</bundles_post_ra>
